<compile_context>
chip_gen: v6e
topology: v6e:2x2x1
jax: 0.10.0
libtpu: 0.0.40
codegen_flags: <defaults>
</compile_context>

<pallas_src>
import functools

import jax
import jax.numpy as jnp
from jax import lax
from jax.experimental import pallas as pl
from jax.experimental.pallas import tpu as pltpu

HPAD = 128  # lane-aligned padding of the hidden size (H=30 -> 128)


# ----------------------------------------------------------------------------
# Fused Pallas kernel: all GRU layers + head in a single invocation
# ----------------------------------------------------------------------------
def _fused_model_kernel(*refs, num_layers, hpad, seq_len, batch):
    Hp, T, B = hpad, seq_len, batch

    x_ref = refs[0]                                   # (T*B, 2*I_pad) bf16
    layer_refs = refs[1:1 + 3 * num_layers]           # [wih, whh, bias] per layer
    head_w_ref = refs[1 + 3 * num_layers]             # (2*Hp + 128, 128) f32
    head_b_ref = refs[2 + 3 * num_layers]             # (4, 128) f32
    out_ref = refs[3 + 3 * num_layers]                # (B, 128) f32
    scratch = refs[4 + 3 * num_layers:]
    gi_ref = scratch[0]                               # (T*B, 6*Hp) f32
    seq_ref = scratch[1] if num_layers > 1 else None  # (T*B, 4*Hp) bf16

    h_last_f = None   # last-layer forward state after full sequence
    h_last_b = None   # last-layer backward state at original time T-1

    for l in range(num_layers):
        wih_ref, whh_ref, b_ref = layer_refs[3 * l:3 * l + 3]

        # ---- hoisted input projection: one matmul, both directions, all gates
        xin = x_ref[...] if l == 0 else seq_ref[...]
        gi_ref[...] = (jnp.dot(xin, wih_ref[...],
                               preferred_element_type=jnp.float32)
                       + b_ref[0:1, :])
        bhh = b_ref[1:2, :]
        whh = whh_ref[...]

        # h_cat layout: lanes 0:Hp = h_f, Hp:2Hp = h_b (padded lanes stay zero)
        h = jnp.zeros((B, 2 * Hp), jnp.float32)
        last_layer = (l == num_layers - 1)
        hs_f, hs_b = [], []

        # ---- fused fwd/bwd recurrence, fully unrolled over static T
        for i in range(T):
            gi = gi_ref[i * B:(i + 1) * B, :]          # fwd @ time i, bwd @ T-1-i
            gh = jnp.dot(h.astype(jnp.bfloat16), whh,
                         preferred_element_type=jnp.float32) + bhh
            # gate layout [r_f | r_b | z_f | z_b | n_f | n_b] -> both directions
            # share each elementwise op.
            r = jax.nn.sigmoid(gi[:, 0:2 * Hp] + gh[:, 0:2 * Hp])
            z = jax.nn.sigmoid(gi[:, 2 * Hp:4 * Hp] + gh[:, 2 * Hp:4 * Hp])
            n = jnp.tanh(gi[:, 4 * Hp:6 * Hp] + r * gh[:, 4 * Hp:6 * Hp])
            h = (1.0 - z) * n + z * h
            if last_layer:
                if i == 0:
                    h_last_b = h[:, Hp:2 * Hp]         # bwd output at time T-1
            else:
                hs_f.append(h[:, 0:Hp].astype(jnp.bfloat16))
                hs_b.append(h[:, Hp:2 * Hp].astype(jnp.bfloat16))

        if last_layer:
            h_last_f = h[:, 0:Hp]
        else:
            # Inter-layer sequence scratch (bf16), whole column-slab stores:
            #   cols 0:2Hp  = layer output in forward-time order
            #   cols 2Hp:4Hp = layer output in reversed-time order (for bwd dir)
            seq_ref[:, 0:Hp] = jnp.concatenate(hs_f, axis=0)
            seq_ref[:, Hp:2 * Hp] = jnp.concatenate(hs_b[::-1], axis=0)
            seq_ref[:, 2 * Hp:3 * Hp] = jnp.concatenate(hs_f[::-1], axis=0)
            seq_ref[:, 3 * Hp:4 * Hp] = jnp.concatenate(hs_b, axis=0)

    # ---- head: Linear(60->30) -> BatchNorm1d (batch stats) -> ReLU -> Linear(30->1)
    h_head = jnp.concatenate([h_last_f, h_last_b], axis=1)         # (B, 2*Hp)
    l1w = head_w_ref[0:2 * Hp, :]
    l2w = head_w_ref[2 * Hp:2 * Hp + 128, :]
    l1b = head_b_ref[0:1, :]
    gamma = head_b_ref[1:2, :]
    beta = head_b_ref[2:3, :]
    l2b = head_b_ref[3:4, :]

    y = jnp.dot(h_head, l1w, preferred_element_type=jnp.float32) + l1b
    mean = jnp.mean(y, axis=0, keepdims=True)
    var = jnp.mean((y - mean) ** 2, axis=0, keepdims=True)          # biased var
    y = (y - mean) * lax.rsqrt(var + 1e-5) * gamma + beta
    y = jnp.maximum(y, 0.0)
    out_ref[...] = (jnp.dot(y, l2w, preferred_element_type=jnp.float32) + l2b)


# ----------------------------------------------------------------------------
# Wrapper
# ----------------------------------------------------------------------------
_VMEM = pl.BlockSpec(memory_space=pltpu.MemorySpace.VMEM)


@jax.jit
def model_forward(x_bti, params):
    """x_bti: (B, T, I), batch_first=True. Returns (B,) like torch out.squeeze()."""
    B, T, I = x_bti.shape
    layers = params["layers"]
    num_layers = len(layers)
    Hp = layers[0]["whh"].shape[0] // 2
    ipad = layers[0]["wih"].shape[0] // 2

    # seq-major bf16 slab with both time orders side by side:
    #   cols 0:ipad = x(t), cols ipad:2*ipad = x(T-1-t)
    xs = jnp.transpose(x_bti, (1, 0, 2)).astype(jnp.float32)       # (T, B, I)
    if ipad != I:
        xs = jnp.pad(xs, ((0, 0), (0, 0), (0, ipad - I)))
    xr = xs[::-1]
    x_cat = jnp.concatenate([xs, xr], axis=-1).reshape(T * B, 2 * ipad)
    x_cat = x_cat.astype(jnp.bfloat16)

    operands = [x_cat]
    for lp in layers:
        operands += [lp["wih"], lp["whh"], lp["bias"]]
    operands += [params["head_w"], params["head_b"]]

    scratch = [pltpu.VMEM((T * B, 6 * Hp), jnp.float32)]
    if num_layers > 1:
        scratch.append(pltpu.VMEM((T * B, 4 * Hp), jnp.bfloat16))

    kernel = functools.partial(_fused_model_kernel, num_layers=num_layers,
                               hpad=Hp, seq_len=T, batch=B)
    out = pl.pallas_call(
        kernel,
        out_shape=jax.ShapeDtypeStruct((B, 128), jnp.float32),
        in_specs=[_VMEM] * len(operands),
        out_specs=_VMEM,
        scratch_shapes=scratch,
        compiler_params=pltpu.CompilerParams(vmem_limit_bytes=48 * 1024 * 1024),
    )(*operands)
    return out[:, 0]


# ----------------------------------------------------------------------------
# Deterministic parameter init (PyTorch-style uniform ranges), pre-packed
# into the lane-aligned block-diagonal layouts the kernel expects.
# ----------------------------------------------------------------------------
def init_params(key, input_size, hidden_size, num_layers, hpad=HPAD):
    H, Hp = hidden_size, hpad
    k_gru = 1.0 / float(H) ** 0.5
    ipad = ((input_size + 7) // 8) * 8

    def u(k, shape, scale):
        return jax.random.uniform(k, shape, jnp.float32, -scale, scale)

    # gate column offsets in the packed (.., 6*Hp) layout:
    #   [r_f | r_b | z_f | z_b | n_f | n_b], each Hp lanes wide
    col = {("r", 0): 0, ("r", 1): Hp, ("z", 0): 2 * Hp, ("z", 1): 3 * Hp,
           ("n", 0): 4 * Hp, ("n", 1): 5 * Hp}

    keys = iter(jax.random.split(key, num_layers * 24 + 8))
    layer_params = []
    for l in range(num_layers):
        in_dim = input_size if l == 0 else 2 * H
        ih_rows = 2 * ipad if l == 0 else 4 * Hp
        wih = jnp.zeros((ih_rows, 6 * Hp), jnp.float32)
        whh = jnp.zeros((2 * Hp, 6 * Hp), jnp.float32)
        bias = jnp.zeros((2, 6 * Hp), jnp.float32)

        for d in (0, 1):                      # 0 = forward, 1 = backward
            for g in ("r", "z", "n"):
                c = col[(g, d)]
                Wi = u(next(keys), (in_dim, H), k_gru)
                Wh = u(next(keys), (H, H), k_gru)
                bi = u(next(keys), (H,), k_gru)
                bh = u(next(keys), (H,), k_gru)
                if l == 0:
                    # fwd direction reads x(t) rows [0:ipad], bwd reads x(T-1-t)
                    wih = wih.at[d * ipad:d * ipad + in_dim, c:c + H].set(Wi)
                else:
                    # fwd gates read fwd-time seq block (rows 0:2Hp),
                    # bwd gates read reversed-time seq block (rows 2Hp:4Hp);
                    # within a block: rows 0:H multiply h_f, rows Hp:Hp+H h_b
                    rbase = 2 * Hp * d
                    wih = wih.at[rbase:rbase + H, c:c + H].set(Wi[0:H])
                    wih = wih.at[rbase + Hp:rbase + Hp + H, c:c + H].set(Wi[H:2 * H])
                whh = whh.at[d * Hp:d * Hp + H, c:c + H].set(Wh)
                bias = bias.at[0, c:c + H].set(bi)
                bias = bias.at[1, c:c + H].set(bh)

        layer_params.append({"wih": wih.astype(jnp.bfloat16),
                             "whh": whh.astype(jnp.bfloat16),
                             "bias": bias})

    # head: Linear(60,30) -> BN(30) -> ReLU -> Linear(30,1), packed & padded
    k1 = 1.0 / 60.0 ** 0.5
    k2 = 1.0 / 30.0 ** 0.5
    l1_w = u(next(keys), (60, 30), k1)
    l1_b = u(next(keys), (30,), k1)
    l2_w = u(next(keys), (30, 1), k2)
    l2_b = u(next(keys), (1,), k2)

    l1w_p = jnp.zeros((2 * Hp, 128), jnp.float32)
    l1w_p = l1w_p.at[0:H, 0:30].set(l1_w[0:H, :])          # rows for h_f
    l1w_p = l1w_p.at[Hp:Hp + H, 0:30].set(l1_w[H:2 * H, :])  # rows for h_b
    l2w_p = jnp.zeros((128, 128), jnp.float32)
    l2w_p = l2w_p.at[0:30, 0:1].set(l2_w)
    head_w = jnp.concatenate([l1w_p, l2w_p], axis=0)        # (2*Hp + 128, 128)

    head_b = jnp.zeros((4, 128), jnp.float32)
    head_b = head_b.at[0, 0:30].set(l1_b)                   # L1 bias
    head_b = head_b.at[1, 0:30].set(1.0)                    # BN gamma
    # row 2: BN beta = 0
    head_b = head_b.at[3, 0:1].set(l2_b)                    # L2 bias

    return {"layers": layer_params, "head_w": head_w, "head_b": head_b}


# ----------------------------------------------------------------------------
if __name__ == "__main__":
    # Model config consistent with Linear(60, 30): hidden_size=30, bidirectional.
    input_size = 16
    hidden_size = 30
    num_layers = 1
    batch_size = 4
    seq_len = 8
    # bias=True, batch_first=True, bidirectional=True

    key = jax.random.PRNGKey(0)
    k_param, k_x = jax.random.split(key)
    params = init_params(k_param, input_size, hidden_size, num_layers)
    x = jax.random.normal(k_x, (batch_size, seq_len, input_size), jnp.float32)

    out = model_forward(x, params)
    jax.block_until_ready(out)
    assert out.shape == (batch_size,), out.shape
    print("KERNEL_OK")
</pallas_src>

<mosaic_0001>
module attributes {stable_mosaic.version = 11 : i64} {
  func.func @_fused_model_kernel(%arg0: memref<32x32xbf16, #tpu.memory_space<vmem>>, %arg1: memref<32x768xbf16, #tpu.memory_space<vmem>>, %arg2: memref<256x768xbf16, #tpu.memory_space<vmem>>, %arg3: memref<2x768xf32, #tpu.memory_space<vmem>>, %arg4: memref<384x128xf32, #tpu.memory_space<vmem>>, %arg5: memref<4x128xf32, #tpu.memory_space<vmem>>, %arg6: memref<4x128xf32, #tpu.memory_space<vmem>>, %arg7: memref<32x768xf32, #tpu.memory_space<vmem>>) attributes {dimension_semantics = [], scalar_prefetch = 0 : i64, scratch_operands = 1 : i64, tpu.core_type = #tpu.core_type<tc>} {
    %c0 = arith.constant 0 : index
    %c0_0 = arith.constant 0 : index
    %0 = vector.load %arg0[%c0, %c0_0] : memref<32x32xbf16, #tpu.memory_space<vmem>>, vector<32x32xbf16>
    %c0_1 = arith.constant 0 : index
    %c0_2 = arith.constant 0 : index
    %1 = vector.load %arg1[%c0_1, %c0_2] : memref<32x768xbf16, #tpu.memory_space<vmem>>, vector<32x768xbf16>
    %cst = arith.constant dense<0.000000e+00> : vector<32x768xf32>
    %2 = tpu.matmul %0, %1, %cst {dimension_numbers = #tpu.dot_dimension_numbers<[1], [0], [0], [1], [0, 0, 1, 1], [], []>} : vector<32x32xbf16>, vector<32x768xbf16>, vector<32x768xf32> -> vector<32x768xf32>
    %c0_3 = arith.constant 0 : index
    %c0_4 = arith.constant 0 : index
    %3 = vector.load %arg3[%c0_3, %c0_4] : memref<2x768xf32, #tpu.memory_space<vmem>>, vector<1x768xf32>
    %4 = vector.broadcast %3 : vector<1x768xf32> to vector<32x768xf32>
    %5 = arith.addf %2, %4 : vector<32x768xf32>
    %c0_5 = arith.constant 0 : index
    %c0_6 = arith.constant 0 : index
    %6 = vector.load %arg7[%c0_5, %c0_6] : memref<32x768xf32, #tpu.memory_space<vmem>>, vector<32x768xf32>
    tpu.vector_store %arg7[%c0_5, %c0_6], %5 {strides = array<i32>} : memref<32x768xf32, #tpu.memory_space<vmem>>, vector<32x768xf32>,
    %c1 = arith.constant 1 : index
    %c0_7 = arith.constant 0 : index
    %7 = vector.load %arg3[%c1, %c0_7] : memref<2x768xf32, #tpu.memory_space<vmem>>, vector<1x768xf32>
    %c0_8 = arith.constant 0 : index
    %c0_9 = arith.constant 0 : index
    %8 = vector.load %arg2[%c0_8, %c0_9] : memref<256x768xbf16, #tpu.memory_space<vmem>>, vector<256x768xbf16>
    %cst_10 = arith.constant 0.000000e+00 : f32
    %9 = vector.broadcast %cst_10 : f32 to vector<4x256xf32>
    %c0_11 = arith.constant 0 : index
    %c0_12 = arith.constant 0 : index
    %10 = vector.load %arg7[%c0_11, %c0_12] : memref<32x768xf32, #tpu.memory_space<vmem>>, vector<4x768xf32>
    %11 = arith.truncf %9 : vector<4x256xf32> to vector<4x256xbf16>
    %cst_13 = arith.constant dense<0.000000e+00> : vector<4x768xf32>
    %12 = tpu.matmul %11, %8, %cst_13 {dimension_numbers = #tpu.dot_dimension_numbers<[1], [0], [0], [1], [0, 0, 1, 1], [], []>} : vector<4x256xbf16>, vector<256x768xbf16>, vector<4x768xf32> -> vector<4x768xf32>
    %13 = vector.broadcast %7 : vector<1x768xf32> to vector<4x768xf32>
    %14 = arith.addf %12, %13 : vector<4x768xf32>
    %15 = vector.extract_strided_slice %10 {offsets = [0, 0], sizes = [4, 256], strides = [1, 1]} : vector<4x768xf32> to vector<4x256xf32>
    %16 = vector.extract_strided_slice %14 {offsets = [0, 0], sizes = [4, 256], strides = [1, 1]} : vector<4x768xf32> to vector<4x256xf32>
    %17 = arith.addf %15, %16 : vector<4x256xf32>
    %18 = arith.negf %17 : vector<4x256xf32>
    %19 = math.exp %18 : vector<4x256xf32>
    %cst_14 = arith.constant 1.000000e+00 : f32
    %20 = vector.broadcast %cst_14 : f32 to vector<4x256xf32>
    %21 = arith.addf %20, %19 : vector<4x256xf32>
    %22 = arith.divf %20, %21 : vector<4x256xf32>
    %23 = vector.extract_strided_slice %10 {offsets = [0, 256], sizes = [4, 256], strides = [1, 1]} : vector<4x768xf32> to vector<4x256xf32>
    %24 = vector.extract_strided_slice %14 {offsets = [0, 256], sizes = [4, 256], strides = [1, 1]} : vector<4x768xf32> to vector<4x256xf32>
    %25 = arith.addf %23, %24 : vector<4x256xf32>
    %26 = arith.negf %25 : vector<4x256xf32>
    %27 = math.exp %26 : vector<4x256xf32>
    %cst_15 = arith.constant 1.000000e+00 : f32
    %28 = vector.broadcast %cst_15 : f32 to vector<4x256xf32>
    %29 = arith.addf %28, %27 : vector<4x256xf32>
    %30 = arith.divf %28, %29 : vector<4x256xf32>
    %31 = vector.extract_strided_slice %10 {offsets = [0, 512], sizes = [4, 256], strides = [1, 1]} : vector<4x768xf32> to vector<4x256xf32>
    %32 = vector.extract_strided_slice %14 {offsets = [0, 512], sizes = [4, 256], strides = [1, 1]} : vector<4x768xf32> to vector<4x256xf32>
    %33 = arith.mulf %22, %32 : vector<4x256xf32>
    %34 = arith.addf %31, %33 : vector<4x256xf32>
    %35 = math.tanh %34 : vector<4x256xf32>
    %cst_16 = arith.constant 1.000000e+00 : f32
    %36 = vector.broadcast %cst_16 : f32 to vector<4x256xf32>
    %37 = arith.subf %36, %30 : vector<4x256xf32>
    %38 = arith.mulf %37, %35 : vector<4x256xf32>
    %39 = arith.mulf %30, %9 : vector<4x256xf32>
    %40 = arith.addf %38, %39 : vector<4x256xf32>
    %41 = vector.extract_strided_slice %40 {offsets = [0, 128], sizes = [4, 128], strides = [1, 1]} : vector<4x256xf32> to vector<4x128xf32>
    %c4 = arith.constant 4 : index
    %c0_17 = arith.constant 0 : index
    %42 = vector.load %arg7[%c4, %c0_17] : memref<32x768xf32, #tpu.memory_space<vmem>>, vector<4x768xf32>
    %43 = arith.truncf %40 : vector<4x256xf32> to vector<4x256xbf16>
    %cst_18 = arith.constant dense<0.000000e+00> : vector<4x768xf32>
    %44 = tpu.matmul %43, %8, %cst_18 {dimension_numbers = #tpu.dot_dimension_numbers<[1], [0], [0], [1], [0, 0, 1, 1], [], []>} : vector<4x256xbf16>, vector<256x768xbf16>, vector<4x768xf32> -> vector<4x768xf32>
    %45 = vector.broadcast %7 : vector<1x768xf32> to vector<4x768xf32>
    %46 = arith.addf %44, %45 : vector<4x768xf32>
    %47 = vector.extract_strided_slice %42 {offsets = [0, 0], sizes = [4, 256], strides = [1, 1]} : vector<4x768xf32> to vector<4x256xf32>
    %48 = vector.extract_strided_slice %46 {offsets = [0, 0], sizes = [4, 256], strides = [1, 1]} : vector<4x768xf32> to vector<4x256xf32>
    %49 = arith.addf %47, %48 : vector<4x256xf32>
    %50 = arith.negf %49 : vector<4x256xf32>
    %51 = math.exp %50 : vector<4x256xf32>
    %cst_19 = arith.constant 1.000000e+00 : f32
    %52 = vector.broadcast %cst_19 : f32 to vector<4x256xf32>
    %53 = arith.addf %52, %51 : vector<4x256xf32>
    %54 = arith.divf %52, %53 : vector<4x256xf32>
    %55 = vector.extract_strided_slice %42 {offsets = [0, 256], sizes = [4, 256], strides = [1, 1]} : vector<4x768xf32> to vector<4x256xf32>
    %56 = vector.extract_strided_slice %46 {offsets = [0, 256], sizes = [4, 256], strides = [1, 1]} : vector<4x768xf32> to vector<4x256xf32>
    %57 = arith.addf %55, %56 : vector<4x256xf32>
    %58 = arith.negf %57 : vector<4x256xf32>
    %59 = math.exp %58 : vector<4x256xf32>
    %cst_20 = arith.constant 1.000000e+00 : f32
    %60 = vector.broadcast %cst_20 : f32 to vector<4x256xf32>
    %61 = arith.addf %60, %59 : vector<4x256xf32>
    %62 = arith.divf %60, %61 : vector<4x256xf32>
    %63 = vector.extract_strided_slice %42 {offsets = [0, 512], sizes = [4, 256], strides = [1, 1]} : vector<4x768xf32> to vector<4x256xf32>
    %64 = vector.extract_strided_slice %46 {offsets = [0, 512], sizes = [4, 256], strides = [1, 1]} : vector<4x768xf32> to vector<4x256xf32>
    %65 = arith.mulf %54, %64 : vector<4x256xf32>
    %66 = arith.addf %63, %65 : vector<4x256xf32>
    %67 = math.tanh %66 : vector<4x256xf32>
    %cst_21 = arith.constant 1.000000e+00 : f32
    %68 = vector.broadcast %cst_21 : f32 to vector<4x256xf32>
    %69 = arith.subf %68, %62 : vector<4x256xf32>
    %70 = arith.mulf %69, %67 : vector<4x256xf32>
    %71 = arith.mulf %62, %40 : vector<4x256xf32>
    %72 = arith.addf %70, %71 : vector<4x256xf32>
    %c8 = arith.constant 8 : index
    %c0_22 = arith.constant 0 : index
    %73 = vector.load %arg7[%c8, %c0_22] : memref<32x768xf32, #tpu.memory_space<vmem>>, vector<4x768xf32>
    %74 = arith.truncf %72 : vector<4x256xf32> to vector<4x256xbf16>
    %cst_23 = arith.constant dense<0.000000e+00> : vector<4x768xf32>
    %75 = tpu.matmul %74, %8, %cst_23 {dimension_numbers = #tpu.dot_dimension_numbers<[1], [0], [0], [1], [0, 0, 1, 1], [], []>} : vector<4x256xbf16>, vector<256x768xbf16>, vector<4x768xf32> -> vector<4x768xf32>
    %76 = vector.broadcast %7 : vector<1x768xf32> to vector<4x768xf32>
    %77 = arith.addf %75, %76 : vector<4x768xf32>
    %78 = vector.extract_strided_slice %73 {offsets = [0, 0], sizes = [4, 256], strides = [1, 1]} : vector<4x768xf32> to vector<4x256xf32>
    %79 = vector.extract_strided_slice %77 {offsets = [0, 0], sizes = [4, 256], strides = [1, 1]} : vector<4x768xf32> to vector<4x256xf32>
    %80 = arith.addf %78, %79 : vector<4x256xf32>
    %81 = arith.negf %80 : vector<4x256xf32>
    %82 = math.exp %81 : vector<4x256xf32>
    %cst_24 = arith.constant 1.000000e+00 : f32
    %83 = vector.broadcast %cst_24 : f32 to vector<4x256xf32>
    %84 = arith.addf %83, %82 : vector<4x256xf32>
    %85 = arith.divf %83, %84 : vector<4x256xf32>
    %86 = vector.extract_strided_slice %73 {offsets = [0, 256], sizes = [4, 256], strides = [1, 1]} : vector<4x768xf32> to vector<4x256xf32>
    %87 = vector.extract_strided_slice %77 {offsets = [0, 256], sizes = [4, 256], strides = [1, 1]} : vector<4x768xf32> to vector<4x256xf32>
    %88 = arith.addf %86, %87 : vector<4x256xf32>
    %89 = arith.negf %88 : vector<4x256xf32>
    %90 = math.exp %89 : vector<4x256xf32>
    %cst_25 = arith.constant 1.000000e+00 : f32
    %91 = vector.broadcast %cst_25 : f32 to vector<4x256xf32>
    %92 = arith.addf %91, %90 : vector<4x256xf32>
    %93 = arith.divf %91, %92 : vector<4x256xf32>
    %94 = vector.extract_strided_slice %73 {offsets = [0, 512], sizes = [4, 256], strides = [1, 1]} : vector<4x768xf32> to vector<4x256xf32>
    %95 = vector.extract_strided_slice %77 {offsets = [0, 512], sizes = [4, 256], strides = [1, 1]} : vector<4x768xf32> to vector<4x256xf32>
    %96 = arith.mulf %85, %95 : vector<4x256xf32>
    %97 = arith.addf %94, %96 : vector<4x256xf32>
    %98 = math.tanh %97 : vector<4x256xf32>
    %cst_26 = arith.constant 1.000000e+00 : f32
    %99 = vector.broadcast %cst_26 : f32 to vector<4x256xf32>
    %100 = arith.subf %99, %93 : vector<4x256xf32>
    %101 = arith.mulf %100, %98 : vector<4x256xf32>
    %102 = arith.mulf %93, %72 : vector<4x256xf32>
    %103 = arith.addf %101, %102 : vector<4x256xf32>
    %c12 = arith.constant 12 : index
    %c0_27 = arith.constant 0 : index
    %104 = vector.load %arg7[%c12, %c0_27] : memref<32x768xf32, #tpu.memory_space<vmem>>, vector<4x768xf32>
    %105 = arith.truncf %103 : vector<4x256xf32> to vector<4x256xbf16>
    %cst_28 = arith.constant dense<0.000000e+00> : vector<4x768xf32>
    %106 = tpu.matmul %105, %8, %cst_28 {dimension_numbers = #tpu.dot_dimension_numbers<[1], [0], [0], [1], [0, 0, 1, 1], [], []>} : vector<4x256xbf16>, vector<256x768xbf16>, vector<4x768xf32> -> vector<4x768xf32>
    %107 = vector.broadcast %7 : vector<1x768xf32> to vector<4x768xf32>
    %108 = arith.addf %106, %107 : vector<4x768xf32>
    %109 = vector.extract_strided_slice %104 {offsets = [0, 0], sizes = [4, 256], strides = [1, 1]} : vector<4x768xf32> to vector<4x256xf32>
    %110 = vector.extract_strided_slice %108 {offsets = [0, 0], sizes = [4, 256], strides = [1, 1]} : vector<4x768xf32> to vector<4x256xf32>
    %111 = arith.addf %109, %110 : vector<4x256xf32>
    %112 = arith.negf %111 : vector<4x256xf32>
    %113 = math.exp %112 : vector<4x256xf32>
    %cst_29 = arith.constant 1.000000e+00 : f32
    %114 = vector.broadcast %cst_29 : f32 to vector<4x256xf32>
    %115 = arith.addf %114, %113 : vector<4x256xf32>
    %116 = arith.divf %114, %115 : vector<4x256xf32>
    %117 = vector.extract_strided_slice %104 {offsets = [0, 256], sizes = [4, 256], strides = [1, 1]} : vector<4x768xf32> to vector<4x256xf32>
    %118 = vector.extract_strided_slice %108 {offsets = [0, 256], sizes = [4, 256], strides = [1, 1]} : vector<4x768xf32> to vector<4x256xf32>
    %119 = arith.addf %117, %118 : vector<4x256xf32>
    %120 = arith.negf %119 : vector<4x256xf32>
    %121 = math.exp %120 : vector<4x256xf32>
    %cst_30 = arith.constant 1.000000e+00 : f32
    %122 = vector.broadcast %cst_30 : f32 to vector<4x256xf32>
    %123 = arith.addf %122, %121 : vector<4x256xf32>
    %124 = arith.divf %122, %123 : vector<4x256xf32>
    %125 = vector.extract_strided_slice %104 {offsets = [0, 512], sizes = [4, 256], strides = [1, 1]} : vector<4x768xf32> to vector<4x256xf32>
    %126 = vector.extract_strided_slice %108 {offsets = [0, 512], sizes = [4, 256], strides = [1, 1]} : vector<4x768xf32> to vector<4x256xf32>
    %127 = arith.mulf %116, %126 : vector<4x256xf32>
    %128 = arith.addf %125, %127 : vector<4x256xf32>
    %129 = math.tanh %128 : vector<4x256xf32>
    %cst_31 = arith.constant 1.000000e+00 : f32
    %130 = vector.broadcast %cst_31 : f32 to vector<4x256xf32>
    %131 = arith.subf %130, %124 : vector<4x256xf32>
    %132 = arith.mulf %131, %129 : vector<4x256xf32>
    %133 = arith.mulf %124, %103 : vector<4x256xf32>
    %134 = arith.addf %132, %133 : vector<4x256xf32>
    %c16 = arith.constant 16 : index
    %c0_32 = arith.constant 0 : index
    %135 = vector.load %arg7[%c16, %c0_32] : memref<32x768xf32, #tpu.memory_space<vmem>>, vector<4x768xf32>
    %136 = arith.truncf %134 : vector<4x256xf32> to vector<4x256xbf16>
    %cst_33 = arith.constant dense<0.000000e+00> : vector<4x768xf32>
    %137 = tpu.matmul %136, %8, %cst_33 {dimension_numbers = #tpu.dot_dimension_numbers<[1], [0], [0], [1], [0, 0, 1, 1], [], []>} : vector<4x256xbf16>, vector<256x768xbf16>, vector<4x768xf32> -> vector<4x768xf32>
    %138 = vector.broadcast %7 : vector<1x768xf32> to vector<4x768xf32>
    %139 = arith.addf %137, %138 : vector<4x768xf32>
    %140 = vector.extract_strided_slice %135 {offsets = [0, 0], sizes = [4, 256], strides = [1, 1]} : vector<4x768xf32> to vector<4x256xf32>
    %141 = vector.extract_strided_slice %139 {offsets = [0, 0], sizes = [4, 256], strides = [1, 1]} : vector<4x768xf32> to vector<4x256xf32>
    %142 = arith.addf %140, %141 : vector<4x256xf32>
    %143 = arith.negf %142 : vector<4x256xf32>
    %144 = math.exp %143 : vector<4x256xf32>
    %cst_34 = arith.constant 1.000000e+00 : f32
    %145 = vector.broadcast %cst_34 : f32 to vector<4x256xf32>
    %146 = arith.addf %145, %144 : vector<4x256xf32>
    %147 = arith.divf %145, %146 : vector<4x256xf32>
    %148 = vector.extract_strided_slice %135 {offsets = [0, 256], sizes = [4, 256], strides = [1, 1]} : vector<4x768xf32> to vector<4x256xf32>
    %149 = vector.extract_strided_slice %139 {offsets = [0, 256], sizes = [4, 256], strides = [1, 1]} : vector<4x768xf32> to vector<4x256xf32>
    %150 = arith.addf %148, %149 : vector<4x256xf32>
    %151 = arith.negf %150 : vector<4x256xf32>
    %152 = math.exp %151 : vector<4x256xf32>
    %cst_35 = arith.constant 1.000000e+00 : f32
    %153 = vector.broadcast %cst_35 : f32 to vector<4x256xf32>
    %154 = arith.addf %153, %152 : vector<4x256xf32>
    %155 = arith.divf %153, %154 : vector<4x256xf32>
    %156 = vector.extract_strided_slice %135 {offsets = [0, 512], sizes = [4, 256], strides = [1, 1]} : vector<4x768xf32> to vector<4x256xf32>
    %157 = vector.extract_strided_slice %139 {offsets = [0, 512], sizes = [4, 256], strides = [1, 1]} : vector<4x768xf32> to vector<4x256xf32>
    %158 = arith.mulf %147, %157 : vector<4x256xf32>
    %159 = arith.addf %156, %158 : vector<4x256xf32>
    %160 = math.tanh %159 : vector<4x256xf32>
    %cst_36 = arith.constant 1.000000e+00 : f32
    %161 = vector.broadcast %cst_36 : f32 to vector<4x256xf32>
    %162 = arith.subf %161, %155 : vector<4x256xf32>
    %163 = arith.mulf %162, %160 : vector<4x256xf32>
    %164 = arith.mulf %155, %134 : vector<4x256xf32>
    %165 = arith.addf %163, %164 : vector<4x256xf32>
    %c20 = arith.constant 20 : index
    %c0_37 = arith.constant 0 : index
    %166 = vector.load %arg7[%c20, %c0_37] : memref<32x768xf32, #tpu.memory_space<vmem>>, vector<4x768xf32>
    %167 = arith.truncf %165 : vector<4x256xf32> to vector<4x256xbf16>
    %cst_38 = arith.constant dense<0.000000e+00> : vector<4x768xf32>
    %168 = tpu.matmul %167, %8, %cst_38 {dimension_numbers = #tpu.dot_dimension_numbers<[1], [0], [0], [1], [0, 0, 1, 1], [], []>} : vector<4x256xbf16>, vector<256x768xbf16>, vector<4x768xf32> -> vector<4x768xf32>
    %169 = vector.broadcast %7 : vector<1x768xf32> to vector<4x768xf32>
    %170 = arith.addf %168, %169 : vector<4x768xf32>
    %171 = vector.extract_strided_slice %166 {offsets = [0, 0], sizes = [4, 256], strides = [1, 1]} : vector<4x768xf32> to vector<4x256xf32>
    %172 = vector.extract_strided_slice %170 {offsets = [0, 0], sizes = [4, 256], strides = [1, 1]} : vector<4x768xf32> to vector<4x256xf32>
    %173 = arith.addf %171, %172 : vector<4x256xf32>
    %174 = arith.negf %173 : vector<4x256xf32>
    %175 = math.exp %174 : vector<4x256xf32>
    %cst_39 = arith.constant 1.000000e+00 : f32
    %176 = vector.broadcast %cst_39 : f32 to vector<4x256xf32>
    %177 = arith.addf %176, %175 : vector<4x256xf32>
    %178 = arith.divf %176, %177 : vector<4x256xf32>
    %179 = vector.extract_strided_slice %166 {offsets = [0, 256], sizes = [4, 256], strides = [1, 1]} : vector<4x768xf32> to vector<4x256xf32>
    %180 = vector.extract_strided_slice %170 {offsets = [0, 256], sizes = [4, 256], strides = [1, 1]} : vector<4x768xf32> to vector<4x256xf32>
    %181 = arith.addf %179, %180 : vector<4x256xf32>
    %182 = arith.negf %181 : vector<4x256xf32>
    %183 = math.exp %182 : vector<4x256xf32>
    %cst_40 = arith.constant 1.000000e+00 : f32
    %184 = vector.broadcast %cst_40 : f32 to vector<4x256xf32>
    %185 = arith.addf %184, %183 : vector<4x256xf32>
    %186 = arith.divf %184, %185 : vector<4x256xf32>
    %187 = vector.extract_strided_slice %166 {offsets = [0, 512], sizes = [4, 256], strides = [1, 1]} : vector<4x768xf32> to vector<4x256xf32>
    %188 = vector.extract_strided_slice %170 {offsets = [0, 512], sizes = [4, 256], strides = [1, 1]} : vector<4x768xf32> to vector<4x256xf32>
    %189 = arith.mulf %178, %188 : vector<4x256xf32>
    %190 = arith.addf %187, %189 : vector<4x256xf32>
    %191 = math.tanh %190 : vector<4x256xf32>
    %cst_41 = arith.constant 1.000000e+00 : f32
    %192 = vector.broadcast %cst_41 : f32 to vector<4x256xf32>
    %193 = arith.subf %192, %186 : vector<4x256xf32>
    %194 = arith.mulf %193, %191 : vector<4x256xf32>
    %195 = arith.mulf %186, %165 : vector<4x256xf32>
    %196 = arith.addf %194, %195 : vector<4x256xf32>
    %c24 = arith.constant 24 : index
    %c0_42 = arith.constant 0 : index
    %197 = vector.load %arg7[%c24, %c0_42] : memref<32x768xf32, #tpu.memory_space<vmem>>, vector<4x768xf32>
    %198 = arith.truncf %196 : vector<4x256xf32> to vector<4x256xbf16>
    %cst_43 = arith.constant dense<0.000000e+00> : vector<4x768xf32>
    %199 = tpu.matmul %198, %8, %cst_43 {dimension_numbers = #tpu.dot_dimension_numbers<[1], [0], [0], [1], [0, 0, 1, 1], [], []>} : vector<4x256xbf16>, vector<256x768xbf16>, vector<4x768xf32> -> vector<4x768xf32>
    %200 = vector.broadcast %7 : vector<1x768xf32> to vector<4x768xf32>
    %201 = arith.addf %199, %200 : vector<4x768xf32>
    %202 = vector.extract_strided_slice %197 {offsets = [0, 0], sizes = [4, 256], strides = [1, 1]} : vector<4x768xf32> to vector<4x256xf32>
    %203 = vector.extract_strided_slice %201 {offsets = [0, 0], sizes = [4, 256], strides = [1, 1]} : vector<4x768xf32> to vector<4x256xf32>
    %204 = arith.addf %202, %203 : vector<4x256xf32>
    %205 = arith.negf %204 : vector<4x256xf32>
    %206 = math.exp %205 : vector<4x256xf32>
    %cst_44 = arith.constant 1.000000e+00 : f32
    %207 = vector.broadcast %cst_44 : f32 to vector<4x256xf32>
    %208 = arith.addf %207, %206 : vector<4x256xf32>
    %209 = arith.divf %207, %208 : vector<4x256xf32>
    %210 = vector.extract_strided_slice %197 {offsets = [0, 256], sizes = [4, 256], strides = [1, 1]} : vector<4x768xf32> to vector<4x256xf32>
    %211 = vector.extract_strided_slice %201 {offsets = [0, 256], sizes = [4, 256], strides = [1, 1]} : vector<4x768xf32> to vector<4x256xf32>
    %212 = arith.addf %210, %211 : vector<4x256xf32>
    %213 = arith.negf %212 : vector<4x256xf32>
    %214 = math.exp %213 : vector<4x256xf32>
    %cst_45 = arith.constant 1.000000e+00 : f32
    %215 = vector.broadcast %cst_45 : f32 to vector<4x256xf32>
    %216 = arith.addf %215, %214 : vector<4x256xf32>
    %217 = arith.divf %215, %216 : vector<4x256xf32>
    %218 = vector.extract_strided_slice %197 {offsets = [0, 512], sizes = [4, 256], strides = [1, 1]} : vector<4x768xf32> to vector<4x256xf32>
    %219 = vector.extract_strided_slice %201 {offsets = [0, 512], sizes = [4, 256], strides = [1, 1]} : vector<4x768xf32> to vector<4x256xf32>
    %220 = arith.mulf %209, %219 : vector<4x256xf32>
    %221 = arith.addf %218, %220 : vector<4x256xf32>
    %222 = math.tanh %221 : vector<4x256xf32>
    %cst_46 = arith.constant 1.000000e+00 : f32
    %223 = vector.broadcast %cst_46 : f32 to vector<4x256xf32>
    %224 = arith.subf %223, %217 : vector<4x256xf32>
    %225 = arith.mulf %224, %222 : vector<4x256xf32>
    %226 = arith.mulf %217, %196 : vector<4x256xf32>
    %227 = arith.addf %225, %226 : vector<4x256xf32>
    %c28 = arith.constant 28 : index
    %c0_47 = arith.constant 0 : index
    %228 = vector.load %arg7[%c28, %c0_47] : memref<32x768xf32, #tpu.memory_space<vmem>>, vector<4x768xf32>
    %229 = arith.truncf %227 : vector<4x256xf32> to vector<4x256xbf16>
    %cst_48 = arith.constant dense<0.000000e+00> : vector<4x768xf32>
    %230 = tpu.matmul %229, %8, %cst_48 {dimension_numbers = #tpu.dot_dimension_numbers<[1], [0], [0], [1], [0, 0, 1, 1], [], []>} : vector<4x256xbf16>, vector<256x768xbf16>, vector<4x768xf32> -> vector<4x768xf32>
    %231 = vector.broadcast %7 : vector<1x768xf32> to vector<4x768xf32>
    %232 = arith.addf %230, %231 : vector<4x768xf32>
    %233 = vector.extract_strided_slice %228 {offsets = [0, 0], sizes = [4, 256], strides = [1, 1]} : vector<4x768xf32> to vector<4x256xf32>
    %234 = vector.extract_strided_slice %232 {offsets = [0, 0], sizes = [4, 256], strides = [1, 1]} : vector<4x768xf32> to vector<4x256xf32>
    %235 = arith.addf %233, %234 : vector<4x256xf32>
    %236 = arith.negf %235 : vector<4x256xf32>
    %237 = math.exp %236 : vector<4x256xf32>
    %cst_49 = arith.constant 1.000000e+00 : f32
    %238 = vector.broadcast %cst_49 : f32 to vector<4x256xf32>
    %239 = arith.addf %238, %237 : vector<4x256xf32>
    %240 = arith.divf %238, %239 : vector<4x256xf32>
    %241 = vector.extract_strided_slice %228 {offsets = [0, 256], sizes = [4, 256], strides = [1, 1]} : vector<4x768xf32> to vector<4x256xf32>
    %242 = vector.extract_strided_slice %232 {offsets = [0, 256], sizes = [4, 256], strides = [1, 1]} : vector<4x768xf32> to vector<4x256xf32>
    %243 = arith.addf %241, %242 : vector<4x256xf32>
    %244 = arith.negf %243 : vector<4x256xf32>
    %245 = math.exp %244 : vector<4x256xf32>
    %cst_50 = arith.constant 1.000000e+00 : f32
    %246 = vector.broadcast %cst_50 : f32 to vector<4x256xf32>
    %247 = arith.addf %246, %245 : vector<4x256xf32>
    %248 = arith.divf %246, %247 : vector<4x256xf32>
    %249 = vector.extract_strided_slice %228 {offsets = [0, 512], sizes = [4, 256], strides = [1, 1]} : vector<4x768xf32> to vector<4x256xf32>
    %250 = vector.extract_strided_slice %232 {offsets = [0, 512], sizes = [4, 256], strides = [1, 1]} : vector<4x768xf32> to vector<4x256xf32>
    %251 = arith.mulf %240, %250 : vector<4x256xf32>
    %252 = arith.addf %249, %251 : vector<4x256xf32>
    %253 = math.tanh %252 : vector<4x256xf32>
    %cst_51 = arith.constant 1.000000e+00 : f32
    %254 = vector.broadcast %cst_51 : f32 to vector<4x256xf32>
    %255 = arith.subf %254, %248 : vector<4x256xf32>
    %256 = arith.mulf %255, %253 : vector<4x256xf32>
    %257 = arith.mulf %248, %227 : vector<4x256xf32>
    %258 = arith.addf %256, %257 : vector<4x256xf32>
    %259 = vector.extract_strided_slice %258 {offsets = [0, 0], sizes = [4, 128], strides = [1, 1]} : vector<4x256xf32> to vector<4x128xf32>
    %260 = tpu.concatenate %259, %41 in 1 : vector<4x128xf32>, vector<4x128xf32> -> vector<4x256xf32>
    %c0_52 = arith.constant 0 : index
    %c0_53 = arith.constant 0 : index
    %261 = vector.load %arg4[%c0_52, %c0_53] : memref<384x128xf32, #tpu.memory_space<vmem>>, vector<256x128xf32>
    %c256 = arith.constant 256 : index
    %c0_54 = arith.constant 0 : index
    %262 = vector.load %arg4[%c256, %c0_54] : memref<384x128xf32, #tpu.memory_space<vmem>>, vector<128x128xf32>
    %c0_55 = arith.constant 0 : index
    %c0_56 = arith.constant 0 : index
    %263 = vector.load %arg5[%c0_55, %c0_56] : memref<4x128xf32, #tpu.memory_space<vmem>>, vector<1x128xf32>
    %c1_57 = arith.constant 1 : index
    %c0_58 = arith.constant 0 : index
    %264 = vector.load %arg5[%c1_57, %c0_58] : memref<4x128xf32, #tpu.memory_space<vmem>>, vector<1x128xf32>
    %c2 = arith.constant 2 : index
    %c0_59 = arith.constant 0 : index
    %265 = vector.load %arg5[%c2, %c0_59] : memref<4x128xf32, #tpu.memory_space<vmem>>, vector<1x128xf32>
    %c3 = arith.constant 3 : index
    %c0_60 = arith.constant 0 : index
    %266 = vector.load %arg5[%c3, %c0_60] : memref<4x128xf32, #tpu.memory_space<vmem>>, vector<1x128xf32>
    %cst_61 = arith.constant dense<0.000000e+00> : vector<4x128xf32>
    %267 = tpu.matmul %260, %261, %cst_61 {dimension_numbers = #tpu.dot_dimension_numbers<[1], [0], [0], [1], [0, 0, 1, 1], [], []>} : vector<4x256xf32>, vector<256x128xf32>, vector<4x128xf32> -> vector<4x128xf32>
    %268 = vector.broadcast %263 : vector<1x128xf32> to vector<4x128xf32>
    %269 = arith.addf %267, %268 : vector<4x128xf32>
    %cst_62 = arith.constant dense<0.000000e+00> : vector<128xf32>
    %270 = vector.multi_reduction <add>, %269, %cst_62 [0] : vector<4x128xf32> to vector<128xf32>
    %271 = vector.shape_cast %270 : vector<128xf32> to vector<1x128xf32>
    %cst_63 = arith.constant 4.000000e+00 : f32
    %272 = vector.broadcast %cst_63 : f32 to vector<1x128xf32>
    %273 = arith.divf %271, %272 : vector<1x128xf32>
    %274 = vector.broadcast %273 : vector<1x128xf32> to vector<4x128xf32>
    %275 = arith.subf %269, %274 : vector<4x128xf32>
    %276 = arith.mulf %275, %275 : vector<4x128xf32>
    %cst_64 = arith.constant dense<0.000000e+00> : vector<128xf32>
    %277 = vector.multi_reduction <add>, %276, %cst_64 [0] : vector<4x128xf32> to vector<128xf32>
    %278 = vector.shape_cast %277 : vector<128xf32> to vector<1x128xf32>
    %cst_65 = arith.constant 4.000000e+00 : f32
    %279 = vector.broadcast %cst_65 : f32 to vector<1x128xf32>
    %280 = arith.divf %278, %279 : vector<1x128xf32>
    %281 = vector.broadcast %273 : vector<1x128xf32> to vector<4x128xf32>
    %282 = arith.subf %269, %281 : vector<4x128xf32>
    %cst_66 = arith.constant 9.99999974E-6 : f32
    %283 = vector.broadcast %cst_66 : f32 to vector<1x128xf32>
    %284 = arith.addf %280, %283 : vector<1x128xf32>
    %285 = math.rsqrt %284 : vector<1x128xf32>
    %286 = vector.broadcast %285 : vector<1x128xf32> to vector<4x128xf32>
    %287 = arith.mulf %282, %286 : vector<4x128xf32>
    %288 = vector.broadcast %264 : vector<1x128xf32> to vector<4x128xf32>
    %289 = arith.mulf %287, %288 : vector<4x128xf32>
    %290 = vector.broadcast %265 : vector<1x128xf32> to vector<4x128xf32>
    %291 = arith.addf %289, %290 : vector<4x128xf32>
    %cst_67 = arith.constant 0.000000e+00 : f32
    %292 = vector.broadcast %cst_67 : f32 to vector<4x128xf32>
    %293 = arith.maximumf %291, %292 : vector<4x128xf32>
    %cst_68 = arith.constant dense<0.000000e+00> : vector<4x128xf32>
    %294 = tpu.matmul %293, %262, %cst_68 {dimension_numbers = #tpu.dot_dimension_numbers<[1], [0], [0], [1], [0, 0, 1, 1], [], []>} : vector<4x128xf32>, vector<128x128xf32>, vector<4x128xf32> -> vector<4x128xf32>
    %295 = vector.broadcast %266 : vector<1x128xf32> to vector<4x128xf32>
    %296 = arith.addf %294, %295 : vector<4x128xf32>
    %c0_69 = arith.constant 0 : index
    %c0_70 = arith.constant 0 : index
    %297 = vector.load %arg6[%c0_69, %c0_70] : memref<4x128xf32, #tpu.memory_space<vmem>>, vector<4x128xf32>
    tpu.vector_store %arg6[%c0_69, %c0_70], %296 {strides = array<i32>} : memref<4x128xf32, #tpu.memory_space<vmem>>, vector<4x128xf32>,
    return
  }
}

</mosaic_0001>

<bundles_post_ra>
// kernel: model_forward.1
= control target key start
LH: loop header
LB: loop body
LE: loop exit
PB: predicated region body
PF: predicated region fallthrough
CT: control target
= control target key end

     0   :  { %11 = vsyncpa [#allocation4], 0  ;;  %s5156_s0 = inlined_call_operand.vmem [shape: bf16[32,32], index: 0, kind: input, shape index: {}]   ;;  %s5157_s1 = inlined_call_operand.vmem [shape: bf16[32,768], index: 1, kind: input, shape index: {}]   ;;  %s5158_s2 = inlined_call_operand.hbm [shape: bf16[256,768], index: 2, kind: input, shape index: {}]   ;;  %s5159_s3 = inlined_call_operand.vmem [shape: f32[2,768], index: 3, kind: input, shape index: {}]   ;;  %s5160_s4 = inlined_call_operand.hbm [shape: f32[384,128], index: 4, kind: input, shape index: {}]   ;;  %s5161_s5 = inlined_call_operand.vmem [shape: f32[4,128], index: 5, kind: input, shape index: {}]   ;;  %s5162_s6 = inlined_call_operand.vmem [shape: f32[4,128], index: 6, kind: output, shape index: {}]  }
   0x1   :  { %12 = vsyncpa [#allocation6], 0  ;;  %s3493_s21 = smov [#allocation3]  }
   0x2   :  { %s22_s22 = sshll.u32 %s3493_s21, 4  ;;  %s23_s22 = int_to_ptr.vmem [resolvable:$true] %s22_s22 }
   0x3   :  { %s3457_s23 = scalar_lea.vmem %s23_s22, 12288  ;;  %p3462_p1 = scmp.lt.s32.totalorder %s23_s22, %s23_s22 }
   0x4   :  { %p3458_p0 = scmp.ne.s32.totalorder %s23_s22, %s3457_s23  ;;  %p3463_p2 = scmp.lt.s32.totalorder %s3457_s23, %s3457_s23 }
   0x6   :  { %p3464_p3 = por %p3463_p2, %p3462_p1 }
   0x8   :  { %p3465_p4 = pnand %p3464_p3, %p3458_p0 }
   0xa   :  { %3468 = shalt.err (!%p3465_p4)
}
   0xb   :  { %s3494_s24 = smov 384   ;;  %s3495_s25 = smov 24  }
   0xc   :  { %28 = dma.hbm_to_vmem [thread:$0]  %s5158_s2, 12288, %s23_s22, [#allocation4], %s3494_s24, %s3494_s24, %s3495_s25  }
   0xd   :  { %s3496_s28 = smov [#allocation5]  }
   0xe   :  { %s36_s29 = sshll.u32 %s3496_s28, 4  ;;  %s37_s29 = int_to_ptr.vmem [resolvable:$true] %s36_s29 }
   0xf   :  { %s3477_s30 = scalar_lea.vmem %s37_s29, 6144  ;;  %p3482_p6 = scmp.lt.s32.totalorder %s37_s29, %s37_s29 }
  0x10   :  { %p3478_p5 = scmp.ne.s32.totalorder %s37_s29, %s3477_s30  ;;  %p3483_p7 = scmp.lt.s32.totalorder %s3477_s30, %s3477_s30 }
  0x12   :  { %p3484_p8 = por %p3483_p7, %p3482_p6 }
  0x14   :  { %p3485_p9 = pnand %p3484_p8, %p3478_p5 }
  0x16   :  { %3488 = shalt.err (!%p3485_p9)
}
  0x17   :  { %s3497_s7 = smov 128   ;;  %s3498_s8 = smov 8  }
  0x18   :  { %42 = dma.hbm_to_vmem [thread:$0]  %s5160_s4, 6144, %s37_s29, [#allocation6], %s3497_s7, %s3497_s7, %s3498_s8  }
  0x19   :  { %3489 = dma.done.wait [#allocation4], 12288  }
  0x1a   :  { %3490 = vsyncadd [#allocation4], 4294955008 }
  0x1b   :  { %3491 = dma.done.wait [#allocation6], 6144  }
  0x1c   :  { %3492 = vsyncadd [#allocation6], 4294961152  ;;  %v5163_v0 = vmov 0   ;;  %v2941_v1 = vld [vmem:[%s5157_s1 + $0x34] ss:$24 sps:$4 sm:$0xff]   ;;  %vm170_vm0 = vcmask 261120  }
  0x1d   :  { %219 = vmatprep.mubr.bf16.mxu1 %v5163_v0  ;;  %209 = vmatprep.mubr.bf16.mxu0 %v5163_v0  ;;  %v2943_v2 = vld [vmem:[%s5157_s1 + $0x30] ss:$24 sps:$4 sm:$0xff]   ;;  %v2944_v3 = vld [vmem:[%s5157_s1 + $0x4] ss:$24 sps:$4 sm:$0xff]   ;;  %v2946_v4 = vld [vmem:[%s5157_s1] ss:$24 sps:$4 sm:$0xff]  }
  0x1e   :  { %189 = vmatprep.subr.bf16.mxu0 %v2941_v1  ;;  %2928 = vmatprep.subr.bf16.mxu1 %v2941_v1  ;;  %v2947_v5 = vld [vmem:[%s5156_s0 + $0x8] sm:$0xff]   ;;  %v2950_v6 = vld [vmem:[%s5157_s1 + $0x3c] ss:$24 sps:$4 sm:$0xff]   ;;  %v2948_v7 = vld [vmem:[%s5157_s1 + $0x38] ss:$24 sps:$4 sm:$0xff]   ;;  %vm3501_vm1 = vmmov 0  }
  0x1f   :  { %190 = vmatpush1.bf16.msra.mxu0 %v2943_v2  ;;  %2930 = vmatpush1.bf16.msra.mxu1 %v2943_v2  ;;  %v2951_v8 = vld [vmem:[%s5157_s1 + $0x40] ss:$24 sps:$4 sm:$0xff]   ;;  %v2953_v9 = vld [vmem:[%s5157_s1 + $0x44] ss:$24 sps:$4 sm:$0xff]   ;;  %v2960_v12 = vld [vmem:[%s5157_s1 + $0x14] ss:$24 sps:$4 sm:$0xff]  }
  0x20   :  { %191 = vmatprep.subr.bf16.mxu0 %v2944_v3  ;;  %2929 = vmatprep.subr.bf16.mxu1 %v2944_v3  ;;  %v2954_v10 = vld [vmem:[%s5156_s0] sm:$0xff]   ;;  %v2958_v14 = vld [vmem:[%s5157_s1 + $0x10] ss:$24 sps:$4 sm:$0xff]   ;;  %v3589_v15 = vld [vmem:[#allocation3 + $0x154] ss:$24 sps:$4 sm:$0xff]   ;;  %vm2575_vm2 = vcmask 1043456  }
  0x21   :  { %v2957_v11 = vld [vmem:[%s5157_s1 + $0xc] ss:$24 sps:$4 sm:$0xff]   ;;  %v2955_v13 = vld [vmem:[%s5157_s1 + $0x8] ss:$24 sps:$4 sm:$0xff]   ;;  %5373 = vst [vmem:[#allocation9_spill] sm:$0xff] %v3589_v15 }
  0x22   :  { %v3591_v16 = vld [vmem:[#allocation3 + $0x15c] ss:$24 sps:$4 sm:$0xff]   ;;  %v3595_v17 = vld [vmem:[#allocation3 + $0x150] ss:$24 sps:$4 sm:$0xff]   ;;  %v3603_v20 = vld [vmem:[#allocation3 + $0x12c] ss:$24 sps:$4 sm:$0xff]  }
  0x23   :  { %192 = vmatpush1.bf16.msra.mxu0 %v2946_v4  ;;  %2931 = vmatpush1.bf16.msra.mxu1 %v2946_v4  ;;  %v3597_v18 = vld [vmem:[#allocation3 + $0x158] ss:$24 sps:$4 sm:$0xff]   ;;  %v3599_v19 = vld [vmem:[#allocation3 + $0x124] ss:$24 sps:$4 sm:$0xff]   ;;  %v3611_v22 = vld [vmem:[#allocation3 + $0x128] ss:$24 sps:$4 sm:$0xff]  }
  0x24   :  { %242 = vmatprep.subr.bf16.mxu1 %v2950_v6  ;;  %295 = vmatprep.subr.bf16.mxu0 %v2953_v9  ;;  %v3607_v21 = vld [vmem:[#allocation3 + $0x120] ss:$24 sps:$4 sm:$0xff]   ;;  %v3615_v23 = vld [vmem:[#allocation3 + $0xf4] ss:$24 sps:$4 sm:$0xff]   ;;  %v3621_v25 = vld [vmem:[#allocation3 + $0xf0] ss:$24 sps:$4 sm:$0xff]  }
  0x25   :  { %v3617_v24 = vld [vmem:[#allocation3 + $0xfc] ss:$24 sps:$4 sm:$0xff]   ;;  %5374 = vst [vmem:[#allocation10_spill] sm:$0xff] %v3621_v25  ;;  %v3623_v26 = vld [vmem:[#allocation3 + $0xf8] ss:$24 sps:$4 sm:$0xff]  }
  0x26   :  { %2705 = vmatmul.mubr.msk.bf16.vlgmr.msra.gmra.mxu1 %vm170_vm0, %v2947_v5  ;;  %2704 = vmatmul.mubr.msk.bf16.vlgmr.msra.gmra.mxu0 %vm170_vm0, %v2954_v10  ;;  %v3627_v27 = vld [vmem:[#allocation3 + $0xc4] ss:$24 sps:$4 sm:$0xff]   ;;  %v3633_v29 = vld [vmem:[#allocation3 + $0xc0] ss:$24 sps:$4 sm:$0xff]   ;;  %v3643_v31 = vld [vmem:[#allocation3 + $0x94] ss:$24 sps:$4 sm:$0xff]  }
  0x27   :  { %243 = vmatpush1.bf16.msra.mxu1 %v2948_v7  ;;  %296 = vmatpush1.bf16.msra.mxu0 %v2951_v8  ;;  %v3631_v28 = vld [vmem:[#allocation3 + $0xcc] ss:$24 sps:$4 sm:$0xff]   ;;  %5375 = vst [vmem:[#allocation11_spill] sm:$0xff] %v3633_v29  ;;  %v3639_v30 = vld [vmem:[#allocation3 + $0xc8] ss:$24 sps:$4 sm:$0xff]  }
  0x28   :  { %244 = vmatprep.subr.bf16.mxu1 %v2957_v11  ;;  %297 = vmatprep.subr.bf16.mxu0 %v2960_v12  ;;  %v3645_v32 = vld [vmem:[#allocation3 + $0x9c] ss:$24 sps:$4 sm:$0xff]   ;;  %v3649_v33 = vld [vmem:[#allocation3 + $0x90] ss:$24 sps:$4 sm:$0xff]   ;;  %v3659_v36 = vld [vmem:[#allocation3 + $0x6c] ss:$24 sps:$4 sm:$0xff]  }
  0x29   :  { %262 = vmatprep.mubr.bf16.mxu1 %v5163_v0  ;;  %315 = vmatprep.mubr.bf16.mxu0 %v5163_v0  ;;  %5376 = vst [vmem:[#allocation12_spill] sm:$0xff] %v3649_v33  ;;  %v3651_v34 = vld [vmem:[#allocation3 + $0x98] ss:$24 sps:$4 sm:$0xff]   ;;  %v3655_v35 = vld [vmem:[#allocation3 + $0x64] ss:$24 sps:$4 sm:$0xff]  }
  0x2a   :  { %v3661_v37 = vld [vmem:[#allocation3 + $0x60] ss:$24 sps:$4 sm:$0xff]   ;;  %v3669_v39 = vld [vmem:[#allocation3 + $0x34] ss:$24 sps:$4 sm:$0xff]   ;;  %v3673_v41 = vld [vmem:[#allocation3 + $0x30] ss:$24 sps:$4 sm:$0xff]  }
  0x2b   :  { %245 = vmatpush1.bf16.msra.mxu1 %v2955_v13  ;;  %298 = vmatpush1.bf16.msra.mxu0 %v2958_v14  ;;  %5377 = vst [vmem:[#allocation13_spill] sm:$0xff] %v3661_v37  ;;  %v3665_v38 = vld [vmem:[#allocation3 + $0x68] ss:$24 sps:$4 sm:$0xff]   ;;  %v3671_v40 = vld [vmem:[#allocation3 + $0x3c] ss:$24 sps:$4 sm:$0xff]   ;;  %5378 = vst [vmem:[#allocation14_spill] sm:$0xff] %v3673_v41 }
  0x2c   :  { %975 = vmatprep.subr.bf16.mxu1 %v3589_v15  ;;  %1016 = vmatprep.subr.bf16.mxu0 %v3591_v16  ;;  %v3675_v42 = vld [vmem:[#allocation3 + $0x38] ss:$24 sps:$4 sm:$0xff]   ;;  %v3679_v43 = vld [vmem:[#allocation3 + $0x4] ss:$24 sps:$4 sm:$0xff]   ;;  %v3689_v46 = vld [vmem:[#allocation3 + $0x8] ss:$24 sps:$4 sm:$0xff]  }
  0x2d   :  { %v3683_v44 = vld [vmem:[#allocation3 + $0xc] ss:$24 sps:$4 sm:$0xff]   ;;  %v3685_v45 = vld [vmem:[#allocation3] ss:$24 sps:$4 sm:$0xff]   ;;  %v3695_v48 = vld [vmem:[#allocation3 + $0x2dc] ss:$24 sps:$4 sm:$0xff]  }
  0x2e   :  { %2706 = vmatmul.mubr.msk.bf16.vlgmr.msra.gmra.mxu1 %vm170_vm0, %v2954_v10  ;;  %2708 = vmatmul.mubr.msk.bf16.vlgmr.msra.gmra.mxu0 %vm170_vm0, %v2954_v10  ;;  %5379 = vst [vmem:[#allocation15_spill] sm:$0xff] %v3685_v45  ;;  %v3693_v47 = vld [vmem:[#allocation3 + $0x2d4] ss:$24 sps:$4 sm:$0xff]   ;;  %v3697_v49 = vld [vmem:[#allocation3 + $0x2d0] ss:$24 sps:$4 sm:$0xff]  }
  0x2f   :  { %976 = vmatpush1.bf16.msra.mxu1 %v3595_v17  ;;  %1017 = vmatpush1.bf16.msra.mxu0 %v3597_v18  ;;  %5380 = vst [vmem:[#allocation16_spill] sm:$0xff] %v3697_v49  ;;  %v3699_v50 = vld [vmem:[#allocation3 + $0x2d8] ss:$24 sps:$4 sm:$0xff]   ;;  %v3703_v51 = vld [vmem:[#allocation3 + $0x2a4] ss:$24 sps:$4 sm:$0xff]  }
  0x30   :  { %977 = vmatprep.subr.bf16.mxu1 %v3599_v19  ;;  %1018 = vmatprep.subr.bf16.mxu0 %v3603_v20  ;;  %5381 = vst [vmem:[#allocation17_spill] sm:$0xff] %v3699_v50  ;;  %v3707_v52 = vld [vmem:[#allocation3 + $0x2ac] ss:$24 sps:$4 sm:$0xff]   ;;  %v3709_v53 = vld [vmem:[#allocation3 + $0x2a0] ss:$24 sps:$4 sm:$0xff]  }
  0x31   :  { %272 = vmatprep.mubr.bf16.mxu1 %v5163_v0  ;;  %325 = vmatprep.mubr.bf16.mxu0 %v5163_v0  ;;  %5382 = vst [vmem:[#allocation18_spill] sm:$0xff] %v3707_v52  ;;  %5383 = vst [vmem:[#allocation19_spill] sm:$0xff] %v3709_v53  ;;  %v3713_v54 = vld [vmem:[#allocation3 + $0x2a8] ss:$24 sps:$4 sm:$0xff]   ;;  %v3717_v55 = vld [vmem:[#allocation3 + $0x274] ss:$24 sps:$4 sm:$0xff]  }
  0x32   :  { %5384 = vst [vmem:[#allocation20_spill] sm:$0xff] %v3713_v54  ;;  %v3719_v56 = vld [vmem:[#allocation3 + $0x27c] ss:$24 sps:$4 sm:$0xff]   ;;  %v3721_v57 = vld [vmem:[#allocation3 + $0x270] ss:$24 sps:$4 sm:$0xff]  }
  0x33   :  { %978 = vmatpush1.bf16.msra.mxu1 %v3607_v21  ;;  %1019 = vmatpush1.bf16.msra.mxu0 %v3611_v22  ;;  %5385 = vst [vmem:[#allocation21_spill] sm:$0xff] %v3719_v56  ;;  %5386 = vst [vmem:[#allocation22_spill] sm:$0xff] %v3721_v57  ;;  %v3725_v58 = vld [vmem:[#allocation3 + $0x278] ss:$24 sps:$4 sm:$0xff]   ;;  %v3729_v59 = vld [vmem:[#allocation3 + $0x244] ss:$24 sps:$4 sm:$0xff]  }
  0x34   :  { %979 = vmatprep.subr.bf16.mxu1 %v3615_v23  ;;  %1020 = vmatprep.subr.bf16.mxu0 %v3617_v24  ;;  %5387 = vst [vmem:[#allocation23_spill] sm:$0xff] %v3725_v58  ;;  %v3731_v60 = vld [vmem:[#allocation3 + $0x24c] ss:$24 sps:$4 sm:$0xff]   ;;  %v3733_v61 = vld [vmem:[#allocation3 + $0x240] ss:$24 sps:$4 sm:$0xff]  }
  0x35   :  { %5388 = vst [vmem:[#allocation24_spill] sm:$0xff] %v3731_v60  ;;  %5389 = vst [vmem:[#allocation25_spill] sm:$0xff] %v3733_v61  ;;  %v3737_v62 = vld [vmem:[#allocation3 + $0x248] ss:$24 sps:$4 sm:$0xff]   ;;  %v3741_v63 = vld [vmem:[#allocation3 + $0x214] ss:$24 sps:$4 sm:$0xff]  }
  0x36   :  { %2707 = vmatmul.mubr.msk.bf16.gmra.mxu1 %vm170_vm0, %v2947_v5  ;;  %2709 = vmatmul.mubr.msk.bf16.gmra.mxu0 %vm170_vm0, %v2947_v5  ;;  %5390 = vst [vmem:[#allocation26_spill] sm:$0xff] %v3737_v62  ;;  %v3743_v1 = vld [vmem:[#allocation3 + $0x21c] ss:$24 sps:$4 sm:$0xff]   ;;  %v3745_v2 = vld [vmem:[#allocation3 + $0x210] ss:$24 sps:$4 sm:$0xff]  }
  0x37   :  { %980 = vmatpush1.bf16.msra.mxu1 %v3621_v25  ;;  %1021 = vmatpush1.bf16.msra.mxu0 %v3623_v26  ;;  %5391 = vst [vmem:[#allocation27_spill] sm:$0xff] %v3743_v1  ;;  %v3749_v3 = vld [vmem:[#allocation3 + $0x218] ss:$24 sps:$4 sm:$0xff]   ;;  %v3753_v4 = vld [vmem:[#allocation3 + $0x1e4] ss:$24 sps:$4 sm:$0xff]  }
  0x38   :  { %981 = vmatprep.subr.bf16.mxu1 %v3627_v27  ;;  %1022 = vmatprep.subr.bf16.mxu0 %v3631_v28  ;;  %5392 = vst [vmem:[#allocation28_spill] sm:$0xff] %v3749_v3  ;;  %v3755_v5 = vld [vmem:[#allocation3 + $0x1ec] ss:$24 sps:$4 sm:$0xff]   ;;  %v3757_v6 = vld [vmem:[#allocation3 + $0x1e0] ss:$24 sps:$4 sm:$0xff]  }
  0x39   :  { %1007 = vmatprep.mubr.bf16.mxu1 %v5163_v0  ;;  %1048 = vmatprep.mubr.bf16.mxu0 %v5163_v0  ;;  %5393 = vst [vmem:[#allocation29_spill] sm:$0xff] %v3755_v5  ;;  %v3761_v7 = vld [vmem:[#allocation3 + $0x1e8] ss:$24 sps:$4 sm:$0xff]   ;;  %v3765_v8 = vld [vmem:[#allocation3 + $0x1b4] ss:$24 sps:$4 sm:$0xff]  }
  0x3a   :  { %5394 = vst [vmem:[#allocation30_spill] sm:$0xff] %v3761_v7  ;;  %v3767_v9 = vld [vmem:[#allocation3 + $0x1bc] ss:$24 sps:$4 sm:$0xff]   ;;  %v3769_v10 = vld [vmem:[#allocation3 + $0x1b0] ss:$24 sps:$4 sm:$0xff]  }
  0x3b   :  { %982 = vmatpush1.bf16.msra.mxu1 %v3633_v29  ;;  %1023 = vmatpush1.bf16.msra.mxu0 %v3639_v30  ;;  %5395 = vst [vmem:[#allocation31_spill] sm:$0xff] %v3767_v9  ;;  %v3773_v11 = vld [vmem:[#allocation3 + $0x1b8] ss:$24 sps:$4 sm:$0xff]   ;;  %v3777_v12 = vld [vmem:[#allocation3 + $0x184] ss:$24 sps:$4 sm:$0xff]  }
  0x3c   :  { %983 = vmatprep.subr.bf16.mxu1 %v3643_v31  ;;  %1024 = vmatprep.subr.bf16.mxu0 %v3645_v32  ;;  %5396 = vst [vmem:[#allocation32_spill] sm:$0xff] %v3773_v11  ;;  %v3779_v13 = vld [vmem:[#allocation3 + $0x18c] ss:$24 sps:$4 sm:$0xff]   ;;  %v3783_v14 = vld [vmem:[#allocation3 + $0x180] ss:$24 sps:$4 sm:$0xff]  }
  0x3d   :  { %5397 = vst [vmem:[#allocation33_spill] sm:$0xff] %v3779_v13  ;;  %v3785_v0 = vld [vmem:[#allocation3 + $0x188] ss:$24 sps:$4 sm:$0xff]  }
  0x3e   :  { %5398 = vst [vmem:[#allocation34_spill] sm:$0xff] %v3785_v0 }
  0x3f   :  { %984 = vmatpush1.bf16.msra.mxu1 %v3649_v33  ;;  %1025 = vmatpush1.bf16.msra.mxu0 %v3651_v34 }
  0x40   :  { %985 = vmatprep.subr.bf16.mxu1 %v3655_v35  ;;  %1026 = vmatprep.subr.bf16.mxu0 %v3659_v36 }
  0x43   :  { %986 = vmatpush1.bf16.msra.mxu1 %v3661_v37  ;;  %1027 = vmatpush1.bf16.msra.mxu0 %v3665_v38 }
  0x44   :  { %987 = vmatprep.subr.bf16.mxu1 %v3669_v39  ;;  %1028 = vmatprep.subr.bf16.mxu0 %v3671_v40 }
  0x47   :  { %988 = vmatpush1.bf16.msra.mxu1 %v3673_v41  ;;  %1029 = vmatpush1.bf16.msra.mxu0 %v3675_v42 }
  0x48   :  { %989 = vmatprep.subr.bf16.mxu1 %v3679_v43  ;;  %1030 = vmatprep.subr.bf16.mxu0 %v3683_v44 }
  0x4b   :  { %990 = vmatpush1.bf16.msra.mxu1 %v3685_v45  ;;  %1031 = vmatpush1.bf16.msra.mxu0 %v3689_v46 }
  0x4c   :  { %991 = vmatprep.subr.bf16.mxu1 %v3693_v47  ;;  %1032 = vmatprep.subr.bf16.mxu0 %v3695_v48 }
  0x4f   :  { %992 = vmatpush2.bf16.msra.mxu1 %v3697_v49  ;;  %1033 = vmatpush2.bf16.msra.mxu0 %v3699_v50 }
  0x50   :  { %993 = vmatprep.subr.bf16.mxu1 %v3703_v51  ;;  %1034 = vmatprep.subr.bf16.mxu0 %v3707_v52 }
  0x53   :  { %994 = vmatpush2.bf16.msra.mxu1 %v3709_v53  ;;  %1035 = vmatpush2.bf16.msra.mxu0 %v3713_v54 }
  0x54   :  { %995 = vmatprep.subr.bf16.mxu1 %v3717_v55  ;;  %1036 = vmatprep.subr.bf16.mxu0 %v3719_v56 }
  0x57   :  { %996 = vmatpush2.bf16.msra.mxu1 %v3721_v57  ;;  %1037 = vmatpush2.bf16.msra.mxu0 %v3725_v58 }
  0x58   :  { %997 = vmatprep.subr.bf16.mxu1 %v3729_v59  ;;  %1038 = vmatprep.subr.bf16.mxu0 %v3731_v60 }
  0x5b   :  { %998 = vmatpush2.bf16.msra.mxu1 %v3733_v61  ;;  %1039 = vmatpush2.bf16.msra.mxu0 %v3737_v62 }
  0x5c   :  { %999 = vmatprep.subr.bf16.mxu1 %v3741_v63  ;;  %1040 = vmatprep.subr.bf16.mxu0 %v3743_v1 }
  0x5f   :  { %1000 = vmatpush2.bf16.msra.mxu1 %v3745_v2  ;;  %1041 = vmatpush2.bf16.msra.mxu0 %v3749_v3  ;;  %v3814_v3 = vld [vmem:[#allocation3 + $0xd4] ss:$24 sps:$4 sm:$0xff]  }
  0x60   :  { %1001 = vmatprep.subr.bf16.mxu1 %v3753_v4  ;;  %1042 = vmatprep.subr.bf16.mxu0 %v3755_v5  ;;  %v3796_v5 = vld [vmem:[#allocation3 + $0x134] ss:$24 sps:$4 sm:$0xff]   ;;  %5401 = vst [vmem:[#allocation36_spill] sm:$0xff] %v3814_v3 }
  0x61   :  { %5399 = vst [vmem:[#allocation35_spill] sm:$0xff] %v3796_v5 }
  0x63   :  { %1002 = vmatpush2.bf16.msra.mxu1 %v3757_v6  ;;  %1043 = vmatpush2.bf16.msra.mxu0 %v3761_v7  ;;  %v3789_v7 = vld [vmem:[#allocation3 + $0x164] ss:$24 sps:$4 sm:$0xff]  }
  0x64   :  { %1003 = vmatprep.subr.bf16.mxu1 %v3765_v8  ;;  %1044 = vmatprep.subr.bf16.mxu0 %v3767_v9  ;;  %v3793_v9 = vld [vmem:[#allocation3 + $0x160] ss:$24 sps:$4 sm:$0xff]  }
  0x67   :  { %1004 = vmatpush2.bf16.msra.mxu1 %v3769_v10  ;;  %1045 = vmatpush2.bf16.msra.mxu0 %v3773_v11  ;;  %v5400_v11 = vmov 0  }
  0x68   :  { %1005 = vmatprep.subr.bf16.mxu1 %v3777_v12  ;;  %1046 = vmatprep.subr.bf16.mxu0 %v3779_v13  ;;  %v3802_v13 = vld [vmem:[#allocation3 + $0x130] ss:$24 sps:$4 sm:$0xff]  }
  0x6b   :  { %1006 = vmatpush2.bf16.msra.mxu1 %v3783_v14  ;;  %1047 = vmatpush2.bf16.msra.mxu0 %v3785_v0  ;;  %v3806_v0 = vld [vmem:[#allocation3 + $0x104] ss:$24 sps:$4 sm:$0xff]  }
  0x6c   :  { %1057 = vmatprep.subr.bf16.mxu1 %v3789_v7  ;;  %1148 = vmatprep.subr.bf16.mxu0 %v3589_v15  ;;  %v3811_v15 = vld [vmem:[#allocation3 + $0x100] ss:$24 sps:$4 sm:$0xff]  }
  0x6e   :  { %1008 = vmatmul.mubr.bf16.vlgmr.msra.gmra.mxu1 %v5400_v11  ;;  %1049 = vmatmul.mubr.bf16.vlgmr.msra.gmra.mxu0 %v5400_v11 }
  0x6f   :  { %1058 = vmatpush1.bf16.msra.mxu1 %v3793_v9  ;;  %1089 = vmatprep.mubr.bf16.mxu1 %v5400_v11 }
  0x70   :  { %1059 = vmatprep.subr.bf16.mxu1 %v3796_v5  ;;  %1149 = vmatpush1.bf16.msra.mxu0 %v3595_v17  ;;  %v3819_v5 = vld [vmem:[#allocation3 + $0xd0] ss:$24 sps:$4 sm:$0xff]   ;;  %v3822_v17 = vld [vmem:[#allocation3 + $0xa4] ss:$24 sps:$4 sm:$0xff]  }
  0x71   :  { %1150 = vmatprep.subr.bf16.mxu0 %v3599_v19  ;;  %5402 = vst [vmem:[#allocation37_spill] sm:$0xff] %v3822_v17  ;;  %v3827_v19 = vld [vmem:[#allocation3 + $0xa0] ss:$24 sps:$4 sm:$0xff]  }
  0x73   :  { %1060 = vmatpush1.bf16.msra.mxu1 %v3802_v13 }
  0x74   :  { %1061 = vmatprep.subr.bf16.mxu1 %v3806_v0  ;;  %1151 = vmatpush1.bf16.msra.mxu0 %v3607_v21  ;;  %v3830_v21 = vld [vmem:[#allocation3 + $0x74] ss:$24 sps:$4 sm:$0xff]  }
  0x75   :  { %1152 = vmatprep.subr.bf16.mxu0 %v3615_v23  ;;  %5403 = vst [vmem:[#allocation38_spill] sm:$0xff] %v3830_v21 }
  0x77   :  { %1062 = vmatpush1.bf16.msra.mxu1 %v3811_v15 }
  0x78   :  { %1063 = vmatprep.subr.bf16.mxu1 %v3814_v3  ;;  %1153 = vmatpush1.bf16.msra.mxu0 %v3621_v25  ;;  %v3835_v3 = vld [vmem:[#allocation3 + $0x70] ss:$24 sps:$4 sm:$0xff]   ;;  %v3838_v25 = vld [vmem:[#allocation3 + $0x44] ss:$24 sps:$4 sm:$0xff]  }
  0x79   :  { %1154 = vmatprep.subr.bf16.mxu0 %v3627_v27  ;;  %5404 = vst [vmem:[#allocation39_spill] sm:$0xff] %v3838_v25 }
  0x7b   :  { %1064 = vmatpush1.bf16.msra.mxu1 %v3819_v5 }
  0x7c   :  { %1065 = vmatprep.subr.bf16.mxu1 %v3822_v17  ;;  %1155 = vmatpush1.bf16.msra.mxu0 %v3633_v29  ;;  %v3843_v17 = vld [vmem:[#allocation3 + $0x40] ss:$24 sps:$4 sm:$0xff]   ;;  %v3846_v29 = vld [vmem:[#allocation3 + $0x14] ss:$24 sps:$4 sm:$0xff]  }
  0x7d   :  { %1156 = vmatprep.subr.bf16.mxu0 %v3643_v31  ;;  %5405 = vst [vmem:[#allocation40_spill] sm:$0xff] %v3846_v29 }
  0x7f   :  { %1066 = vmatpush1.bf16.msra.mxu1 %v3827_v19 }
  0x80   :  { %1067 = vmatprep.subr.bf16.mxu1 %v3830_v21  ;;  %1157 = vmatpush1.bf16.msra.mxu0 %v3649_v33  ;;  %v3851_v21 = vld [vmem:[#allocation3 + $0x10] ss:$24 sps:$4 sm:$0xff]   ;;  %v3854_v33 = vld [vmem:[#allocation3 + $0x2e4] ss:$24 sps:$4 sm:$0xff]  }
  0x81   :  { %1158 = vmatprep.subr.bf16.mxu0 %v3655_v35  ;;  %5406 = vst [vmem:[#allocation41_spill] sm:$0xff] %v3854_v33 }
  0x83   :  { %1068 = vmatpush1.bf16.msra.mxu1 %v3835_v3 }
  0x84   :  { %1069 = vmatprep.subr.bf16.mxu1 %v3838_v25  ;;  %1159 = vmatpush1.bf16.msra.mxu0 %v3661_v37  ;;  %v3859_v25 = vld [vmem:[#allocation3 + $0x2e0] ss:$24 sps:$4 sm:$0xff]   ;;  %v3862_v37 = vld [vmem:[#allocation3 + $0x2b4] ss:$24 sps:$4 sm:$0xff]  }
  0x85   :  { %1160 = vmatprep.subr.bf16.mxu0 %v3669_v39  ;;  %5407 = vst [vmem:[#allocation42_spill] sm:$0xff] %v3862_v37 }
  0x87   :  { %1070 = vmatpush1.bf16.msra.mxu1 %v3843_v17 }
  0x88   :  { %1071 = vmatprep.subr.bf16.mxu1 %v3846_v29  ;;  %1161 = vmatpush1.bf16.msra.mxu0 %v3673_v41  ;;  %v3867_v29 = vld [vmem:[#allocation3 + $0x2b0] ss:$24 sps:$4 sm:$0xff]   ;;  %v3870_v41 = vld [vmem:[#allocation3 + $0x284] ss:$24 sps:$4 sm:$0xff]  }
  0x89   :  { %1162 = vmatprep.subr.bf16.mxu0 %v3679_v43  ;;  %5408 = vst [vmem:[#allocation43_spill] sm:$0xff] %v3870_v41 }
  0x8b   :  { %1072 = vmatpush1.bf16.msra.mxu1 %v3851_v21 }
  0x8c   :  { %1073 = vmatprep.subr.bf16.mxu1 %v3854_v33  ;;  %1163 = vmatpush1.bf16.msra.mxu0 %v3685_v45  ;;  %v3875_v33 = vld [vmem:[#allocation3 + $0x280] ss:$24 sps:$4 sm:$0xff]   ;;  %v3878_v45 = vld [vmem:[#allocation3 + $0x254] ss:$24 sps:$4 sm:$0xff]  }
  0x8d   :  { %1164 = vmatprep.subr.bf16.mxu0 %v3693_v47  ;;  %5409 = vst [vmem:[#allocation44_spill] sm:$0xff] %v3878_v45 }
  0x8f   :  { %1074 = vmatpush2.bf16.msra.mxu1 %v3859_v25 }
  0x90   :  { %1075 = vmatprep.subr.bf16.mxu1 %v3862_v37  ;;  %1165 = vmatpush2.bf16.msra.mxu0 %v3697_v49  ;;  %v3883_v37 = vld [vmem:[#allocation3 + $0x250] ss:$24 sps:$4 sm:$0xff]   ;;  %v3886_v49 = vld [vmem:[#allocation3 + $0x224] ss:$24 sps:$4 sm:$0xff]  }
  0x91   :  { %1166 = vmatprep.subr.bf16.mxu0 %v3703_v51  ;;  %5410 = vst [vmem:[#allocation45_spill] sm:$0xff] %v3886_v49 }
  0x93   :  { %1076 = vmatpush2.bf16.msra.mxu1 %v3867_v29 }
  0x94   :  { %1077 = vmatprep.subr.bf16.mxu1 %v3870_v41  ;;  %1167 = vmatpush2.bf16.msra.mxu0 %v3709_v53  ;;  %v3891_v41 = vld [vmem:[#allocation3 + $0x220] ss:$24 sps:$4 sm:$0xff]   ;;  %v3894_v53 = vld [vmem:[#allocation3 + $0x1f4] ss:$24 sps:$4 sm:$0xff]  }
  0x95   :  { %1168 = vmatprep.subr.bf16.mxu0 %v3717_v55  ;;  %5411 = vst [vmem:[#allocation46_spill] sm:$0xff] %v3894_v53 }
  0x97   :  { %1078 = vmatpush2.bf16.msra.mxu1 %v3875_v33 }
  0x98   :  { %1079 = vmatprep.subr.bf16.mxu1 %v3878_v45  ;;  %1169 = vmatpush2.bf16.msra.mxu0 %v3721_v57  ;;  %v3899_v45 = vld [vmem:[#allocation3 + $0x1f0] ss:$24 sps:$4 sm:$0xff]   ;;  %v3902_v57 = vld [vmem:[#allocation3 + $0x1c4] ss:$24 sps:$4 sm:$0xff]  }
  0x99   :  { %1170 = vmatprep.subr.bf16.mxu0 %v3729_v59 }
  0x9b   :  { %1080 = vmatpush2.bf16.msra.mxu1 %v3883_v37 }
  0x9c   :  { %1081 = vmatprep.subr.bf16.mxu1 %v3886_v49  ;;  %1171 = vmatpush2.bf16.msra.mxu0 %v3733_v61  ;;  %v3907_v49 = vld [vmem:[#allocation3 + $0x1c0] ss:$24 sps:$4 sm:$0xff]   ;;  %v3910_v61 = vld [vmem:[#allocation3 + $0x194] ss:$24 sps:$4 sm:$0xff]  }
  0x9d   :  { %1172 = vmatprep.subr.bf16.mxu0 %v3741_v63 }
  0x9f   :  { %1082 = vmatpush2.bf16.msra.mxu1 %v3891_v41 }
  0xa0   :  { %1083 = vmatprep.subr.bf16.mxu1 %v3894_v53  ;;  %1173 = vmatpush2.bf16.msra.mxu0 %v3745_v2  ;;  %v3915_v53 = vld [vmem:[#allocation3 + $0x190] ss:$24 sps:$4 sm:$0xff]  }
  0xa1   :  { %1174 = vmatprep.subr.bf16.mxu0 %v3753_v4 }
  0xa3   :  { %1084 = vmatpush2.bf16.msra.mxu1 %v3899_v45 }
  0xa4   :  { %1085 = vmatprep.subr.bf16.mxu1 %v3902_v57  ;;  %1175 = vmatpush2.bf16.msra.mxu0 %v3757_v6 }
  0xa5   :  { %1176 = vmatprep.subr.bf16.mxu0 %v3765_v8 }
  0xa7   :  { %1086 = vmatpush2.bf16.msra.mxu1 %v3907_v49 }
  0xa8   :  { %1087 = vmatprep.subr.bf16.mxu1 %v3910_v61  ;;  %1177 = vmatpush2.bf16.msra.mxu0 %v3769_v10 }
  0xa9   :  { %1178 = vmatprep.subr.bf16.mxu0 %v3777_v12 }
  0xab   :  { %1088 = vmatpush2.bf16.msra.mxu1 %v3915_v53 }
  0xac   :  { %1189 = vmatprep.subr.bf16.mxu1 %v3591_v16  ;;  %1179 = vmatpush2.bf16.msra.mxu0 %v3783_v14  ;;  %v70_v16 = vlaneseq }
  0xad   :  { %1230 = vmatprep.subr.bf16.mxu0 %v3789_v7 }
  0xae   :  { %1090 = vmatmul.mubr.bf16.vlgmr.msra.gmra.mxu1 %v5400_v11 }
  0xaf   :  { %1190 = vmatpush1.bf16.msra.mxu1 %v3597_v18  ;;  %v3947_v18 = vshrl.u32 %v70_v16, 7 }
  0xb0   :  { %1191 = vmatprep.subr.bf16.mxu1 %v3603_v20 }
  0xb1   :  { %v5216_v20 = vsub.s32 0, %v3947_v18  ;;  %v5221_v11 = vsub.s32 2, %v3947_v18 }
  0xb3   :  { %1192 = vmatpush1.bf16.msra.mxu1 %v3611_v22  ;;  %v5412_v22 = vld [vmem:[#allocation28_spill] sm:$0xff] }
  0xb4   :  { %1193 = vmatprep.subr.bf16.mxu1 %v3617_v24  ;;  %v68_v24 = vld [vmem:[%s5159_s3] ss:$2 sm:$0x3f] }
  0xb7   :  { %1194 = vmatpush1.bf16.msra.mxu1 %v3623_v26  ;;  %v5413_v26 = vld [vmem:[#allocation29_spill] sm:$0xff] }
  0xb8   :  { %1195 = vmatprep.subr.bf16.mxu1 %v3631_v28  ;;  %v5217_v28 = vsub.s32 1, %v3947_v18 }
  0xbb   :  { %1196 = vmatpush1.bf16.msra.mxu1 %v3639_v30  ;;  %v73_v30 = vrot.slane %v68_v24, %v5216_v20  ;;  %v5417_v20 = vld [vmem:[#allocation33_spill] sm:$0xff] }
  0xbc   :  { %1197 = vmatprep.subr.bf16.mxu1 %v3645_v32  ;;  %v5414_v32 = vld [vmem:[#allocation30_spill] sm:$0xff] }
  0xbf   :  { %1198 = vmatpush1.bf16.msra.mxu1 %v3651_v34  ;;  %v5415_v34 = vld [vmem:[#allocation31_spill] sm:$0xff] }
  0xc0   :  { %1199 = vmatprep.subr.bf16.mxu1 %v3659_v36  ;;  %v77_v36 = vrot.slane %v68_v24, %v5217_v28 }
  0xc3   :  { %1200 = vmatpush1.bf16.msra.mxu1 %v3665_v38 }
  0xc4   :  { %1201 = vmatprep.subr.bf16.mxu1 %v3671_v40 }
  0xc7   :  { %1202 = vmatpush1.bf16.msra.mxu1 %v3675_v42 }
  0xc8   :  { %1203 = vmatprep.subr.bf16.mxu1 %v3683_v44 }
  0xcb   :  { %1204 = vmatpush1.bf16.msra.mxu1 %v3689_v46 }
  0xcc   :  { %1205 = vmatprep.subr.bf16.mxu1 %v3695_v48 }
  0xcf   :  { %1206 = vmatpush2.bf16.msra.mxu1 %v3699_v50 }
  0xd0   :  { %1207 = vmatprep.subr.bf16.mxu1 %v3707_v52 }
  0xd3   :  { %1208 = vmatpush2.bf16.msra.mxu1 %v3713_v54 }
  0xd4   :  { %1209 = vmatprep.subr.bf16.mxu1 %v3719_v56  ;;  %v5418_v56 = vsub.s32 4, %v3947_v18 }
  0xd7   :  { %1210 = vmatpush2.bf16.msra.mxu1 %v3725_v58 }
  0xd8   :  { %1211 = vmatprep.subr.bf16.mxu1 %v3731_v60  ;;  %v5421_v60 = vsub.s32 3, %v3947_v18 }
  0xdb   :  { %1212 = vmatpush2.bf16.msra.mxu1 %v3737_v62 }
  0xdc   :  { %1213 = vmatprep.subr.bf16.mxu1 %v3743_v1 }
  0xdf   :  { %1214 = vmatpush2.bf16.msra.mxu1 %v5412_v22  ;;  %v5416_v22 = vld [vmem:[#allocation32_spill] sm:$0xff] }
  0xe0   :  { %1215 = vmatprep.subr.bf16.mxu1 %v5413_v26  ;;  %v81_v26 = vrot.slane %v68_v24, %v5221_v11  ;;  %v5422_v11 = vsub.s32 5, %v3947_v18 }
  0xe3   :  { %1216 = vmatpush2.bf16.msra.mxu1 %v5414_v32 }
  0xe4   :  { %1217 = vmatprep.subr.bf16.mxu1 %v5415_v34 }
  0xe6   :  { %v221_v38 = vpop.f32.mrf.mxu1  ;;  %v211_v40 = vpop.f32.mrf.mxu0 }
  0xe7   :  { %v222_v42 = vadd.f32 %v221_v38, %v73_v30  ;;  %v212_v16 = vadd.f32 %v211_v40, %v73_v30  ;;  %1218 = vmatpush2.bf16.msra.mxu1 %v5416_v22 }
  0xe8   :  { %v223_v1 = vpop.f32.mrf.mxu1  ;;  %v213_v62 = vpop.f32.mrf.mxu0  ;;  %1219 = vmatprep.subr.bf16.mxu1 %v5417_v20  ;;  %v89_v20 = vrot.slane %v68_v24, %v5418_v56 }
  0xe9   :  { %348 = vst [vmem:[#allocation2 + $0x38] sm:$0xff] %v222_v42  ;;  %v224_v32 = vadd.f32 %v223_v1, %v77_v36  ;;  %336 = vst [vmem:[#allocation2 + $0xb0] sm:$0xff] %v212_v16  ;;  %v214_v28 = vadd.f32 %v213_v62, %v77_v36  ;;  %v5419_v42 = vld [vmem:[#allocation34_spill] sm:$0xff]  ;;  %v5420_v16 = vld [vmem:[#allocation9_spill] sm:$0xff] }
  0xea   :  { %v225_v38 = vpop.f32.mrf.mxu1  ;;  %v215_v58 = vpop.f32.mrf.mxu0 }
  0xeb   :  { %349 = vst [vmem:[#allocation2 + $0x50] sm:$0xff] %v224_v32  ;;  %v226_v40 = vadd.f32 %v225_v38, %v73_v30  ;;  %337 = vst [vmem:[#allocation2] sm:$0xff] %v214_v28  ;;  %v216_v22 = vadd.f32 %v215_v58, %v73_v30  ;;  %1220 = vmatpush2.bf16.msra.mxu1 %v5419_v42  ;;  %v85_v32 = vrot.slane %v68_v24, %v5421_v60 }
  0xec   :  { %v227_v1 = vpop.f32.mrf.mxu1  ;;  %v217_v34 = vpop.f32.mrf.mxu0  ;;  %1351 = vmatprep.subr.bf16.mxu1 %v5420_v16  ;;  %v93_v28 = vrot.slane %v68_v24, %v5422_v11 }
  0xed   :  { %354 = vst [vmem:[#allocation2 + $0x30] sm:$0xff] %v226_v40  ;;  %v228_v62 = vadd.f32 %v227_v1, %v77_v36  ;;  %342 = vst [vmem:[#allocation2 + $0x40] sm:$0xff] %v216_v22  ;;  %v218_v38 = vadd.f32 %v217_v34, %v77_v36 }
  0xee   :  { %v264_v58 = vpop.f32.mrf.mxu1  ;;  %v317_v30 = vpop.f32.mrf.mxu0 }
  0xef   :  { %355 = vst [vmem:[#allocation2 + $0x58] sm:$0xff] %v228_v62  ;;  %v265_v56 = vadd.f32 %v264_v58, %v81_v26  ;;  %343 = vst [vmem:[#allocation2 + $0x78] sm:$0xff] %v218_v38  ;;  %v318_v42 = vadd.f32 %v317_v30, %v89_v20 }
  0xf0   :  { %v266_v54 = vpop.f32.mrf.mxu1  ;;  %v319_v52 = vpop.f32.mrf.mxu0 }
  0xf1   :  { %338 = vst [vmem:[#allocation2 + $0x10] sm:$0xff] %v265_v56  ;;  %v267_v16 = vadd.f32 %v266_v54, %v85_v32  ;;  %340 = vst [vmem:[#allocation2 + $0x60] sm:$0xff] %v318_v42  ;;  %v320_v40 = vadd.f32 %v319_v52, %v93_v28 }
  0xf2   :  { %v268_v1 = vpop.f32.mrf.mxu1  ;;  %v321_v50 = vpop.f32.mrf.mxu0 }
  0xf3   :  { %339 = vst [vmem:[#allocation2 + $0x48] sm:$0xff] %v267_v16  ;;  %v269_v60 = vadd.f32 %v268_v1, %v81_v26  ;;  %341 = vst [vmem:[#allocation2 + $0x28] sm:$0xff] %v320_v40  ;;  %v322_v22 = vadd.f32 %v321_v50, %v89_v20 }
  0xf4   :  { %v270_v34 = vpop.f32.mrf.mxu1  ;;  %v323_v24 = vpop.f32.mrf.mxu0 }
  0xf5   :  { %344 = vst [vmem:[#allocation2 + $0x88] sm:$0xff] %v269_v60  ;;  %v271_v36 = vadd.f32 %v270_v34, %v85_v32  ;;  %346 = vst [vmem:[#allocation2 + $0x18] sm:$0xff] %v322_v22  ;;  %v324_v11 = vadd.f32 %v323_v24, %v93_v28 }
  0xf6   :  { %v274_v62 = vpop.f32.mrf.mxu1  ;;  %v327_v38 = vpop.f32.mrf.mxu0 }
  0xf7   :  { %345 = vst [vmem:[#allocation2 + $0x90] sm:$0xff] %v271_v36  ;;  %347 = vst [vmem:[#allocation2 + $0x98] sm:$0xff] %v324_v11  ;;  %v275_v58 = vadd.f32 %v274_v62, %v81_v26  ;;  %v328_v54 = vadd.f32 %v327_v38, %v89_v20 }
  0xf8   :  { %v276_v42 = vpop.f32.mrf.mxu1  ;;  %v329_v52 = vpop.f32.mrf.mxu0 }
  0xf9   :  { %350 = vst [vmem:[#allocation2 + $0x70] sm:$0xff] %v275_v58  ;;  %v277_v30 = vadd.f32 %v276_v42, %v85_v32  ;;  %352 = vst [vmem:[#allocation2 + $0xa8] sm:$0xff] %v328_v54  ;;  %v330_v56 = vadd.f32 %v329_v52, %v93_v28 }
  0xfa   :  { %v278_v16 = vpop.f32.mrf.mxu1  ;;  %v331_v50 = vpop.f32.mrf.mxu0 }
  0xfb   :  { %351 = vst [vmem:[#allocation2 + $0xa0] sm:$0xff] %v277_v30  ;;  %v279_v40 = vadd.f32 %v278_v16, %v81_v26  ;;  %353 = vst [vmem:[#allocation2 + $0x68] sm:$0xff] %v330_v56  ;;  %v332_v1 = vadd.f32 %v331_v50, %v89_v20  ;;  %v2710_v20 = vld [vmem:[%s5159_s3 + $0x1] ss:$2 sm:$0x3f]  ;;  %v5423_v26 = vsub.s32 0, %v3947_v18 }
  0xfc   :  { %v280_v60 = vpop.f32.mrf.mxu1  ;;  %v333_v22 = vpop.f32.mrf.mxu0  ;;  %v458_v50 = vld [vmem:[#allocation2 + $0xb0] sm:$0xf] }
  0xfd   :  { %356 = vst [vmem:[#allocation2 + $0x80] sm:$0xff] %v279_v40  ;;  %v281_v34 = vadd.f32 %v280_v60, %v85_v32  ;;  %358 = vst [vmem:[#allocation2 + $0x20] sm:$0xff] %v332_v1  ;;  %v334_v24 = vadd.f32 %v333_v22, %v93_v28  ;;  %v3985_v30 = vrot.slane %v2710_v20, %v5423_v26  ;;  %v5425_v32 = vsub.s32 1, %v3947_v18  ;;  %v459_v1 = vld [vmem:[#allocation2] sm:$0xf] }
  0xff   :  { %357 = vst [vmem:[#allocation2 + $0xb8] sm:$0xff] %v281_v34  ;;  %359 = vst [vmem:[#allocation2 + $0x8] sm:$0xff] %v334_v24  ;;  %v3989_v28 = vrot.slane %v2710_v20, %v5425_v32  ;;  %v5427_v34 = vsub.s32 2, %v3947_v18  ;;  %v461_v32 = vld [vmem:[#allocation2 + $0x48] sm:$0xf] }
 0x100   :  { %5424 = vst [vmem:[#allocation9_spill] sm:$0xff] %v3985_v30 }
 0x101   :  { %5426 = vst [vmem:[#allocation47_spill] sm:$0xff] %v3989_v28  ;;  %v3995_v24 = vrot.slane %v2710_v20, %v5427_v34 }
 0x103   :  { %5428 = vst [vmem:[#allocation48_spill] sm:$0xff] %v3995_v24 }
 0x12e   :  { %v1009_v36 = vpop.f32.mrf.mxu1  ;;  %v1050_v11 = vpop.f32.mrf.mxu0 }
 0x12f   :  { %v1010_v56 = vadd.f32 %v1009_v36, %v3985_v30 }
 0x130   :  { %v1011_v62 = vpop.f32.mrf.mxu1  ;;  %v1052_v38 = vpop.f32.mrf.mxu0 }
 0x131   :  { %v1012_v16 = vadd.f32 %v1011_v62, %v3989_v28  ;;  %v1098_v40 = vadd.f32 %v1010_v56, %v458_v50  ;;  %v460_v62 = vld [vmem:[#allocation2 + $0x10] sm:$0xf] }
 0x132   :  { %v1013_v58 = vpop.f32.mrf.mxu1  ;;  %v1054_v54 = vpop.f32.mrf.mxu0 }
 0x133   :  { %v1099_v60 = vadd.f32 %v1012_v16, %v459_v1  ;;  %v2807_v22 = vmul.f32 -1.442695, %v1098_v40  ;;  %v5429_v54 = vsub.s32 3, %v3947_v18 }
 0x134   :  { %v1014_v42 = vpop.f32.mrf.mxu1  ;;  %v1055_v52 = vpop.f32.mrf.mxu0 }
 0x135   :  { %v2808_v58 = vmul.f32 -1.442695, %v1099_v60  ;;  %v3999_v42 = vrot.slane %v2710_v20, %v5429_v54  ;;  %3105 = vpow2.f32 %v2807_v22  ;;  %v1051_v52 = vadd.f32 %v1050_v11, %v3995_v24 }
 0x136   :  { %v5431_v11 = vsub.s32 4, %v3947_v18  ;;  %v5433_v54 = vsub.s32 5, %v3947_v18  ;;  %v463_v18 = vld [vmem:[#allocation2 + $0x28] sm:$0xf] }
 0x137   :  { %5430 = vst [vmem:[#allocation49_spill] sm:$0xff] %v3999_v42  ;;  %3107 = vpow2.f32 %v2808_v58  ;;  %v1053_v36 = vadd.f32 %v1052_v38, %v3999_v42  ;;  %v1112_v26 = vadd.f32 %v1051_v52, %v460_v62 }
 0x138   :  { %v4005_v58 = vrot.slane %v2710_v20, %v5431_v11  ;;  %v4009_v52 = vrot.slane %v2710_v20, %v5433_v54 }
 0x139   :  { %v1113_v56 = vadd.f32 %v1053_v36, %v461_v32  ;;  %v2809_v16 = vmul.f32 -1.442695, %v1112_v26 }
 0x13a   :  { %5432 = vst [vmem:[#allocation50_spill] sm:$0xff] %v4005_v58  ;;  %5434 = vst [vmem:[#allocation51_spill] sm:$0xff] %v4009_v52 }
 0x13b   :  { %v2810_v50 = vmul.f32 -1.442695, %v1113_v56  ;;  %3109 = vpow2.f32 %v2809_v16 }
 0x13d   :  { %3111 = vpow2.f32 %v2810_v50 }
 0x142   :  { %v3106_v40 = vpop.eup %3105 }
 0x143   :  { %v1106_v60 = vadd.f32 1.0, %v3106_v40 }
 0x144   :  { %v3108_v1 = vpop.eup %3107 }
 0x145   :  { %v1107_v34 = vadd.f32 1.0, %v3108_v1  ;;  %3113 = vrcp.f32 %v1106_v60  ;;  %v462_v60 = vld [vmem:[#allocation2 + $0x60] sm:$0xf] }
 0x147   :  { %3115 = vrcp.f32 %v1107_v34 }
 0x148   :  { %v3110_v22 = vpop.eup %3109 }
 0x149   :  { %v1120_v36 = vadd.f32 1.0, %v3110_v22 }
 0x14a   :  { %v3112_v38 = vpop.eup %3111 }
 0x14b   :  { %v1121_v26 = vadd.f32 1.0, %v3112_v38  ;;  %3117 = vrcp.f32 %v1120_v36 }
 0x14d   :  { %3119 = vrcp.f32 %v1121_v26 }
 0x152   :  { %v3114_v56 = vpop.eup %3113 }
 0x154   :  { %v3116_v1 = vpop.eup %3115 }
 0x158   :  { %v3118_v38 = vpop.eup %3117 }
 0x15a   :  { %v3120_v54 = vpop.eup %3119 }
 0x15b   :  { %v1133_v24 = vsub.f32 1.0, %v3120_v54 }
 0x16e   :  { %v1091_v62 = vpop.f32.mrf.mxu1 }
 0x16f   :  { %v1092_v32 = vadd.f32 %v1091_v62, %v4005_v58  ;;  %v1132_v62 = vsub.f32 1.0, %v3118_v38 }
 0x170   :  { %v1093_v16 = vpop.f32.mrf.mxu1 }
 0x171   :  { %v1126_v50 = vmul.f32 %v3114_v56, %v1092_v32  ;;  %v1094_v40 = vadd.f32 %v1093_v16, %v4009_v52  ;;  %v1136_v56 = vmul.f32 0.0, %v3118_v38  ;;  %v1137_v52 = vmul.f32 0.0, %v3120_v54  ;;  %v5447_v38 = vld [vmem:[#allocation41_spill] sm:$0xff]  ;;  %v5449_v54 = vld [vmem:[#allocation42_spill] sm:$0xff] }
 0x172   :  { %v1095_v34 = vpop.f32.mrf.mxu1 }
 0x173   :  { %v1128_v11 = vadd.f32 %v1126_v50, %v462_v60  ;;  %v1127_v42 = vmul.f32 %v3116_v1, %v1094_v40  ;;  %v4035_v40 = vld [vmem:[#allocation3 + $0x120] ss:$24 sps:$4 sm:$0xff]   ;;  %v5438_v60 = vld [vmem:[#allocation10_spill] sm:$0xff] }
 0x174   :  { %v1096_v20 = vpop.f32.mrf.mxu1  ;;  %v5437_v1 = vld [vmem:[#allocation36_spill] sm:$0xff]  ;;  %v5439_v34 = vld [vmem:[#allocation37_spill] sm:$0xff] }
 0x175   :  { %3121 = vtanh.f32 %v1128_v11  ;;  %v1129_v22 = vadd.f32 %v1127_v42, %v463_v18  ;;  %v5440_v11 = vld [vmem:[#allocation11_spill] sm:$0xff]  ;;  %v5441_v18 = vld [vmem:[#allocation38_spill] sm:$0xff] }
 0x176   :  { %v5443_v20 = vld [vmem:[#allocation39_spill] sm:$0xff] }
 0x177   :  { %3123 = vtanh.f32 %v1129_v22  ;;  %v5445_v22 = vld [vmem:[#allocation40_spill] sm:$0xff] }
 0x182   :  { %v3122_v58 = vpop.eup %3121 }
 0x183   :  { %v1134_v36 = vmul.f32 %v3122_v58, %v1132_v62  ;;  %v4027_v58 = vld [vmem:[#allocation3 + $0x150] ss:$24 sps:$4 sm:$0xff]  }
 0x184   :  { %v3124_v32 = vpop.eup %3123  ;;  %v5451_v62 = vld [vmem:[#allocation43_spill] sm:$0xff] }
 0x185   :  { %v1135_v16 = vmul.f32 %v3124_v32, %v1133_v24  ;;  %v4013_v28 = vadd.f32 %v1136_v56, %v1134_v36  ;;  %v5436_v24 = vld [vmem:[#allocation35_spill] sm:$0xff]  ;;  %v5453_v36 = vld [vmem:[#allocation44_spill] sm:$0xff]  ;;  %v5455_v32 = vld [vmem:[#allocation45_spill] sm:$0xff] }
 0x186   :  { %v5457_v56 = vld [vmem:[#allocation46_spill] sm:$0xff] }
 0x187   :  { %v4015_v26 = vadd.f32 %v1137_v52, %v1135_v16  ;;  %v4021_v42 = vpack.c.bf16 %v4013_v28, %v4013_v28  ;;  %v4030_v52 = vld [vmem:[#allocation3 + $0x124] ss:$24 sps:$4 sm:$0xff]   ;;  %v4128_v16 = vld [vmem:[#allocation3 + $0x68] ss:$24 sps:$4 sm:$0xff]  }
 0x189   :  { %5435 = vst [vmem:[#allocation52_spill] sm:$0xff] %v4015_v26  ;;  %v1147_v50 = vpack.c.bf16 %v4015_v26, %v4015_v26 }
 0x18b   :  { %1180 = vmatprep.mubr.bf16.mxu0 %v1147_v50  ;;  %1221 = vmatprep.mubr.bf16.mxu1 %v1147_v50 }
 0x18c   :  { %1181 = vmatmul.mubr.bf16.vlgmr.msra.gmra.mxu0 %v4021_v42  ;;  %1222 = vmatmul.mubr.bf16.vlgmr.msra.gmra.mxu1 %v4021_v42 }
 0x18d   :  { %1231 = vmatpush1.bf16.msra.mxu0 %v3793_v9  ;;  %1262 = vmatprep.mubr.bf16.mxu0 %v1147_v50  ;;  %v4131_v50 = vld [vmem:[#allocation3 + $0x3c] ss:$24 sps:$4 sm:$0xff]  }
 0x18e   :  { %1232 = vmatprep.subr.bf16.mxu0 %v5436_v24  ;;  %1352 = vmatpush1.bf16.msra.mxu1 %v4027_v58  ;;  %5465 = vst [vmem:[#allocation39_spill] sm:$0xff] %v4131_v50 }
 0x18f   :  { %1353 = vmatprep.subr.bf16.mxu1 %v4030_v52 }
 0x191   :  { %1233 = vmatpush1.bf16.msra.mxu0 %v3802_v13 }
 0x192   :  { %1234 = vmatprep.subr.bf16.mxu0 %v3806_v0  ;;  %1354 = vmatpush1.bf16.msra.mxu1 %v4035_v40 }
 0x193   :  { %1355 = vmatprep.subr.bf16.mxu1 %v3615_v23  ;;  %v5442_v23 = vld [vmem:[#allocation12_spill] sm:$0xff] }
 0x194   :  { %5464 = vst [vmem:[#allocation12_spill] sm:$0xff] %v4128_v16 }
 0x195   :  { %1235 = vmatpush1.bf16.msra.mxu0 %v3811_v15 }
 0x196   :  { %1236 = vmatprep.subr.bf16.mxu0 %v5437_v1  ;;  %1356 = vmatpush1.bf16.msra.mxu1 %v5438_v60  ;;  %v5467_v60 = vld [vmem:[#allocation17_spill] sm:$0xff] }
 0x197   :  { %1357 = vmatprep.subr.bf16.mxu1 %v3627_v27  ;;  %v5444_v27 = vld [vmem:[#allocation13_spill] sm:$0xff] }
 0x199   :  { %1237 = vmatpush1.bf16.msra.mxu0 %v3819_v5 }
 0x19a   :  { %1238 = vmatprep.subr.bf16.mxu0 %v5439_v34  ;;  %1358 = vmatpush1.bf16.msra.mxu1 %v5440_v11  ;;  %v5468_v11 = vld [vmem:[#allocation18_spill] sm:$0xff] }
 0x19b   :  { %1359 = vmatprep.subr.bf16.mxu1 %v3643_v31  ;;  %v5446_v31 = vld [vmem:[#allocation14_spill] sm:$0xff] }
 0x19d   :  { %1239 = vmatpush1.bf16.msra.mxu0 %v3827_v19 }
 0x19e   :  { %1240 = vmatprep.subr.bf16.mxu0 %v5441_v18  ;;  %1360 = vmatpush1.bf16.msra.mxu1 %v5442_v23  ;;  %v5469_v23 = vld [vmem:[#allocation20_spill] sm:$0xff] }
 0x19f   :  { %1361 = vmatprep.subr.bf16.mxu1 %v3655_v35  ;;  %v5448_v35 = vld [vmem:[#allocation15_spill] sm:$0xff] }
 0x1a1   :  { %1241 = vmatpush1.bf16.msra.mxu0 %v3835_v3 }
 0x1a2   :  { %1242 = vmatprep.subr.bf16.mxu0 %v5443_v20  ;;  %1362 = vmatpush1.bf16.msra.mxu1 %v5444_v27  ;;  %v5470_v27 = vld [vmem:[#allocation21_spill] sm:$0xff] }
 0x1a3   :  { %1363 = vmatprep.subr.bf16.mxu1 %v3669_v39  ;;  %v5450_v39 = vld [vmem:[#allocation16_spill] sm:$0xff] }
 0x1a5   :  { %1243 = vmatpush1.bf16.msra.mxu0 %v3843_v17 }
 0x1a6   :  { %1244 = vmatprep.subr.bf16.mxu0 %v5445_v22  ;;  %1364 = vmatpush1.bf16.msra.mxu1 %v5446_v31  ;;  %v5471_v31 = vld [vmem:[#allocation23_spill] sm:$0xff] }
 0x1a7   :  { %1365 = vmatprep.subr.bf16.mxu1 %v3679_v43  ;;  %v5452_v43 = vld [vmem:[#allocation19_spill] sm:$0xff] }
 0x1a9   :  { %1245 = vmatpush1.bf16.msra.mxu0 %v3851_v21 }
 0x1aa   :  { %1246 = vmatprep.subr.bf16.mxu0 %v5447_v38  ;;  %1366 = vmatpush1.bf16.msra.mxu1 %v5448_v35  ;;  %v5472_v35 = vld [vmem:[#allocation24_spill] sm:$0xff] }
 0x1ab   :  { %1367 = vmatprep.subr.bf16.mxu1 %v3693_v47  ;;  %v5454_v47 = vld [vmem:[#allocation22_spill] sm:$0xff] }
 0x1ad   :  { %1247 = vmatpush2.bf16.msra.mxu0 %v3859_v25 }
 0x1ae   :  { %1248 = vmatprep.subr.bf16.mxu0 %v5449_v54  ;;  %1368 = vmatpush2.bf16.msra.mxu1 %v5450_v39  ;;  %v5473_v39 = vld [vmem:[#allocation26_spill] sm:$0xff] }
 0x1af   :  { %1369 = vmatprep.subr.bf16.mxu1 %v3703_v51  ;;  %v5456_v51 = vld [vmem:[#allocation25_spill] sm:$0xff] }
 0x1b1   :  { %1249 = vmatpush2.bf16.msra.mxu0 %v3867_v29 }
 0x1b2   :  { %1250 = vmatprep.subr.bf16.mxu0 %v5451_v62  ;;  %1370 = vmatpush2.bf16.msra.mxu1 %v5452_v43  ;;  %v5474_v43 = vld [vmem:[#allocation27_spill] sm:$0xff] }
 0x1b3   :  { %1371 = vmatprep.subr.bf16.mxu1 %v3717_v55  ;;  %v4092_v55 = vld [vmem:[#allocation3 + $0x15c] ss:$24 sps:$4 sm:$0xff]  }
 0x1b5   :  { %1251 = vmatpush2.bf16.msra.mxu0 %v3875_v33 }
 0x1b6   :  { %1252 = vmatprep.subr.bf16.mxu0 %v5453_v36  ;;  %1372 = vmatpush2.bf16.msra.mxu1 %v5454_v47  ;;  %v5478_v47 = vld [vmem:[#allocation31_spill] sm:$0xff] }
 0x1b7   :  { %1373 = vmatprep.subr.bf16.mxu1 %v3729_v59  ;;  %v4098_v59 = vld [vmem:[#allocation3 + $0x158] ss:$24 sps:$4 sm:$0xff]  }
 0x1b9   :  { %1253 = vmatpush2.bf16.msra.mxu0 %v3883_v37 }
 0x1ba   :  { %1254 = vmatprep.subr.bf16.mxu0 %v5455_v32  ;;  %1374 = vmatpush2.bf16.msra.mxu1 %v5456_v51  ;;  %v5479_v51 = vld [vmem:[#allocation32_spill] sm:$0xff] }
 0x1bb   :  { %1375 = vmatprep.subr.bf16.mxu1 %v3741_v63  ;;  %v4101_v63 = vld [vmem:[#allocation3 + $0x12c] ss:$24 sps:$4 sm:$0xff]  }
 0x1bd   :  { %1255 = vmatpush2.bf16.msra.mxu0 %v3891_v41 }
 0x1be   :  { %1256 = vmatprep.subr.bf16.mxu0 %v5457_v56  ;;  %1376 = vmatpush2.bf16.msra.mxu1 %v3745_v2  ;;  %v4104_v2 = vld [vmem:[#allocation3 + $0x128] ss:$24 sps:$4 sm:$0xff]  }
 0x1bf   :  { %1377 = vmatprep.subr.bf16.mxu1 %v3753_v4  ;;  %v4107_v4 = vld [vmem:[#allocation3 + $0xfc] ss:$24 sps:$4 sm:$0xff]  }
 0x1c1   :  { %1257 = vmatpush2.bf16.msra.mxu0 %v3899_v45 }
 0x1c2   :  { %1258 = vmatprep.subr.bf16.mxu0 %v3902_v57  ;;  %1378 = vmatpush2.bf16.msra.mxu1 %v3757_v6  ;;  %v4110_v6 = vld [vmem:[#allocation3 + $0xf8] ss:$24 sps:$4 sm:$0xff]  }
 0x1c3   :  { %1379 = vmatprep.subr.bf16.mxu1 %v3765_v8  ;;  %5458 = vst [vmem:[#allocation35_spill] sm:$0xff] %v4110_v6  ;;  %v4116_v8 = vld [vmem:[#allocation3 + $0xc8] ss:$24 sps:$4 sm:$0xff]  }
 0x1c4   :  { %5460 = vst [vmem:[#allocation10_spill] sm:$0xff] %v4116_v8 }
 0x1c5   :  { %1259 = vmatpush2.bf16.msra.mxu0 %v3907_v49 }
 0x1c6   :  { %1260 = vmatprep.subr.bf16.mxu0 %v3910_v61  ;;  %1380 = vmatpush2.bf16.msra.mxu1 %v3769_v10  ;;  %v4119_v10 = vld [vmem:[#allocation3 + $0x9c] ss:$24 sps:$4 sm:$0xff]  }
 0x1c7   :  { %1381 = vmatprep.subr.bf16.mxu1 %v3777_v12  ;;  %5461 = vst [vmem:[#allocation37_spill] sm:$0xff] %v4119_v10  ;;  %v4122_v12 = vld [vmem:[#allocation3 + $0x98] ss:$24 sps:$4 sm:$0xff]  }
 0x1c8   :  { %5462 = vst [vmem:[#allocation11_spill] sm:$0xff] %v4122_v12 }
 0x1c9   :  { %1261 = vmatpush2.bf16.msra.mxu0 %v3915_v53 }
 0x1ca   :  { %1392 = vmatprep.subr.bf16.mxu0 %v4092_v55  ;;  %1382 = vmatpush2.bf16.msra.mxu1 %v3783_v14  ;;  %v4125_v14 = vld [vmem:[#allocation3 + $0x6c] ss:$24 sps:$4 sm:$0xff]  }
 0x1cb   :  { %1433 = vmatprep.subr.bf16.mxu1 %v3789_v7  ;;  %v4113_v7 = vld [vmem:[#allocation3 + $0xcc] ss:$24 sps:$4 sm:$0xff]   ;;  %5463 = vst [vmem:[#allocation38_spill] sm:$0xff] %v4125_v14 }
 0x1cc   :  { %1263 = vmatmul.mubr.bf16.vlgmr.msra.gmra.mxu0 %v4021_v42  ;;  %5459 = vst [vmem:[#allocation36_spill] sm:$0xff] %v4113_v7  ;;  %v4134_v42 = vld [vmem:[#allocation3 + $0x38] ss:$24 sps:$4 sm:$0xff]  }
 0x1cd   :  { %1393 = vmatpush1.bf16.msra.mxu0 %v4098_v59  ;;  %5466 = vst [vmem:[#allocation13_spill] sm:$0xff] %v4134_v42 }
 0x1ce   :  { %1394 = vmatprep.subr.bf16.mxu0 %v4101_v63 }
 0x1d1   :  { %1395 = vmatpush1.bf16.msra.mxu0 %v4104_v2 }
 0x1d2   :  { %1396 = vmatprep.subr.bf16.mxu0 %v4107_v4 }
 0x1d5   :  { %1397 = vmatpush1.bf16.msra.mxu0 %v4110_v6  ;;  %v5485_v6 = vld [vmem:[#allocation49_spill] sm:$0xff] }
 0x1d6   :  { %1398 = vmatprep.subr.bf16.mxu0 %v4113_v7 }
 0x1d9   :  { %1399 = vmatpush1.bf16.msra.mxu0 %v4116_v8 }
 0x1da   :  { %1400 = vmatprep.subr.bf16.mxu0 %v4119_v10 }
 0x1dd   :  { %1401 = vmatpush1.bf16.msra.mxu0 %v4122_v12 }
 0x1de   :  { %1402 = vmatprep.subr.bf16.mxu0 %v4125_v14  ;;  %v1141_v14 = vld [vmem:[#allocation2] sm:$0xf0] }
 0x1e1   :  { %1403 = vmatpush1.bf16.msra.mxu0 %v4128_v16  ;;  %v1140_v16 = vld [vmem:[#allocation2 + $0xb0] sm:$0xf0] }
 0x1e2   :  { %1404 = vmatprep.subr.bf16.mxu0 %v4131_v50 }
 0x1e5   :  { %1405 = vmatpush1.bf16.msra.mxu0 %v4134_v42  ;;  %v5483_v42 = vld [vmem:[#allocation47_spill] sm:$0xff] }
 0x1e6   :  { %1406 = vmatprep.subr.bf16.mxu0 %v3683_v44  ;;  %v5475_v44 = vld [vmem:[#allocation28_spill] sm:$0xff] }
 0x1e9   :  { %1407 = vmatpush1.bf16.msra.mxu0 %v3689_v46  ;;  %v5476_v46 = vld [vmem:[#allocation29_spill] sm:$0xff] }
 0x1ea   :  { %1408 = vmatprep.subr.bf16.mxu0 %v3695_v48  ;;  %v5477_v48 = vld [vmem:[#allocation30_spill] sm:$0xff] }
 0x1ed   :  { %1409 = vmatpush2.bf16.msra.mxu0 %v5467_v60  ;;  %v5480_v60 = vld [vmem:[#allocation33_spill] sm:$0xff] }
 0x1ee   :  { %1410 = vmatprep.subr.bf16.mxu0 %v5468_v11  ;;  %v5481_v11 = vld [vmem:[#allocation34_spill] sm:$0xff] }
 0x1f1   :  { %1411 = vmatpush2.bf16.msra.mxu0 %v5469_v23  ;;  %v4155_v23 = vld [vmem:[#allocation3 + $0x154] ss:$24 sps:$4 sm:$0xff]  }
 0x1f2   :  { %1412 = vmatprep.subr.bf16.mxu0 %v5470_v27  ;;  %5482 = vst [vmem:[#allocation40_spill] sm:$0xff] %v4155_v23 }
 0x1f5   :  { %1413 = vmatpush2.bf16.msra.mxu0 %v5471_v31 }
 0x1f6   :  { %1414 = vmatprep.subr.bf16.mxu0 %v5472_v35 }
 0x1f9   :  { %1415 = vmatpush2.bf16.msra.mxu0 %v5473_v39 }
 0x1fa   :  { %1416 = vmatprep.subr.bf16.mxu0 %v5474_v43 }
 0x1fd   :  { %1417 = vmatpush2.bf16.msra.mxu0 %v5475_v44 }
 0x1fe   :  { %1418 = vmatprep.subr.bf16.mxu0 %v5476_v46 }
 0x201   :  { %1419 = vmatpush2.bf16.msra.mxu0 %v5477_v48 }
 0x202   :  { %1420 = vmatprep.subr.bf16.mxu0 %v5478_v47 }
 0x205   :  { %1421 = vmatpush2.bf16.msra.mxu0 %v5479_v51 }
 0x206   :  { %1422 = vmatprep.subr.bf16.mxu0 %v5480_v60 }
 0x209   :  { %1423 = vmatpush2.bf16.msra.mxu0 %v5481_v11 }
 0x20a   :  { %1530 = vmatprep.subr.bf16.mxu0 %v4155_v23  ;;  %v5484_v23 = vld [vmem:[#allocation48_spill] sm:$0xff] }
 0x24c   :  { %v1182_v27 = vpop.f32.mrf.mxu0  ;;  %v1223_v31 = vpop.f32.mrf.mxu1 }
 0x24d   :  { %v1183_v47 = vadd.f32 %v1182_v27, %v3985_v30  ;;  %v1224_v8 = vadd.f32 %v1223_v31, %v5484_v23  ;;  %v1143_v30 = vld [vmem:[#allocation2 + $0x48] sm:$0xf0] }
 0x24e   :  { %v1184_v35 = vpop.f32.mrf.mxu0  ;;  %v1225_v39 = vpop.f32.mrf.mxu1 }
 0x24f   :  { %v1185_v51 = vadd.f32 %v1184_v35, %v5483_v42  ;;  %v1273_v50 = vrot.slane %v1183_v47, 4 }
 0x250   :  { %v1186_v43 = vpop.f32.mrf.mxu0  ;;  %v1227_v44 = vpop.f32.mrf.mxu1 }
 0x251   :  { %v1274_v60 = vrot.slane %v1185_v51, 4  ;;  %v1277_v11 = vadd.f32 %v1273_v50, %v1140_v16  ;;  %v1226_v43 = vadd.f32 %v1225_v39, %v5485_v6  ;;  %v1293_v44 = vrot.slane %v1224_v8, 4 }
 0x252   :  { %v1187_v46 = vpop.f32.mrf.mxu0  ;;  %v1228_v48 = vpop.f32.mrf.mxu1 }
 0x253   :  { %v1278_v12 = vadd.f32 %v1274_v60, %v1141_v14  ;;  %v2811_v10 = vmul.f32 -1.442695, %v1277_v11  ;;  %v1294_v46 = vrot.slane %v1226_v43, 4  ;;  %v1142_v48 = vld [vmem:[#allocation2 + $0x10] sm:$0xf0] }
 0x254   :  { %v1297_v27 = vadd.f32 %v1293_v44, %v1142_v48 }
 0x255   :  { %v2812_v7 = vmul.f32 -1.442695, %v1278_v12  ;;  %3125 = vpow2.f32 %v2811_v10  ;;  %v1298_v35 = vadd.f32 %v1294_v46, %v1143_v30  ;;  %v5487_v30 = vld [vmem:[#allocation51_spill] sm:$0xff] }
 0x256   :  { %v2813_v47 = vmul.f32 -1.442695, %v1297_v27 }
 0x257   :  { %3127 = vpow2.f32 %v2812_v7  ;;  %v2814_v51 = vmul.f32 -1.442695, %v1298_v35  ;;  %v5486_v7 = vld [vmem:[#allocation50_spill] sm:$0xff] }
 0x258   :  { %3129 = vpow2.f32 %v2813_v47  ;;  %v1144_v47 = vld [vmem:[#allocation2 + $0x60] sm:$0xf0] }
 0x259   :  { %3131 = vpow2.f32 %v2814_v51 }
 0x262   :  { %v3126_v42 = vpop.eup %3125 }
 0x263   :  { %v1285_v14 = vadd.f32 1.0, %v3126_v42 }
 0x264   :  { %v3128_v16 = vpop.eup %3127 }
 0x265   :  { %v1286_v50 = vadd.f32 1.0, %v3128_v16  ;;  %3133 = vrcp.f32 %v1285_v14  ;;  %v3130_v10 = vpop.eup %3129 }
 0x266   :  { %v3132_v12 = vpop.eup %3131  ;;  %v1305_v8 = vadd.f32 1.0, %v3130_v10 }
 0x267   :  { %3135 = vrcp.f32 %v1286_v50  ;;  %v1306_v11 = vadd.f32 1.0, %v3132_v12  ;;  %v1145_v50 = vld [vmem:[#allocation2 + $0x28] sm:$0xf0] }
 0x268   :  { %3137 = vrcp.f32 %v1305_v8  ;;  %v5257_v8 = vrot.slane %v4015_v26, 4  ;;  %v4352_v26 = vld [vmem:[#allocation3 + $0x1ec] ss:$24 sps:$4 sm:$0xff]  }
 0x269   :  { %3139 = vrcp.f32 %v1306_v11  ;;  %5518 = vst [vmem:[#allocation29_spill] sm:$0xff] %v4352_v26 }
 0x272   :  { %v3134_v46 = vpop.eup %3133 }
 0x274   :  { %v3136_v35 = vpop.eup %3135 }
 0x28c   :  { %v1264_v31 = vpop.f32.mrf.mxu0 }
 0x28d   :  { %v1265_v39 = vadd.f32 %v1264_v31, %v5486_v7  ;;  %v3138_v31 = vpop.eup %3137 }
 0x28e   :  { %v1266_v60 = vpop.f32.mrf.mxu0  ;;  %v3140_v12 = vpop.eup %3139 }
 0x28f   :  { %v1313_v43 = vrot.slane %v1265_v39, 4  ;;  %v1267_v44 = vadd.f32 %v1266_v60, %v5487_v30  ;;  %v1329_v39 = vrot.slane %v4013_v28, 4  ;;  %v1323_v60 = vsub.f32 1.0, %v3138_v31 }
 0x290   :  { %v1268_v48 = vpop.f32.mrf.mxu0  ;;  %v1334_v11 = vmul.f32 %v3140_v12, %v5257_v8  ;;  %v4349_v8 = vld [vmem:[#allocation3 + $0x218] ss:$24 sps:$4 sm:$0xff]  }
 0x291   :  { %v1317_v27 = vmul.f32 %v3134_v46, %v1313_v43  ;;  %v1314_v42 = vrot.slane %v1267_v44, 4  ;;  %v1324_v43 = vsub.f32 1.0, %v3140_v12  ;;  %v1333_v46 = vmul.f32 %v3138_v31, %v1329_v39  ;;  %v5503_v31 = vld [vmem:[#allocation12_spill] sm:$0xff]  ;;  %v5504_v12 = vld [vmem:[#allocation39_spill] sm:$0xff]  ;;  %v5505_v39 = vld [vmem:[#allocation13_spill] sm:$0xff]  ;;  %5517 = vst [vmem:[#allocation28_spill] sm:$0xff] %v4349_v8 }
 0x292   :  { %v1269_v51 = vpop.f32.mrf.mxu0 }
 0x293   :  { %v1319_v16 = vadd.f32 %v1317_v27, %v1144_v47  ;;  %v1318_v14 = vmul.f32 %v3136_v35, %v1314_v42 }
 0x295   :  { %3141 = vtanh.f32 %v1319_v16  ;;  %v1320_v10 = vadd.f32 %v1318_v14, %v1145_v50  ;;  %v5500_v14 = vld [vmem:[#allocation37_spill] sm:$0xff]  ;;  %v5501_v50 = vld [vmem:[#allocation11_spill] sm:$0xff] }
 0x297   :  { %3143 = vtanh.f32 %v1320_v10  ;;  %v5502_v10 = vld [vmem:[#allocation38_spill] sm:$0xff] }
 0x2a2   :  { %v3142_v30 = vpop.eup %3141 }
 0x2a3   :  { %v1325_v44 = vmul.f32 %v3142_v30, %v1323_v60  ;;  %v4187_v30 = vld [vmem:[#allocation3 + $0xf4] ss:$24 sps:$4 sm:$0xff]  }
 0x2a4   :  { %v3144_v48 = vpop.eup %3143  ;;  %v4316_v60 = vld [vmem:[#allocation3 + $0xc] ss:$24 sps:$4 sm:$0xff]  }
 0x2a5   :  { %v1326_v51 = vmul.f32 %v3144_v48, %v1324_v43  ;;  %v4168_v27 = vadd.f32 %v1333_v46, %v1325_v44  ;;  %5506 = vst [vmem:[#allocation45_spill] sm:$0xff] %v4316_v60  ;;  %v4319_v43 = vld [vmem:[#allocation3 + $0x8] ss:$24 sps:$4 sm:$0xff]   ;;  %v4322_v44 = vld [vmem:[#allocation3 + $0x2dc] ss:$24 sps:$4 sm:$0xff]  }
 0x2a6   :  { %5507 = vst [vmem:[#allocation25_spill] sm:$0xff] %v4319_v43  ;;  %5508 = vst [vmem:[#allocation46_spill] sm:$0xff] %v4322_v44  ;;  %v4325_v46 = vld [vmem:[#allocation3 + $0x2d8] ss:$24 sps:$4 sm:$0xff]   ;;  %v4328_v48 = vld [vmem:[#allocation3 + $0x2ac] ss:$24 sps:$4 sm:$0xff]  }
 0x2a7   :  { %v4170_v42 = vadd.f32 %v1334_v11, %v1326_v51  ;;  %v1343_v35 = vpack.c.bf16 %v4168_v27, %v4168_v27  ;;  %5509 = vst [vmem:[#allocation17_spill] sm:$0xff] %v4325_v46  ;;  %5510 = vst [vmem:[#allocation18_spill] sm:$0xff] %v4328_v48  ;;  %v4331_v51 = vld [vmem:[#allocation3 + $0x2a8] ss:$24 sps:$4 sm:$0xff]   ;;  %v4334_v11 = vld [vmem:[#allocation3 + $0x27c] ss:$24 sps:$4 sm:$0xff]  }
 0x2a8   :  { %5511 = vst [vmem:[#allocation20_spill] sm:$0xff] %v4331_v51  ;;  %5512 = vst [vmem:[#allocation21_spill] sm:$0xff] %v4334_v11 }
 0x2a9   :  { %v1344_v28 = vpack.c.bf16 %v4170_v42, %v4170_v42  ;;  %v4176_v16 = vrot.slane %v1343_v35, 2  ;;  %v4337_v35 = vld [vmem:[#allocation3 + $0x278] ss:$24 sps:$4 sm:$0xff]  }
 0x2aa   :  { %5513 = vst [vmem:[#allocation23_spill] sm:$0xff] %v4337_v35 }
 0x2ab   :  { %v1348_v47 = vrot.slane %v1344_v28, 2  ;;  %v4340_v28 = vld [vmem:[#allocation3 + $0x24c] ss:$24 sps:$4 sm:$0xff]  }
 0x2ac   :  { %5514 = vst [vmem:[#allocation24_spill] sm:$0xff] %v4340_v28 }
 0x2ad   :  { %1383 = vmatprep.mubr.bf16.mxu1 %v1348_v47  ;;  %1424 = vmatprep.mubr.bf16.mxu0 %v1348_v47 }
 0x2ae   :  { %1384 = vmatmul.mubr.bf16.vlgmr.msra.gmra.mxu1 %v4176_v16  ;;  %1425 = vmatmul.mubr.bf16.vlgmr.msra.gmra.mxu0 %v4176_v16 }
 0x2af   :  { %1434 = vmatpush1.bf16.msra.mxu1 %v3793_v9  ;;  %1465 = vmatprep.mubr.bf16.mxu1 %v1348_v47  ;;  %v4192_v9 = vld [vmem:[#allocation3 + $0xf0] ss:$24 sps:$4 sm:$0xff]  }
 0x2b0   :  { %1435 = vmatprep.subr.bf16.mxu1 %v5436_v24  ;;  %1531 = vmatpush1.bf16.msra.mxu0 %v4027_v58  ;;  %v4195_v24 = vld [vmem:[#allocation3 + $0xc4] ss:$24 sps:$4 sm:$0xff]   ;;  %v4343_v47 = vld [vmem:[#allocation3 + $0x248] ss:$24 sps:$4 sm:$0xff]  }
 0x2b1   :  { %1532 = vmatprep.subr.bf16.mxu0 %v4030_v52  ;;  %5515 = vst [vmem:[#allocation26_spill] sm:$0xff] %v4343_v47 }
 0x2b3   :  { %1436 = vmatpush1.bf16.msra.mxu1 %v3802_v13  ;;  %v4203_v13 = vld [vmem:[#allocation3 + $0x94] ss:$24 sps:$4 sm:$0xff]  }
 0x2b4   :  { %1437 = vmatprep.subr.bf16.mxu1 %v3806_v0  ;;  %1533 = vmatpush1.bf16.msra.mxu0 %v4035_v40  ;;  %v4200_v0 = vld [vmem:[#allocation3 + $0xc0] ss:$24 sps:$4 sm:$0xff]  }
 0x2b5   :  { %1534 = vmatprep.subr.bf16.mxu0 %v4187_v30 }
 0x2b7   :  { %1438 = vmatpush1.bf16.msra.mxu1 %v3811_v15  ;;  %v4208_v15 = vld [vmem:[#allocation3 + $0x90] ss:$24 sps:$4 sm:$0xff]  }
 0x2b8   :  { %1439 = vmatprep.subr.bf16.mxu1 %v5437_v1  ;;  %1535 = vmatpush1.bf16.msra.mxu0 %v4192_v9  ;;  %v4211_v1 = vld [vmem:[#allocation3 + $0x64] ss:$24 sps:$4 sm:$0xff]  }
 0x2b9   :  { %1536 = vmatprep.subr.bf16.mxu0 %v4195_v24 }
 0x2bb   :  { %1440 = vmatpush1.bf16.msra.mxu1 %v3819_v5  ;;  %v4216_v5 = vld [vmem:[#allocation3 + $0x60] ss:$24 sps:$4 sm:$0xff]  }
 0x2bc   :  { %1441 = vmatprep.subr.bf16.mxu1 %v5439_v34  ;;  %1537 = vmatpush1.bf16.msra.mxu0 %v4200_v0  ;;  %v4219_v34 = vld [vmem:[#allocation3 + $0x34] ss:$24 sps:$4 sm:$0xff]  }
 0x2bd   :  { %1538 = vmatprep.subr.bf16.mxu0 %v4203_v13 }
 0x2bf   :  { %1442 = vmatpush1.bf16.msra.mxu1 %v3827_v19  ;;  %v4224_v19 = vld [vmem:[#allocation3 + $0x30] ss:$24 sps:$4 sm:$0xff]  }
 0x2c0   :  { %1443 = vmatprep.subr.bf16.mxu1 %v5441_v18  ;;  %1539 = vmatpush1.bf16.msra.mxu0 %v4208_v15  ;;  %v4227_v18 = vld [vmem:[#allocation3 + $0x4] ss:$24 sps:$4 sm:$0xff]  }
 0x2c1   :  { %1540 = vmatprep.subr.bf16.mxu0 %v4211_v1 }
 0x2c3   :  { %1444 = vmatpush1.bf16.msra.mxu1 %v3835_v3  ;;  %v4232_v3 = vld [vmem:[#allocation3] ss:$24 sps:$4 sm:$0xff]  }
 0x2c4   :  { %1445 = vmatprep.subr.bf16.mxu1 %v5443_v20  ;;  %1541 = vmatpush1.bf16.msra.mxu0 %v4216_v5  ;;  %v4235_v20 = vld [vmem:[#allocation3 + $0x2d4] ss:$24 sps:$4 sm:$0xff]  }
 0x2c5   :  { %1542 = vmatprep.subr.bf16.mxu0 %v4219_v34 }
 0x2c7   :  { %1446 = vmatpush1.bf16.msra.mxu1 %v3843_v17  ;;  %v4240_v17 = vld [vmem:[#allocation3 + $0x2d0] ss:$24 sps:$4 sm:$0xff]  }
 0x2c8   :  { %1447 = vmatprep.subr.bf16.mxu1 %v5445_v22  ;;  %1543 = vmatpush1.bf16.msra.mxu0 %v4224_v19  ;;  %v4243_v22 = vld [vmem:[#allocation3 + $0x2a4] ss:$24 sps:$4 sm:$0xff]  }
 0x2c9   :  { %1544 = vmatprep.subr.bf16.mxu0 %v4227_v18 }
 0x2cb   :  { %1448 = vmatpush1.bf16.msra.mxu1 %v3851_v21  ;;  %v4248_v21 = vld [vmem:[#allocation3 + $0x2a0] ss:$24 sps:$4 sm:$0xff]  }
 0x2cc   :  { %1449 = vmatprep.subr.bf16.mxu1 %v5447_v38  ;;  %1545 = vmatpush1.bf16.msra.mxu0 %v4232_v3  ;;  %v4251_v38 = vld [vmem:[#allocation3 + $0x274] ss:$24 sps:$4 sm:$0xff]  }
 0x2cd   :  { %1546 = vmatprep.subr.bf16.mxu0 %v4235_v20 }
 0x2cf   :  { %1450 = vmatpush2.bf16.msra.mxu1 %v3859_v25  ;;  %v4256_v25 = vld [vmem:[#allocation3 + $0x270] ss:$24 sps:$4 sm:$0xff]  }
 0x2d0   :  { %1451 = vmatprep.subr.bf16.mxu1 %v5449_v54  ;;  %1547 = vmatpush2.bf16.msra.mxu0 %v4240_v17  ;;  %v4259_v54 = vld [vmem:[#allocation3 + $0x244] ss:$24 sps:$4 sm:$0xff]  }
 0x2d1   :  { %1548 = vmatprep.subr.bf16.mxu0 %v4243_v22 }
 0x2d3   :  { %1452 = vmatpush2.bf16.msra.mxu1 %v3867_v29  ;;  %v4264_v29 = vld [vmem:[#allocation3 + $0x240] ss:$24 sps:$4 sm:$0xff]  }
 0x2d4   :  { %1453 = vmatprep.subr.bf16.mxu1 %v5451_v62  ;;  %1549 = vmatpush2.bf16.msra.mxu0 %v4248_v21  ;;  %v4267_v62 = vld [vmem:[#allocation3 + $0x214] ss:$24 sps:$4 sm:$0xff]  }
 0x2d5   :  { %1550 = vmatprep.subr.bf16.mxu0 %v4251_v38  ;;  %5488 = vst [vmem:[#allocation14_spill] sm:$0xff] %v4267_v62 }
 0x2d7   :  { %1454 = vmatpush2.bf16.msra.mxu1 %v3875_v33  ;;  %v4272_v33 = vld [vmem:[#allocation3 + $0x210] ss:$24 sps:$4 sm:$0xff]  }
 0x2d8   :  { %1455 = vmatprep.subr.bf16.mxu1 %v5453_v36  ;;  %1551 = vmatpush2.bf16.msra.mxu0 %v4256_v25  ;;  %5489 = vst [vmem:[#allocation41_spill] sm:$0xff] %v4272_v33  ;;  %v4275_v36 = vld [vmem:[#allocation3 + $0x1e4] ss:$24 sps:$4 sm:$0xff]  }
 0x2d9   :  { %1552 = vmatprep.subr.bf16.mxu0 %v4259_v54  ;;  %5490 = vst [vmem:[#allocation15_spill] sm:$0xff] %v4275_v36 }
 0x2db   :  { %1456 = vmatpush2.bf16.msra.mxu1 %v3883_v37  ;;  %v4280_v37 = vld [vmem:[#allocation3 + $0x1e0] ss:$24 sps:$4 sm:$0xff]  }
 0x2dc   :  { %1457 = vmatprep.subr.bf16.mxu1 %v5455_v32  ;;  %1553 = vmatpush2.bf16.msra.mxu0 %v4264_v29  ;;  %5491 = vst [vmem:[#allocation42_spill] sm:$0xff] %v4280_v37  ;;  %v4283_v32 = vld [vmem:[#allocation3 + $0x1b4] ss:$24 sps:$4 sm:$0xff]  }
 0x2dd   :  { %1554 = vmatprep.subr.bf16.mxu0 %v4267_v62  ;;  %5492 = vst [vmem:[#allocation16_spill] sm:$0xff] %v4283_v32 }
 0x2df   :  { %1458 = vmatpush2.bf16.msra.mxu1 %v3891_v41  ;;  %v4288_v41 = vld [vmem:[#allocation3 + $0x1b0] ss:$24 sps:$4 sm:$0xff]  }
 0x2e0   :  { %1459 = vmatprep.subr.bf16.mxu1 %v5457_v56  ;;  %1555 = vmatpush2.bf16.msra.mxu0 %v4272_v33  ;;  %5493 = vst [vmem:[#allocation43_spill] sm:$0xff] %v4288_v41  ;;  %v4291_v56 = vld [vmem:[#allocation3 + $0x184] ss:$24 sps:$4 sm:$0xff]  }
 0x2e1   :  { %1556 = vmatprep.subr.bf16.mxu0 %v4275_v36  ;;  %5494 = vst [vmem:[#allocation19_spill] sm:$0xff] %v4291_v56 }
 0x2e3   :  { %1460 = vmatpush2.bf16.msra.mxu1 %v3899_v45  ;;  %v4296_v45 = vld [vmem:[#allocation3 + $0x180] ss:$24 sps:$4 sm:$0xff]  }
 0x2e4   :  { %1461 = vmatprep.subr.bf16.mxu1 %v3902_v57  ;;  %1557 = vmatpush2.bf16.msra.mxu0 %v4280_v37  ;;  %5495 = vst [vmem:[#allocation44_spill] sm:$0xff] %v4296_v45  ;;  %v4299_v57 = vld [vmem:[#allocation3 + $0x164] ss:$24 sps:$4 sm:$0xff]  }
 0x2e5   :  { %1558 = vmatprep.subr.bf16.mxu0 %v4283_v32  ;;  %5496 = vst [vmem:[#allocation22_spill] sm:$0xff] %v4299_v57 }
 0x2e7   :  { %1462 = vmatpush2.bf16.msra.mxu1 %v3907_v49  ;;  %v5497_v49 = vld [vmem:[#allocation35_spill] sm:$0xff] }
 0x2e8   :  { %1463 = vmatprep.subr.bf16.mxu1 %v3910_v61  ;;  %1559 = vmatpush2.bf16.msra.mxu0 %v4288_v41  ;;  %v5499_v61 = vld [vmem:[#allocation10_spill] sm:$0xff] }
 0x2e9   :  { %1560 = vmatprep.subr.bf16.mxu0 %v4291_v56 }
 0x2eb   :  { %1464 = vmatpush2.bf16.msra.mxu1 %v3915_v53  ;;  %v5498_v53 = vld [vmem:[#allocation36_spill] sm:$0xff] }
 0x2ec   :  { %1571 = vmatprep.subr.bf16.mxu1 %v4092_v55  ;;  %1561 = vmatpush2.bf16.msra.mxu0 %v4296_v45 }
 0x2ed   :  { %1612 = vmatprep.subr.bf16.mxu0 %v4299_v57 }
 0x2ee   :  { %1466 = vmatmul.mubr.bf16.vlgmr.msra.gmra.mxu1 %v4176_v16  ;;  %v4346_v16 = vld [vmem:[#allocation3 + $0x21c] ss:$24 sps:$4 sm:$0xff]  }
 0x2ef   :  { %1572 = vmatpush1.bf16.msra.mxu1 %v4098_v59  ;;  %5516 = vst [vmem:[#allocation27_spill] sm:$0xff] %v4346_v16 }
 0x2f0   :  { %1573 = vmatprep.subr.bf16.mxu1 %v4101_v63 }
 0x2f3   :  { %1574 = vmatpush1.bf16.msra.mxu1 %v4104_v2 }
 0x2f4   :  { %1575 = vmatprep.subr.bf16.mxu1 %v4107_v4 }
 0x2f7   :  { %1576 = vmatpush1.bf16.msra.mxu1 %v5497_v49 }
 0x2f8   :  { %1577 = vmatprep.subr.bf16.mxu1 %v5498_v53 }
 0x2fb   :  { %1578 = vmatpush1.bf16.msra.mxu1 %v5499_v61 }
 0x2fc   :  { %1579 = vmatprep.subr.bf16.mxu1 %v5500_v14 }
 0x2ff   :  { %1580 = vmatpush1.bf16.msra.mxu1 %v5501_v50 }
 0x300   :  { %1581 = vmatprep.subr.bf16.mxu1 %v5502_v10  ;;  %v1338_v10 = vld [vmem:[#allocation2 + $0x78] sm:$0xf] }
 0x303   :  { %1582 = vmatpush1.bf16.msra.mxu1 %v5503_v31  ;;  %v1337_v31 = vld [vmem:[#allocation2 + $0x40] sm:$0xf] }
 0x304   :  { %1583 = vmatprep.subr.bf16.mxu1 %v5504_v12 }
 0x307   :  { %1584 = vmatpush1.bf16.msra.mxu1 %v5505_v39  ;;  %v5526_v39 = vld [vmem:[#allocation47_spill] sm:$0xff] }
 0x308   :  { %1585 = vmatprep.subr.bf16.mxu1 %v4316_v60  ;;  %v5525_v60 = vld [vmem:[#allocation9_spill] sm:$0xff] }
 0x30b   :  { %1586 = vmatpush1.bf16.msra.mxu1 %v4319_v43 }
 0x30c   :  { %1587 = vmatprep.subr.bf16.mxu1 %v4322_v44 }
 0x30f   :  { %1588 = vmatpush2.bf16.msra.mxu1 %v4325_v46 }
 0x310   :  { %1589 = vmatprep.subr.bf16.mxu1 %v4328_v48 }
 0x313   :  { %1590 = vmatpush2.bf16.msra.mxu1 %v4331_v51 }
 0x314   :  { %1591 = vmatprep.subr.bf16.mxu1 %v4334_v11 }
 0x317   :  { %1592 = vmatpush2.bf16.msra.mxu1 %v4337_v35  ;;  %v4355_v35 = vld [vmem:[#allocation3 + $0x1e8] ss:$24 sps:$4 sm:$0xff]  }
 0x318   :  { %1593 = vmatprep.subr.bf16.mxu1 %v4340_v28  ;;  %5519 = vst [vmem:[#allocation30_spill] sm:$0xff] %v4355_v35  ;;  %v4358_v28 = vld [vmem:[#allocation3 + $0x1bc] ss:$24 sps:$4 sm:$0xff]  }
 0x319   :  { %5520 = vst [vmem:[#allocation31_spill] sm:$0xff] %v4358_v28 }
 0x31b   :  { %1594 = vmatpush2.bf16.msra.mxu1 %v4343_v47  ;;  %v4361_v47 = vld [vmem:[#allocation3 + $0x1b8] ss:$24 sps:$4 sm:$0xff]  }
 0x31c   :  { %1595 = vmatprep.subr.bf16.mxu1 %v4346_v16  ;;  %5521 = vst [vmem:[#allocation32_spill] sm:$0xff] %v4361_v47  ;;  %v4364_v16 = vld [vmem:[#allocation3 + $0x18c] ss:$24 sps:$4 sm:$0xff]  }
 0x31d   :  { %5522 = vst [vmem:[#allocation33_spill] sm:$0xff] %v4364_v16 }
 0x31f   :  { %1596 = vmatpush2.bf16.msra.mxu1 %v4349_v8  ;;  %v4367_v8 = vld [vmem:[#allocation3 + $0x188] ss:$24 sps:$4 sm:$0xff]  }
 0x320   :  { %1597 = vmatprep.subr.bf16.mxu1 %v4352_v26  ;;  %5523 = vst [vmem:[#allocation34_spill] sm:$0xff] %v4367_v8  ;;  %v5524_v26 = vld [vmem:[#allocation40_spill] sm:$0xff] }
 0x323   :  { %1598 = vmatpush2.bf16.msra.mxu1 %v4355_v35 }
 0x324   :  { %1599 = vmatprep.subr.bf16.mxu1 %v4358_v28 }
 0x327   :  { %1600 = vmatpush2.bf16.msra.mxu1 %v4361_v47 }
 0x328   :  { %1601 = vmatprep.subr.bf16.mxu1 %v4364_v16 }
 0x32b   :  { %1602 = vmatpush2.bf16.msra.mxu1 %v4367_v8 }
 0x32c   :  { %1733 = vmatprep.subr.bf16.mxu1 %v5524_v26 }
 0x36e   :  { %v1385_v11 = vpop.f32.mrf.mxu1  ;;  %v1426_v35 = vpop.f32.mrf.mxu0 }
 0x36f   :  { %v1386_v47 = vadd.f32 %v1385_v11, %v5525_v60  ;;  %v1427_v26 = vadd.f32 %v1426_v35, %v5484_v23 }
 0x370   :  { %v1387_v51 = vpop.f32.mrf.mxu1  ;;  %v1428_v48 = vpop.f32.mrf.mxu0 }
 0x371   :  { %v1388_v12 = vadd.f32 %v1387_v51, %v5526_v39  ;;  %v1474_v16 = vadd.f32 %v1386_v47, %v1337_v31  ;;  %v1429_v61 = vadd.f32 %v1428_v48, %v5485_v6 }
 0x372   :  { %v1389_v46 = vpop.f32.mrf.mxu1  ;;  %v1430_v28 = vpop.f32.mrf.mxu0 }
 0x373   :  { %v1475_v50 = vadd.f32 %v1388_v12, %v1338_v10  ;;  %v2815_v14 = vmul.f32 -1.442695, %v1474_v16  ;;  %v1339_v46 = vld [vmem:[#allocation2 + $0x88] sm:$0xf]  ;;  %v5527_v16 = vld [vmem:[#allocation51_spill] sm:$0xff] }
 0x374   :  { %v1390_v44 = vpop.f32.mrf.mxu1  ;;  %v1431_v43 = vpop.f32.mrf.mxu0  ;;  %v1488_v28 = vadd.f32 %v1427_v26, %v1339_v46 }
 0x375   :  { %v2816_v8 = vmul.f32 -1.442695, %v1475_v50  ;;  %3145 = vpow2.f32 %v2815_v14  ;;  %v1340_v44 = vld [vmem:[#allocation2 + $0x90] sm:$0xf] }
 0x376   :  { %v1489_v43 = vadd.f32 %v1429_v61, %v1340_v44  ;;  %v2817_v53 = vmul.f32 -1.442695, %v1488_v28  ;;  %v1341_v28 = vld [vmem:[#allocation2 + $0x18] sm:$0xf] }
 0x377   :  { %3147 = vpow2.f32 %v2816_v8 }
 0x378   :  { %v2818_v11 = vmul.f32 -1.442695, %v1489_v43  ;;  %3149 = vpow2.f32 %v2817_v53 }
 0x37a   :  { %3151 = vpow2.f32 %v2818_v11  ;;  %v1342_v11 = vld [vmem:[#allocation2 + $0x98] sm:$0xf] }
 0x382   :  { %v3146_v60 = vpop.eup %3145 }
 0x383   :  { %v1482_v31 = vadd.f32 1.0, %v3146_v60 }
 0x384   :  { %v3148_v51 = vpop.eup %3147 }
 0x385   :  { %v1483_v10 = vadd.f32 1.0, %v3148_v51  ;;  %3153 = vrcp.f32 %v1482_v31  ;;  %v3150_v14 = vpop.eup %3149 }
 0x386   :  { %v1496_v12 = vadd.f32 1.0, %v3150_v14 }
 0x387   :  { %3155 = vrcp.f32 %v1483_v10  ;;  %v3152_v50 = vpop.eup %3151 }
 0x388   :  { %v1497_v35 = vadd.f32 1.0, %v3152_v50  ;;  %3157 = vrcp.f32 %v1496_v12  ;;  %v1514_v12 = vrot.slane %v4168_v27, 4  ;;  %v4391_v27 = vld [vmem:[#allocation3 + $0x160] ss:$24 sps:$4 sm:$0xff]  }
 0x38a   :  { %3159 = vrcp.f32 %v1497_v35 }
 0x392   :  { %v3154_v26 = vpop.eup %3153 }
 0x394   :  { %v3156_v53 = vpop.eup %3155 }
 0x395   :  { %v3158_v10 = vpop.eup %3157 }
 0x396   :  { %v1508_v50 = vsub.f32 1.0, %v3158_v10 }
 0x397   :  { %v3160_v14 = vpop.eup %3159 }
 0x3ae   :  { %v1467_v8 = vpop.f32.mrf.mxu1 }
 0x3af   :  { %v1468_v48 = vadd.f32 %v1467_v8, %v5486_v7 }
 0x3b0   :  { %v1469_v47 = vpop.f32.mrf.mxu1 }
 0x3b1   :  { %v1502_v61 = vmul.f32 %v3154_v26, %v1468_v48  ;;  %v1470_v46 = vadd.f32 %v1469_v47, %v5527_v16  ;;  %v1515_v48 = vrot.slane %v4170_v42, 4  ;;  %v1509_v26 = vsub.f32 1.0, %v3160_v14  ;;  %v4394_v42 = vld [vmem:[#allocation3 + $0x134] ss:$24 sps:$4 sm:$0xff]  }
 0x3b2   :  { %v1471_v60 = vpop.f32.mrf.mxu1 }
 0x3b3   :  { %v1504_v44 = vadd.f32 %v1502_v61, %v1341_v28  ;;  %v1503_v43 = vmul.f32 %v3156_v53, %v1470_v46  ;;  %v1518_v60 = vmul.f32 %v3158_v10, %v1514_v12  ;;  %v1519_v61 = vmul.f32 %v3160_v14, %v1515_v48  ;;  %v4431_v10 = vld [vmem:[#allocation3 + $0x70] ss:$24 sps:$4 sm:$0xff]   ;;  %v4434_v14 = vld [vmem:[#allocation3 + $0x44] ss:$24 sps:$4 sm:$0xff]  }
 0x3b4   :  { %v1472_v51 = vpop.f32.mrf.mxu1  ;;  %v4447_v12 = vld [vmem:[#allocation3 + $0x10] ss:$24 sps:$4 sm:$0xff]   ;;  %v4450_v48 = vld [vmem:[#allocation3 + $0x2e4] ss:$24 sps:$4 sm:$0xff]  }
 0x3b5   :  { %3161 = vtanh.f32 %v1504_v44  ;;  %v1505_v31 = vadd.f32 %v1503_v43, %v1342_v11  ;;  %v4402_v43 = vld [vmem:[#allocation3 + $0x104] ss:$24 sps:$4 sm:$0xff]   ;;  %v4407_v11 = vld [vmem:[#allocation3 + $0x100] ss:$24 sps:$4 sm:$0xff]   ;;  %v4410_v51 = vld [vmem:[#allocation3 + $0xd4] ss:$24 sps:$4 sm:$0xff]  }
 0x3b7   :  { %3163 = vtanh.f32 %v1505_v31  ;;  %v4426_v31 = vld [vmem:[#allocation3 + $0x74] ss:$24 sps:$4 sm:$0xff]  }
 0x3c2   :  { %v3162_v8 = vpop.eup %3161 }
 0x3c3   :  { %v1510_v47 = vmul.f32 %v3162_v8, %v1508_v50  ;;  %v4439_v50 = vld [vmem:[#allocation3 + $0x40] ss:$24 sps:$4 sm:$0xff]   ;;  %v4442_v8 = vld [vmem:[#allocation3 + $0x14] ss:$24 sps:$4 sm:$0xff]  }
 0x3c4   :  { %v3164_v16 = vpop.eup %3163 }
 0x3c5   :  { %v1511_v35 = vmul.f32 %v3164_v16, %v1509_v26  ;;  %v4379_v46 = vadd.f32 %v1518_v60, %v1510_v47  ;;  %v4399_v16 = vld [vmem:[#allocation3 + $0x130] ss:$24 sps:$4 sm:$0xff]   ;;  %v4455_v26 = vld [vmem:[#allocation3 + $0x2e0] ss:$24 sps:$4 sm:$0xff]   ;;  %v4458_v47 = vld [vmem:[#allocation3 + $0x2b4] ss:$24 sps:$4 sm:$0xff]  }
 0x3c6   :  { %v4463_v60 = vld [vmem:[#allocation3 + $0x2b0] ss:$24 sps:$4 sm:$0xff]  }
 0x3c7   :  { %v4381_v53 = vadd.f32 %v1519_v61, %v1511_v35  ;;  %v4387_v44 = vpack.c.bf16 %v4379_v46, %v4379_v46  ;;  %5528 = vst [vmem:[#allocation48_spill] sm:$0xff] %v4463_v60  ;;  %v4466_v35 = vld [vmem:[#allocation3 + $0x284] ss:$24 sps:$4 sm:$0xff]   ;;  %v4471_v61 = vld [vmem:[#allocation3 + $0x280] ss:$24 sps:$4 sm:$0xff]  }
 0x3c8   :  { %5529 = vst [vmem:[#allocation49_spill] sm:$0xff] %v4466_v35  ;;  %5530 = vst [vmem:[#allocation50_spill] sm:$0xff] %v4471_v61 }
 0x3c9   :  { %v1529_v28 = vpack.c.bf16 %v4381_v53, %v4381_v53 }
 0x3cb   :  { %1562 = vmatprep.mubr.bf16.mxu0 %v1529_v28  ;;  %1603 = vmatprep.mubr.bf16.mxu1 %v1529_v28 }
 0x3cc   :  { %1563 = vmatmul.mubr.bf16.vlgmr.msra.gmra.mxu0 %v4387_v44  ;;  %1604 = vmatmul.mubr.bf16.vlgmr.msra.gmra.mxu1 %v4387_v44 }
 0x3cd   :  { %1613 = vmatpush1.bf16.msra.mxu0 %v4391_v27  ;;  %1644 = vmatprep.mubr.bf16.mxu0 %v1529_v28  ;;  %v4474_v28 = vld [vmem:[#allocation3 + $0x254] ss:$24 sps:$4 sm:$0xff]  }
 0x3ce   :  { %1614 = vmatprep.subr.bf16.mxu0 %v4394_v42  ;;  %1734 = vmatpush1.bf16.msra.mxu1 %v4027_v58  ;;  %v4415_v58 = vld [vmem:[#allocation3 + $0xd0] ss:$24 sps:$4 sm:$0xff]   ;;  %5531 = vst [vmem:[#allocation35_spill] sm:$0xff] %v4474_v28 }
 0x3cf   :  { %1735 = vmatprep.subr.bf16.mxu1 %v4030_v52  ;;  %v4418_v52 = vld [vmem:[#allocation3 + $0xa4] ss:$24 sps:$4 sm:$0xff]  }
 0x3d1   :  { %1615 = vmatpush1.bf16.msra.mxu0 %v4399_v16 }
 0x3d2   :  { %1616 = vmatprep.subr.bf16.mxu0 %v4402_v43  ;;  %1736 = vmatpush1.bf16.msra.mxu1 %v4035_v40  ;;  %v4423_v40 = vld [vmem:[#allocation3 + $0xa0] ss:$24 sps:$4 sm:$0xff]  }
 0x3d3   :  { %1737 = vmatprep.subr.bf16.mxu1 %v4187_v30 }
 0x3d5   :  { %1617 = vmatpush1.bf16.msra.mxu0 %v4407_v11 }
 0x3d6   :  { %1618 = vmatprep.subr.bf16.mxu0 %v4410_v51  ;;  %1738 = vmatpush1.bf16.msra.mxu1 %v4192_v9 }
 0x3d7   :  { %1739 = vmatprep.subr.bf16.mxu1 %v4195_v24 }
 0x3d9   :  { %1619 = vmatpush1.bf16.msra.mxu0 %v4415_v58 }
 0x3da   :  { %1620 = vmatprep.subr.bf16.mxu0 %v4418_v52  ;;  %1740 = vmatpush1.bf16.msra.mxu1 %v4200_v0 }
 0x3db   :  { %1741 = vmatprep.subr.bf16.mxu1 %v4203_v13 }
 0x3dd   :  { %1621 = vmatpush1.bf16.msra.mxu0 %v4423_v40 }
 0x3de   :  { %1622 = vmatprep.subr.bf16.mxu0 %v4426_v31  ;;  %1742 = vmatpush1.bf16.msra.mxu1 %v4208_v15 }
 0x3df   :  { %1743 = vmatprep.subr.bf16.mxu1 %v4211_v1 }
 0x3e1   :  { %1623 = vmatpush1.bf16.msra.mxu0 %v4431_v10 }
 0x3e2   :  { %1624 = vmatprep.subr.bf16.mxu0 %v4434_v14  ;;  %1744 = vmatpush1.bf16.msra.mxu1 %v4216_v5 }
 0x3e3   :  { %1745 = vmatprep.subr.bf16.mxu1 %v4219_v34 }
 0x3e5   :  { %1625 = vmatpush1.bf16.msra.mxu0 %v4439_v50 }
 0x3e6   :  { %1626 = vmatprep.subr.bf16.mxu0 %v4442_v8  ;;  %1746 = vmatpush1.bf16.msra.mxu1 %v4224_v19 }
 0x3e7   :  { %1747 = vmatprep.subr.bf16.mxu1 %v4227_v18 }
 0x3e9   :  { %1627 = vmatpush1.bf16.msra.mxu0 %v4447_v12 }
 0x3ea   :  { %1628 = vmatprep.subr.bf16.mxu0 %v4450_v48  ;;  %1748 = vmatpush1.bf16.msra.mxu1 %v4232_v3 }
 0x3eb   :  { %1749 = vmatprep.subr.bf16.mxu1 %v4235_v20 }
 0x3ed   :  { %1629 = vmatpush2.bf16.msra.mxu0 %v4455_v26 }
 0x3ee   :  { %1630 = vmatprep.subr.bf16.mxu0 %v4458_v47  ;;  %1750 = vmatpush2.bf16.msra.mxu1 %v4240_v17 }
 0x3ef   :  { %1751 = vmatprep.subr.bf16.mxu1 %v4243_v22 }
 0x3f1   :  { %1631 = vmatpush2.bf16.msra.mxu0 %v4463_v60  ;;  %v4479_v60 = vld [vmem:[#allocation3 + $0x250] ss:$24 sps:$4 sm:$0xff]  }
 0x3f2   :  { %1632 = vmatprep.subr.bf16.mxu0 %v4466_v35  ;;  %1752 = vmatpush2.bf16.msra.mxu1 %v4248_v21  ;;  %5532 = vst [vmem:[#allocation53_spill] sm:$0xff] %v4479_v60  ;;  %v4482_v35 = vld [vmem:[#allocation3 + $0x224] ss:$24 sps:$4 sm:$0xff]  }
 0x3f3   :  { %1753 = vmatprep.subr.bf16.mxu1 %v4251_v38  ;;  %5533 = vst [vmem:[#allocation54_spill] sm:$0xff] %v4482_v35 }
 0x3f5   :  { %1633 = vmatpush2.bf16.msra.mxu0 %v4471_v61  ;;  %v4487_v61 = vld [vmem:[#allocation3 + $0x220] ss:$24 sps:$4 sm:$0xff]  }
 0x3f6   :  { %1634 = vmatprep.subr.bf16.mxu0 %v4474_v28  ;;  %1754 = vmatpush2.bf16.msra.mxu1 %v4256_v25  ;;  %5534 = vst [vmem:[#allocation55_spill] sm:$0xff] %v4487_v61  ;;  %v4490_v28 = vld [vmem:[#allocation3 + $0x1f4] ss:$24 sps:$4 sm:$0xff]  }
 0x3f7   :  { %1755 = vmatprep.subr.bf16.mxu1 %v4259_v54  ;;  %5535 = vst [vmem:[#allocation56_spill] sm:$0xff] %v4490_v28 }
 0x3f9   :  { %1635 = vmatpush2.bf16.msra.mxu0 %v4479_v60  ;;  %v4495_v60 = vld [vmem:[#allocation3 + $0x1f0] ss:$24 sps:$4 sm:$0xff]  }
 0x3fa   :  { %1636 = vmatprep.subr.bf16.mxu0 %v4482_v35  ;;  %1756 = vmatpush2.bf16.msra.mxu1 %v4264_v29  ;;  %5536 = vst [vmem:[#allocation57_spill] sm:$0xff] %v4495_v60  ;;  %v4498_v35 = vld [vmem:[#allocation3 + $0x1c4] ss:$24 sps:$4 sm:$0xff]  }
 0x3fb   :  { %1757 = vmatprep.subr.bf16.mxu1 %v4267_v62  ;;  %5537 = vst [vmem:[#allocation58_spill] sm:$0xff] %v4498_v35 }
 0x3fd   :  { %1637 = vmatpush2.bf16.msra.mxu0 %v4487_v61  ;;  %v4503_v61 = vld [vmem:[#allocation3 + $0x1c0] ss:$24 sps:$4 sm:$0xff]  }
 0x3fe   :  { %1638 = vmatprep.subr.bf16.mxu0 %v4490_v28  ;;  %1758 = vmatpush2.bf16.msra.mxu1 %v4272_v33  ;;  %5538 = vst [vmem:[#allocation59_spill] sm:$0xff] %v4503_v61  ;;  %v4506_v28 = vld [vmem:[#allocation3 + $0x194] ss:$24 sps:$4 sm:$0xff]  }
 0x3ff   :  { %1759 = vmatprep.subr.bf16.mxu1 %v4275_v36  ;;  %5539 = vst [vmem:[#allocation60_spill] sm:$0xff] %v4506_v28  ;;  %v1523_v36 = vld [vmem:[#allocation2 + $0x78] sm:$0xf0] }
 0x401   :  { %1639 = vmatpush2.bf16.msra.mxu0 %v4495_v60  ;;  %v4511_v60 = vld [vmem:[#allocation3 + $0x190] ss:$24 sps:$4 sm:$0xff]  }
 0x402   :  { %1640 = vmatprep.subr.bf16.mxu0 %v4498_v35  ;;  %1760 = vmatpush2.bf16.msra.mxu1 %v4280_v37  ;;  %5540 = vst [vmem:[#allocation61_spill] sm:$0xff] %v4511_v60  ;;  %v1522_v35 = vld [vmem:[#allocation2 + $0x40] sm:$0xf0] }
 0x403   :  { %1761 = vmatprep.subr.bf16.mxu1 %v4283_v32  ;;  %v5568_v32 = vld [vmem:[#allocation9_spill] sm:$0xff] }
 0x405   :  { %1641 = vmatpush2.bf16.msra.mxu0 %v4503_v61 }
 0x406   :  { %1642 = vmatprep.subr.bf16.mxu0 %v4506_v28  ;;  %1762 = vmatpush2.bf16.msra.mxu1 %v4288_v41 }
 0x407   :  { %1763 = vmatprep.subr.bf16.mxu1 %v4291_v56  ;;  %v5541_v56 = vld [vmem:[#allocation36_spill] sm:$0xff] }
 0x409   :  { %1643 = vmatpush2.bf16.msra.mxu0 %v4511_v60  ;;  %v5542_v60 = vld [vmem:[#allocation10_spill] sm:$0xff] }
 0x40a   :  { %1774 = vmatprep.subr.bf16.mxu0 %v4092_v55  ;;  %1764 = vmatpush2.bf16.msra.mxu1 %v4296_v45  ;;  %v5543_v55 = vld [vmem:[#allocation37_spill] sm:$0xff]  ;;  %v5544_v45 = vld [vmem:[#allocation11_spill] sm:$0xff] }
 0x40b   :  { %1815 = vmatprep.subr.bf16.mxu1 %v4299_v57  ;;  %v5545_v57 = vld [vmem:[#allocation38_spill] sm:$0xff] }
 0x40c   :  { %1645 = vmatmul.mubr.bf16.vlgmr.msra.gmra.mxu0 %v4387_v44  ;;  %v5546_v44 = vld [vmem:[#allocation12_spill] sm:$0xff] }
 0x40d   :  { %1775 = vmatpush1.bf16.msra.mxu0 %v4098_v59  ;;  %v5547_v59 = vld [vmem:[#allocation39_spill] sm:$0xff] }
 0x40e   :  { %1776 = vmatprep.subr.bf16.mxu0 %v4101_v63  ;;  %v5548_v63 = vld [vmem:[#allocation13_spill] sm:$0xff] }
 0x411   :  { %1777 = vmatpush1.bf16.msra.mxu0 %v4104_v2  ;;  %v5549_v2 = vld [vmem:[#allocation45_spill] sm:$0xff] }
 0x412   :  { %1778 = vmatprep.subr.bf16.mxu0 %v4107_v4  ;;  %v5550_v4 = vld [vmem:[#allocation25_spill] sm:$0xff] }
 0x415   :  { %1779 = vmatpush1.bf16.msra.mxu0 %v5497_v49  ;;  %v5551_v49 = vld [vmem:[#allocation46_spill] sm:$0xff] }
 0x416   :  { %1780 = vmatprep.subr.bf16.mxu0 %v5541_v56  ;;  %v5552_v56 = vld [vmem:[#allocation17_spill] sm:$0xff] }
 0x419   :  { %1781 = vmatpush1.bf16.msra.mxu0 %v5542_v60  ;;  %v5553_v60 = vld [vmem:[#allocation18_spill] sm:$0xff] }
 0x41a   :  { %1782 = vmatprep.subr.bf16.mxu0 %v5543_v55  ;;  %v5554_v55 = vld [vmem:[#allocation20_spill] sm:$0xff] }
 0x41d   :  { %1783 = vmatpush1.bf16.msra.mxu0 %v5544_v45  ;;  %v5555_v45 = vld [vmem:[#allocation21_spill] sm:$0xff] }
 0x41e   :  { %1784 = vmatprep.subr.bf16.mxu0 %v5545_v57  ;;  %v5556_v57 = vld [vmem:[#allocation23_spill] sm:$0xff] }
 0x421   :  { %1785 = vmatpush1.bf16.msra.mxu0 %v5546_v44  ;;  %v5557_v44 = vld [vmem:[#allocation24_spill] sm:$0xff] }
 0x422   :  { %1786 = vmatprep.subr.bf16.mxu0 %v5547_v59  ;;  %v5558_v59 = vld [vmem:[#allocation26_spill] sm:$0xff] }
 0x425   :  { %1787 = vmatpush1.bf16.msra.mxu0 %v5548_v63  ;;  %v5559_v63 = vld [vmem:[#allocation27_spill] sm:$0xff] }
 0x426   :  { %1788 = vmatprep.subr.bf16.mxu0 %v5549_v2  ;;  %v5560_v2 = vld [vmem:[#allocation28_spill] sm:$0xff] }
 0x429   :  { %1789 = vmatpush1.bf16.msra.mxu0 %v5550_v4  ;;  %v5561_v4 = vld [vmem:[#allocation29_spill] sm:$0xff] }
 0x42a   :  { %1790 = vmatprep.subr.bf16.mxu0 %v5551_v49  ;;  %v5562_v49 = vld [vmem:[#allocation30_spill] sm:$0xff] }
 0x42d   :  { %1791 = vmatpush2.bf16.msra.mxu0 %v5552_v56  ;;  %v5563_v56 = vld [vmem:[#allocation31_spill] sm:$0xff] }
 0x42e   :  { %1792 = vmatprep.subr.bf16.mxu0 %v5553_v60  ;;  %v5564_v60 = vld [vmem:[#allocation32_spill] sm:$0xff] }
 0x431   :  { %1793 = vmatpush2.bf16.msra.mxu0 %v5554_v55  ;;  %v5565_v55 = vld [vmem:[#allocation33_spill] sm:$0xff] }
 0x432   :  { %1794 = vmatprep.subr.bf16.mxu0 %v5555_v45  ;;  %v5566_v45 = vld [vmem:[#allocation34_spill] sm:$0xff] }
 0x435   :  { %1795 = vmatpush2.bf16.msra.mxu0 %v5556_v57  ;;  %v5567_v57 = vld [vmem:[#allocation40_spill] sm:$0xff] }
 0x436   :  { %1796 = vmatprep.subr.bf16.mxu0 %v5557_v44 }
 0x439   :  { %1797 = vmatpush2.bf16.msra.mxu0 %v5558_v59 }
 0x43a   :  { %1798 = vmatprep.subr.bf16.mxu0 %v5559_v63 }
 0x43d   :  { %1799 = vmatpush2.bf16.msra.mxu0 %v5560_v2 }
 0x43e   :  { %1800 = vmatprep.subr.bf16.mxu0 %v5561_v4 }
 0x441   :  { %1801 = vmatpush2.bf16.msra.mxu0 %v5562_v49 }
 0x442   :  { %1802 = vmatprep.subr.bf16.mxu0 %v5563_v56 }
 0x445   :  { %1803 = vmatpush2.bf16.msra.mxu0 %v5564_v60 }
 0x446   :  { %1804 = vmatprep.subr.bf16.mxu0 %v5565_v55 }
 0x449   :  { %1805 = vmatpush2.bf16.msra.mxu0 %v5566_v45 }
 0x44a   :  { %1912 = vmatprep.subr.bf16.mxu0 %v5567_v57 }
 0x48c   :  { %v1564_v44 = vpop.f32.mrf.mxu0  ;;  %v1605_v59 = vpop.f32.mrf.mxu1 }
 0x48d   :  { %v1565_v49 = vadd.f32 %v1564_v44, %v5568_v32  ;;  %v1606_v57 = vadd.f32 %v1605_v59, %v5484_v23  ;;  %v1525_v32 = vld [vmem:[#allocation2 + $0x90] sm:$0xf0] }
 0x48e   :  { %v1566_v41 = vpop.f32.mrf.mxu0  ;;  %v1607_v63 = vpop.f32.mrf.mxu1 }
 0x48f   :  { %v1567_v56 = vadd.f32 %v1566_v41, %v5526_v39  ;;  %v1655_v37 = vrot.slane %v1565_v49, 4 }
 0x490   :  { %v1568_v28 = vpop.f32.mrf.mxu0  ;;  %v1609_v2 = vpop.f32.mrf.mxu1 }
 0x491   :  { %v1656_v60 = vrot.slane %v1567_v56, 4  ;;  %v1659_v55 = vadd.f32 %v1655_v37, %v1522_v35  ;;  %v1608_v28 = vadd.f32 %v1607_v63, %v5485_v6  ;;  %v1675_v2 = vrot.slane %v1606_v57, 4 }
 0x492   :  { %v1569_v61 = vpop.f32.mrf.mxu0  ;;  %v1610_v4 = vpop.f32.mrf.mxu1 }
 0x493   :  { %v1660_v45 = vadd.f32 %v1656_v60, %v1523_v36  ;;  %v2819_v33 = vmul.f32 -1.442695, %v1659_v55  ;;  %v1676_v61 = vrot.slane %v1608_v28, 4  ;;  %v1524_v4 = vld [vmem:[#allocation2 + $0x88] sm:$0xf0] }
 0x494   :  { %v1679_v44 = vadd.f32 %v1675_v2, %v1524_v4 }
 0x495   :  { %v2820_v62 = vmul.f32 -1.442695, %v1660_v45  ;;  %3165 = vpow2.f32 %v2819_v33  ;;  %v1680_v41 = vadd.f32 %v1676_v61, %v1525_v32  ;;  %v5569_v32 = vld [vmem:[#allocation51_spill] sm:$0xff] }
 0x496   :  { %v2821_v49 = vmul.f32 -1.442695, %v1679_v44 }
 0x497   :  { %3167 = vpow2.f32 %v2820_v62  ;;  %v2822_v56 = vmul.f32 -1.442695, %v1680_v41  ;;  %v1526_v41 = vld [vmem:[#allocation2 + $0x18] sm:$0xf0] }
 0x498   :  { %3169 = vpow2.f32 %v2821_v49 }
 0x499   :  { %3171 = vpow2.f32 %v2822_v56 }
 0x4a2   :  { %v3166_v39 = vpop.eup %3165 }
 0x4a3   :  { %v1667_v36 = vadd.f32 1.0, %v3166_v39 }
 0x4a4   :  { %v3168_v37 = vpop.eup %3167 }
 0x4a5   :  { %v1668_v35 = vadd.f32 1.0, %v3168_v37  ;;  %3173 = vrcp.f32 %v1667_v36  ;;  %v3170_v33 = vpop.eup %3169  ;;  %v1527_v36 = vld [vmem:[#allocation2 + $0x98] sm:$0xf0] }
 0x4a6   :  { %v3172_v60 = vpop.eup %3171  ;;  %v1687_v45 = vadd.f32 1.0, %v3170_v33 }
 0x4a7   :  { %3175 = vrcp.f32 %v1668_v35  ;;  %v1688_v63 = vadd.f32 1.0, %v3172_v60 }
 0x4a8   :  { %3177 = vrcp.f32 %v1687_v45  ;;  %v1712_v45 = vrot.slane %v4381_v53, 4  ;;  %v4572_v53 = vld [vmem:[#allocation3 + $0x150] ss:$24 sps:$4 sm:$0xff]  }
 0x4a9   :  { %3179 = vrcp.f32 %v1688_v63 }
 0x4b2   :  { %v3174_v2 = vpop.eup %3173 }
 0x4b4   :  { %v3176_v44 = vpop.eup %3175 }
 0x4b5   :  { %v3178_v33 = vpop.eup %3177 }
 0x4b6   :  { %v3180_v60 = vpop.eup %3179 }
 0x4b7   :  { %v1716_v63 = vmul.f32 %v3180_v60, %v1712_v45  ;;  %v4652_v45 = vld [vmem:[#allocation3 + $0xfc] ss:$24 sps:$4 sm:$0xff]  }
 0x4b8   :  { %5593 = vst [vmem:[#allocation10_spill] sm:$0xff] %v4652_v45 }
 0x4cc   :  { %v1646_v55 = vpop.f32.mrf.mxu0 }
 0x4cd   :  { %v1647_v62 = vadd.f32 %v1646_v55, %v5486_v7  ;;  %v1711_v55 = vrot.slane %v4379_v46, 4 }
 0x4ce   :  { %v1648_v59 = vpop.f32.mrf.mxu0 }
 0x4cf   :  { %v1695_v57 = vrot.slane %v1647_v62, 4  ;;  %v1649_v28 = vadd.f32 %v1648_v59, %v5569_v32  ;;  %v1705_v62 = vsub.f32 1.0, %v3178_v33 }
 0x4d0   :  { %v1650_v61 = vpop.f32.mrf.mxu0 }
 0x4d1   :  { %v1699_v4 = vmul.f32 %v3174_v2, %v1695_v57  ;;  %v1696_v39 = vrot.slane %v1649_v28, 4  ;;  %v1706_v57 = vsub.f32 1.0, %v3180_v60  ;;  %v1715_v2 = vmul.f32 %v3178_v33, %v1711_v55  ;;  %v5590_v33 = vld [vmem:[#allocation44_spill] sm:$0xff]  ;;  %v5591_v60 = vld [vmem:[#allocation22_spill] sm:$0xff] }
 0x4d2   :  { %v1651_v49 = vpop.f32.mrf.mxu0  ;;  %v4643_v55 = vld [vmem:[#allocation3 + $0x158] ss:$24 sps:$4 sm:$0xff]  }
 0x4d3   :  { %v1701_v56 = vadd.f32 %v1699_v4, %v1526_v41  ;;  %v1700_v37 = vmul.f32 %v3176_v44, %v1696_v39 }
 0x4d5   :  { %3181 = vtanh.f32 %v1701_v56  ;;  %v1702_v35 = vadd.f32 %v1700_v37, %v1527_v36  ;;  %v4575_v37 = vld [vmem:[#allocation3 + $0x124] ss:$24 sps:$4 sm:$0xff]   ;;  %v4580_v36 = vld [vmem:[#allocation3 + $0x120] ss:$24 sps:$4 sm:$0xff]  }
 0x4d7   :  { %3183 = vtanh.f32 %v1702_v35  ;;  %v4637_v35 = vld [vmem:[#allocation3 + $0x15c] ss:$24 sps:$4 sm:$0xff]  }
 0x4e2   :  { %v3182_v59 = vpop.eup %3181 }
 0x4e3   :  { %v1707_v28 = vmul.f32 %v3182_v59, %v1705_v62  ;;  %v4646_v62 = vld [vmem:[#allocation3 + $0x12c] ss:$24 sps:$4 sm:$0xff]   ;;  %v4649_v59 = vld [vmem:[#allocation3 + $0x128] ss:$24 sps:$4 sm:$0xff]  }
 0x4e4   :  { %v3184_v61 = vpop.eup %3183  ;;  %5592 = vst [vmem:[#allocation36_spill] sm:$0xff] %v4649_v59 }
 0x4e5   :  { %v1708_v49 = vmul.f32 %v3184_v61, %v1706_v57  ;;  %v4558_v4 = vadd.f32 %v1715_v2, %v1707_v28  ;;  %v4655_v57 = vld [vmem:[#allocation3 + $0xf8] ss:$24 sps:$4 sm:$0xff]   ;;  %v4658_v28 = vld [vmem:[#allocation3 + $0xcc] ss:$24 sps:$4 sm:$0xff]   ;;  %v4661_v2 = vld [vmem:[#allocation3 + $0xc8] ss:$24 sps:$4 sm:$0xff]  }
 0x4e6   :  { %5594 = vst [vmem:[#allocation37_spill] sm:$0xff] %v4655_v57  ;;  %5595 = vst [vmem:[#allocation11_spill] sm:$0xff] %v4658_v28  ;;  %v4664_v61 = vld [vmem:[#allocation3 + $0x9c] ss:$24 sps:$4 sm:$0xff]  }
 0x4e7   :  { %v4560_v39 = vadd.f32 %v1716_v63, %v1708_v49  ;;  %v1725_v44 = vpack.c.bf16 %v4558_v4, %v4558_v4  ;;  %5596 = vst [vmem:[#allocation38_spill] sm:$0xff] %v4661_v2  ;;  %5597 = vst [vmem:[#allocation12_spill] sm:$0xff] %v4664_v61  ;;  %v4667_v49 = vld [vmem:[#allocation3 + $0x98] ss:$24 sps:$4 sm:$0xff]   ;;  %v4670_v63 = vld [vmem:[#allocation3 + $0x6c] ss:$24 sps:$4 sm:$0xff]  }
 0x4e8   :  { %5598 = vst [vmem:[#allocation39_spill] sm:$0xff] %v4667_v49  ;;  %5599 = vst [vmem:[#allocation13_spill] sm:$0xff] %v4670_v63 }
 0x4e9   :  { %v1726_v46 = vpack.c.bf16 %v4560_v39, %v4560_v39  ;;  %v4566_v56 = vrot.slane %v1725_v44, 2  ;;  %v4673_v44 = vld [vmem:[#allocation3 + $0x68] ss:$24 sps:$4 sm:$0xff]  }
 0x4ea   :  { %5600 = vst [vmem:[#allocation40_spill] sm:$0xff] %v4673_v44 }
 0x4eb   :  { %v1730_v41 = vrot.slane %v1726_v46, 2  ;;  %v4676_v46 = vld [vmem:[#allocation3 + $0x3c] ss:$24 sps:$4 sm:$0xff]  }
 0x4ec   :  { %5601 = vst [vmem:[#allocation51_spill] sm:$0xff] %v4676_v46 }
 0x4ed   :  { %1765 = vmatprep.mubr.bf16.mxu1 %v1730_v41  ;;  %1806 = vmatprep.mubr.bf16.mxu0 %v1730_v41 }
 0x4ee   :  { %1766 = vmatmul.mubr.bf16.vlgmr.msra.gmra.mxu1 %v4566_v56  ;;  %1807 = vmatmul.mubr.bf16.vlgmr.msra.gmra.mxu0 %v4566_v56 }
 0x4ef   :  { %1816 = vmatpush1.bf16.msra.mxu1 %v4391_v27  ;;  %1847 = vmatprep.mubr.bf16.mxu1 %v1730_v41  ;;  %v4679_v41 = vld [vmem:[#allocation3 + $0x38] ss:$24 sps:$4 sm:$0xff]  }
 0x4f0   :  { %1817 = vmatprep.subr.bf16.mxu1 %v4394_v42  ;;  %1913 = vmatpush1.bf16.msra.mxu0 %v4572_v53 }
 0x4f1   :  { %1914 = vmatprep.subr.bf16.mxu0 %v4575_v37 }
 0x4f3   :  { %1818 = vmatpush1.bf16.msra.mxu1 %v4399_v16 }
 0x4f4   :  { %1819 = vmatprep.subr.bf16.mxu1 %v4402_v43  ;;  %1915 = vmatpush1.bf16.msra.mxu0 %v4580_v36 }
 0x4f5   :  { %1916 = vmatprep.subr.bf16.mxu0 %v4187_v30  ;;  %v5570_v30 = vld [vmem:[#allocation48_spill] sm:$0xff] }
 0x4f6   :  { %5602 = vst [vmem:[#allocation48_spill] sm:$0xff] %v4679_v41 }
 0x4f7   :  { %1820 = vmatpush1.bf16.msra.mxu1 %v4407_v11 }
 0x4f8   :  { %1821 = vmatprep.subr.bf16.mxu1 %v4410_v51  ;;  %1917 = vmatpush1.bf16.msra.mxu0 %v4192_v9  ;;  %v5571_v9 = vld [vmem:[#allocation49_spill] sm:$0xff] }
 0x4f9   :  { %1918 = vmatprep.subr.bf16.mxu0 %v4195_v24  ;;  %v5572_v24 = vld [vmem:[#allocation50_spill] sm:$0xff] }
 0x4fb   :  { %1822 = vmatpush1.bf16.msra.mxu1 %v4415_v58 }
 0x4fc   :  { %1823 = vmatprep.subr.bf16.mxu1 %v4418_v52  ;;  %1919 = vmatpush1.bf16.msra.mxu0 %v4200_v0  ;;  %v5573_v0 = vld [vmem:[#allocation35_spill] sm:$0xff] }
 0x4fd   :  { %1920 = vmatprep.subr.bf16.mxu0 %v4203_v13  ;;  %v5574_v13 = vld [vmem:[#allocation53_spill] sm:$0xff] }
 0x4ff   :  { %1824 = vmatpush1.bf16.msra.mxu1 %v4423_v40 }
 0x500   :  { %1825 = vmatprep.subr.bf16.mxu1 %v4426_v31  ;;  %1921 = vmatpush1.bf16.msra.mxu0 %v4208_v15  ;;  %v5575_v15 = vld [vmem:[#allocation54_spill] sm:$0xff] }
 0x501   :  { %1922 = vmatprep.subr.bf16.mxu0 %v4211_v1  ;;  %v5576_v1 = vld [vmem:[#allocation14_spill] sm:$0xff] }
 0x503   :  { %1826 = vmatpush1.bf16.msra.mxu1 %v4431_v10 }
 0x504   :  { %1827 = vmatprep.subr.bf16.mxu1 %v4434_v14  ;;  %1923 = vmatpush1.bf16.msra.mxu0 %v4216_v5  ;;  %v5577_v5 = vld [vmem:[#allocation55_spill] sm:$0xff] }
 0x505   :  { %1924 = vmatprep.subr.bf16.mxu0 %v4219_v34  ;;  %v5578_v34 = vld [vmem:[#allocation56_spill] sm:$0xff] }
 0x507   :  { %1828 = vmatpush1.bf16.msra.mxu1 %v4439_v50 }
 0x508   :  { %1829 = vmatprep.subr.bf16.mxu1 %v4442_v8  ;;  %1925 = vmatpush1.bf16.msra.mxu0 %v4224_v19  ;;  %v5579_v19 = vld [vmem:[#allocation41_spill] sm:$0xff] }
 0x509   :  { %1926 = vmatprep.subr.bf16.mxu0 %v4227_v18  ;;  %v5580_v18 = vld [vmem:[#allocation15_spill] sm:$0xff] }
 0x50b   :  { %1830 = vmatpush1.bf16.msra.mxu1 %v4447_v12 }
 0x50c   :  { %1831 = vmatprep.subr.bf16.mxu1 %v4450_v48  ;;  %1927 = vmatpush1.bf16.msra.mxu0 %v4232_v3  ;;  %v5581_v3 = vld [vmem:[#allocation57_spill] sm:$0xff] }
 0x50d   :  { %1928 = vmatprep.subr.bf16.mxu0 %v4235_v20  ;;  %v5582_v20 = vld [vmem:[#allocation58_spill] sm:$0xff] }
 0x50f   :  { %1832 = vmatpush2.bf16.msra.mxu1 %v4455_v26 }
 0x510   :  { %1833 = vmatprep.subr.bf16.mxu1 %v4458_v47  ;;  %1929 = vmatpush2.bf16.msra.mxu0 %v4240_v17  ;;  %v5583_v17 = vld [vmem:[#allocation42_spill] sm:$0xff] }
 0x511   :  { %1930 = vmatprep.subr.bf16.mxu0 %v4243_v22  ;;  %v5584_v22 = vld [vmem:[#allocation16_spill] sm:$0xff] }
 0x513   :  { %1834 = vmatpush2.bf16.msra.mxu1 %v5570_v30 }
 0x514   :  { %1835 = vmatprep.subr.bf16.mxu1 %v5571_v9  ;;  %1931 = vmatpush2.bf16.msra.mxu0 %v4248_v21  ;;  %v5585_v21 = vld [vmem:[#allocation59_spill] sm:$0xff] }
 0x515   :  { %1932 = vmatprep.subr.bf16.mxu0 %v4251_v38  ;;  %v5586_v38 = vld [vmem:[#allocation60_spill] sm:$0xff] }
 0x517   :  { %1836 = vmatpush2.bf16.msra.mxu1 %v5572_v24 }
 0x518   :  { %1837 = vmatprep.subr.bf16.mxu1 %v5573_v0  ;;  %1933 = vmatpush2.bf16.msra.mxu0 %v4256_v25  ;;  %v5587_v25 = vld [vmem:[#allocation43_spill] sm:$0xff] }
 0x519   :  { %1934 = vmatprep.subr.bf16.mxu0 %v4259_v54  ;;  %v5588_v54 = vld [vmem:[#allocation19_spill] sm:$0xff] }
 0x51b   :  { %1838 = vmatpush2.bf16.msra.mxu1 %v5574_v13 }
 0x51c   :  { %1839 = vmatprep.subr.bf16.mxu1 %v5575_v15  ;;  %1935 = vmatpush2.bf16.msra.mxu0 %v4264_v29  ;;  %v5589_v29 = vld [vmem:[#allocation61_spill] sm:$0xff] }
 0x51d   :  { %1936 = vmatprep.subr.bf16.mxu0 %v5576_v1  ;;  %v5604_v1 = vld [vmem:[#allocation25_spill] sm:$0xff] }
 0x51f   :  { %1840 = vmatpush2.bf16.msra.mxu1 %v5577_v5 }
 0x520   :  { %1841 = vmatprep.subr.bf16.mxu1 %v5578_v34  ;;  %1937 = vmatpush2.bf16.msra.mxu0 %v5579_v19  ;;  %v5605_v19 = vld [vmem:[#allocation46_spill] sm:$0xff] }
 0x521   :  { %1938 = vmatprep.subr.bf16.mxu0 %v5580_v18  ;;  %v5606_v18 = vld [vmem:[#allocation17_spill] sm:$0xff] }
 0x523   :  { %1842 = vmatpush2.bf16.msra.mxu1 %v5581_v3 }
 0x524   :  { %1843 = vmatprep.subr.bf16.mxu1 %v5582_v20  ;;  %1939 = vmatpush2.bf16.msra.mxu0 %v5583_v17  ;;  %v5607_v17 = vld [vmem:[#allocation18_spill] sm:$0xff] }
 0x525   :  { %1940 = vmatprep.subr.bf16.mxu0 %v5584_v22  ;;  %v5608_v22 = vld [vmem:[#allocation20_spill] sm:$0xff] }
 0x527   :  { %1844 = vmatpush2.bf16.msra.mxu1 %v5585_v21 }
 0x528   :  { %1845 = vmatprep.subr.bf16.mxu1 %v5586_v38  ;;  %1941 = vmatpush2.bf16.msra.mxu0 %v5587_v25  ;;  %v5609_v25 = vld [vmem:[#allocation21_spill] sm:$0xff] }
 0x529   :  { %1942 = vmatprep.subr.bf16.mxu0 %v5588_v54  ;;  %v5610_v54 = vld [vmem:[#allocation23_spill] sm:$0xff] }
 0x52b   :  { %1846 = vmatpush2.bf16.msra.mxu1 %v5589_v29 }
 0x52c   :  { %1953 = vmatprep.subr.bf16.mxu1 %v4637_v35  ;;  %1943 = vmatpush2.bf16.msra.mxu0 %v5590_v33  ;;  %v5611_v33 = vld [vmem:[#allocation24_spill] sm:$0xff] }
 0x52d   :  { %1994 = vmatprep.subr.bf16.mxu0 %v5591_v60  ;;  %v5612_v60 = vld [vmem:[#allocation26_spill] sm:$0xff] }
 0x52e   :  { %1848 = vmatmul.mubr.bf16.vlgmr.msra.gmra.mxu1 %v4566_v56  ;;  %v5603_v56 = vld [vmem:[#allocation45_spill] sm:$0xff] }
 0x52f   :  { %1954 = vmatpush1.bf16.msra.mxu1 %v4643_v55 }
 0x530   :  { %1955 = vmatprep.subr.bf16.mxu1 %v4646_v62 }
 0x533   :  { %1956 = vmatpush1.bf16.msra.mxu1 %v4649_v59 }
 0x534   :  { %1957 = vmatprep.subr.bf16.mxu1 %v4652_v45 }
 0x537   :  { %1958 = vmatpush1.bf16.msra.mxu1 %v4655_v57 }
 0x538   :  { %1959 = vmatprep.subr.bf16.mxu1 %v4658_v28 }
 0x53b   :  { %1960 = vmatpush1.bf16.msra.mxu1 %v4661_v2  ;;  %v1720_v2 = vld [vmem:[#allocation2 + $0x50] sm:$0xf] }
 0x53c   :  { %1961 = vmatprep.subr.bf16.mxu1 %v4664_v61  ;;  %v1719_v61 = vld [vmem:[#allocation2 + $0x38] sm:$0xf] }
 0x53f   :  { %1962 = vmatpush1.bf16.msra.mxu1 %v4667_v49  ;;  %v5623_v49 = vld [vmem:[#allocation47_spill] sm:$0xff] }
 0x540   :  { %1963 = vmatprep.subr.bf16.mxu1 %v4670_v63  ;;  %v5622_v63 = vld [vmem:[#allocation9_spill] sm:$0xff] }
 0x543   :  { %1964 = vmatpush1.bf16.msra.mxu1 %v4673_v44 }
 0x544   :  { %1965 = vmatprep.subr.bf16.mxu1 %v4676_v46 }
 0x547   :  { %1966 = vmatpush1.bf16.msra.mxu1 %v4679_v41  ;;  %v5613_v41 = vld [vmem:[#allocation27_spill] sm:$0xff] }
 0x548   :  { %1967 = vmatprep.subr.bf16.mxu1 %v5603_v56  ;;  %v5614_v56 = vld [vmem:[#allocation28_spill] sm:$0xff] }
 0x54b   :  { %1968 = vmatpush1.bf16.msra.mxu1 %v5604_v1  ;;  %v5615_v1 = vld [vmem:[#allocation29_spill] sm:$0xff] }
 0x54c   :  { %1969 = vmatprep.subr.bf16.mxu1 %v5605_v19  ;;  %v5616_v19 = vld [vmem:[#allocation30_spill] sm:$0xff] }
 0x54f   :  { %1970 = vmatpush2.bf16.msra.mxu1 %v5606_v18  ;;  %v5617_v18 = vld [vmem:[#allocation31_spill] sm:$0xff] }
 0x550   :  { %1971 = vmatprep.subr.bf16.mxu1 %v5607_v17  ;;  %v5618_v17 = vld [vmem:[#allocation32_spill] sm:$0xff] }
 0x553   :  { %1972 = vmatpush2.bf16.msra.mxu1 %v5608_v22  ;;  %v5619_v22 = vld [vmem:[#allocation33_spill] sm:$0xff] }
 0x554   :  { %1973 = vmatprep.subr.bf16.mxu1 %v5609_v25  ;;  %v5620_v25 = vld [vmem:[#allocation34_spill] sm:$0xff] }
 0x557   :  { %1974 = vmatpush2.bf16.msra.mxu1 %v5610_v54  ;;  %v4700_v54 = vld [vmem:[#allocation3 + $0x154] ss:$24 sps:$4 sm:$0xff]  }
 0x558   :  { %1975 = vmatprep.subr.bf16.mxu1 %v5611_v33  ;;  %5621 = vst [vmem:[#allocation49_spill] sm:$0xff] %v4700_v54 }
 0x55b   :  { %1976 = vmatpush2.bf16.msra.mxu1 %v5612_v60 }
 0x55c   :  { %1977 = vmatprep.subr.bf16.mxu1 %v5613_v41 }
 0x55f   :  { %1978 = vmatpush2.bf16.msra.mxu1 %v5614_v56 }
 0x560   :  { %1979 = vmatprep.subr.bf16.mxu1 %v5615_v1 }
 0x563   :  { %1980 = vmatpush2.bf16.msra.mxu1 %v5616_v19 }
 0x564   :  { %1981 = vmatprep.subr.bf16.mxu1 %v5617_v18 }
 0x567   :  { %1982 = vmatpush2.bf16.msra.mxu1 %v5618_v17 }
 0x568   :  { %1983 = vmatprep.subr.bf16.mxu1 %v5619_v22 }
 0x56b   :  { %1984 = vmatpush2.bf16.msra.mxu1 %v5620_v25 }
 0x56c   :  { %2115 = vmatprep.subr.bf16.mxu1 %v4700_v54 }
 0x5ae   :  { %v1767_v33 = vpop.f32.mrf.mxu1  ;;  %v1808_v41 = vpop.f32.mrf.mxu0 }
 0x5af   :  { %v1768_v18 = vadd.f32 %v1767_v33, %v5622_v63  ;;  %v1809_v54 = vadd.f32 %v1808_v41, %v5484_v23 }
 0x5b0   :  { %v1769_v60 = vpop.f32.mrf.mxu1  ;;  %v1810_v56 = vpop.f32.mrf.mxu0 }
 0x5b1   :  { %v1770_v17 = vadd.f32 %v1769_v60, %v5623_v49  ;;  %v1856_v22 = vadd.f32 %v1768_v18, %v1719_v61  ;;  %v1811_v45 = vadd.f32 %v1810_v56, %v5485_v6 }
 0x5b2   :  { %v1771_v46 = vpop.f32.mrf.mxu1  ;;  %v1812_v1 = vpop.f32.mrf.mxu0 }
 0x5b3   :  { %v1857_v25 = vadd.f32 %v1770_v17, %v1720_v2  ;;  %v2823_v28 = vmul.f32 -1.442695, %v1856_v22  ;;  %v1721_v46 = vld [vmem:[#allocation2 + $0x70] sm:$0xf] }
 0x5b4   :  { %v1772_v44 = vpop.f32.mrf.mxu1  ;;  %v1813_v19 = vpop.f32.mrf.mxu0  ;;  %v1870_v1 = vadd.f32 %v1809_v54, %v1721_v46  ;;  %v1723_v46 = vld [vmem:[#allocation2 + $0xa8] sm:$0xf] }
 0x5b5   :  { %v2824_v57 = vmul.f32 -1.442695, %v1857_v25  ;;  %3185 = vpow2.f32 %v2823_v28  ;;  %v1722_v44 = vld [vmem:[#allocation2 + $0xa0] sm:$0xf] }
 0x5b6   :  { %v1871_v19 = vadd.f32 %v1811_v45, %v1722_v44  ;;  %v2825_v59 = vmul.f32 -1.442695, %v1870_v1 }
 0x5b7   :  { %3187 = vpow2.f32 %v2824_v57 }
 0x5b8   :  { %v2826_v33 = vmul.f32 -1.442695, %v1871_v19  ;;  %3189 = vpow2.f32 %v2825_v59  ;;  %v1724_v19 = vld [vmem:[#allocation2 + $0x68] sm:$0xf] }
 0x5ba   :  { %3191 = vpow2.f32 %v2826_v33 }
 0x5c2   :  { %v3186_v63 = vpop.eup %3185 }
 0x5c3   :  { %v1864_v61 = vadd.f32 1.0, %v3186_v63 }
 0x5c4   :  { %v3188_v60 = vpop.eup %3187 }
 0x5c5   :  { %v1865_v2 = vadd.f32 1.0, %v3188_v60  ;;  %3193 = vrcp.f32 %v1864_v61  ;;  %v3190_v28 = vpop.eup %3189 }
 0x5c6   :  { %v1878_v41 = vadd.f32 1.0, %v3190_v28 }
 0x5c7   :  { %3195 = vrcp.f32 %v1865_v2  ;;  %v3192_v18 = vpop.eup %3191 }
 0x5c8   :  { %v1879_v17 = vadd.f32 1.0, %v3192_v18  ;;  %3197 = vrcp.f32 %v1878_v41  ;;  %v1896_v41 = vrot.slane %v4558_v4, 4  ;;  %v4730_v4 = vld [vmem:[#allocation3 + $0xf4] ss:$24 sps:$4 sm:$0xff]  }
 0x5ca   :  { %3199 = vrcp.f32 %v1879_v17 }
 0x5d2   :  { %v3194_v54 = vpop.eup %3193 }
 0x5d4   :  { %v3196_v59 = vpop.eup %3195 }
 0x5d5   :  { %v3198_v61 = vpop.eup %3197 }
 0x5d6   :  { %v1890_v28 = vsub.f32 1.0, %v3198_v61 }
 0x5d7   :  { %v3200_v2 = vpop.eup %3199 }
 0x5ee   :  { %v1849_v57 = vpop.f32.mrf.mxu1 }
 0x5ef   :  { %v1850_v56 = vadd.f32 %v1849_v57, %v5486_v7  ;;  %v1897_v57 = vrot.slane %v4560_v39, 4  ;;  %v4807_v39 = vld [vmem:[#allocation3 + $0x240] ss:$24 sps:$4 sm:$0xff]  }
 0x5f0   :  { %v1851_v22 = vpop.f32.mrf.mxu1 }
 0x5f1   :  { %v1884_v45 = vmul.f32 %v3194_v54, %v1850_v56  ;;  %v1852_v25 = vadd.f32 %v1851_v22, %v5569_v32  ;;  %v1891_v56 = vsub.f32 1.0, %v3200_v2 }
 0x5f2   :  { %v1853_v63 = vpop.f32.mrf.mxu1 }
 0x5f3   :  { %v1886_v1 = vadd.f32 %v1884_v45, %v1723_v46  ;;  %v1885_v44 = vmul.f32 %v3196_v59, %v1852_v25  ;;  %v1900_v63 = vmul.f32 %v3198_v61, %v1896_v41  ;;  %v1901_v45 = vmul.f32 %v3200_v2, %v1897_v57  ;;  %v5632_v61 = vld [vmem:[#allocation40_spill] sm:$0xff]  ;;  %v5633_v2 = vld [vmem:[#allocation51_spill] sm:$0xff]  ;;  %v4862_v41 = vld [vmem:[#allocation3 + $0x8] ss:$24 sps:$4 sm:$0xff]  }
 0x5f4   :  { %v1854_v33 = vpop.f32.mrf.mxu1  ;;  %5636 = vst [vmem:[#allocation35_spill] sm:$0xff] %v4862_v41  ;;  %v4865_v57 = vld [vmem:[#allocation3 + $0x2dc] ss:$24 sps:$4 sm:$0xff]  }
 0x5f5   :  { %3201 = vtanh.f32 %v1886_v1  ;;  %v1887_v60 = vadd.f32 %v1885_v44, %v1724_v19  ;;  %v5628_v44 = vld [vmem:[#allocation38_spill] sm:$0xff]  ;;  %v5629_v19 = vld [vmem:[#allocation12_spill] sm:$0xff]  ;;  %v5630_v33 = vld [vmem:[#allocation39_spill] sm:$0xff]  ;;  %5637 = vst [vmem:[#allocation53_spill] sm:$0xff] %v4865_v57 }
 0x5f7   :  { %3203 = vtanh.f32 %v1887_v60  ;;  %v5631_v60 = vld [vmem:[#allocation13_spill] sm:$0xff] }
 0x602   :  { %v3202_v18 = vpop.eup %3201 }
 0x603   :  { %v1892_v54 = vmul.f32 %v3202_v18, %v1890_v28  ;;  %v5634_v28 = vld [vmem:[#allocation48_spill] sm:$0xff]  ;;  %v4859_v18 = vld [vmem:[#allocation3 + $0xc] ss:$24 sps:$4 sm:$0xff]  }
 0x604   :  { %v3204_v22 = vpop.eup %3203  ;;  %5635 = vst [vmem:[#allocation50_spill] sm:$0xff] %v4859_v18 }
 0x605   :  { %v1893_v17 = vmul.f32 %v3204_v22, %v1891_v56  ;;  %v4711_v25 = vadd.f32 %v1900_v63, %v1892_v54  ;;  %v4868_v56 = vld [vmem:[#allocation3 + $0x2d8] ss:$24 sps:$4 sm:$0xff]   ;;  %v4871_v54 = vld [vmem:[#allocation3 + $0x2ac] ss:$24 sps:$4 sm:$0xff]   ;;  %v4874_v22 = vld [vmem:[#allocation3 + $0x2a8] ss:$24 sps:$4 sm:$0xff]  }
 0x606   :  { %5638 = vst [vmem:[#allocation54_spill] sm:$0xff] %v4868_v56  ;;  %5639 = vst [vmem:[#allocation14_spill] sm:$0xff] %v4871_v54  ;;  %v4877_v63 = vld [vmem:[#allocation3 + $0x27c] ss:$24 sps:$4 sm:$0xff]  }
 0x607   :  { %v4713_v59 = vadd.f32 %v1901_v45, %v1893_v17  ;;  %v4719_v1 = vpack.c.bf16 %v4711_v25, %v4711_v25  ;;  %5640 = vst [vmem:[#allocation55_spill] sm:$0xff] %v4874_v22  ;;  %5641 = vst [vmem:[#allocation56_spill] sm:$0xff] %v4877_v63  ;;  %v4880_v17 = vld [vmem:[#allocation3 + $0x278] ss:$24 sps:$4 sm:$0xff]   ;;  %v4883_v45 = vld [vmem:[#allocation3 + $0x24c] ss:$24 sps:$4 sm:$0xff]  }
 0x608   :  { %5642 = vst [vmem:[#allocation41_spill] sm:$0xff] %v4880_v17  ;;  %5643 = vst [vmem:[#allocation15_spill] sm:$0xff] %v4883_v45 }
 0x609   :  { %v1911_v46 = vpack.c.bf16 %v4713_v59, %v4713_v59 }
 0x60b   :  { %1944 = vmatprep.mubr.bf16.mxu0 %v1911_v46  ;;  %1985 = vmatprep.mubr.bf16.mxu1 %v1911_v46 }
 0x60c   :  { %1945 = vmatmul.mubr.bf16.vlgmr.msra.gmra.mxu0 %v4719_v1  ;;  %1986 = vmatmul.mubr.bf16.vlgmr.msra.gmra.mxu1 %v4719_v1 }
 0x60d   :  { %1995 = vmatpush1.bf16.msra.mxu0 %v4391_v27  ;;  %2026 = vmatprep.mubr.bf16.mxu0 %v1911_v46  ;;  %v4735_v27 = vld [vmem:[#allocation3 + $0xf0] ss:$24 sps:$4 sm:$0xff]  }
 0x60e   :  { %1996 = vmatprep.subr.bf16.mxu0 %v4394_v42  ;;  %2116 = vmatpush1.bf16.msra.mxu1 %v4572_v53  ;;  %v4738_v42 = vld [vmem:[#allocation3 + $0xc4] ss:$24 sps:$4 sm:$0xff]   ;;  %v4886_v46 = vld [vmem:[#allocation3 + $0x248] ss:$24 sps:$4 sm:$0xff]  }
 0x60f   :  { %2117 = vmatprep.subr.bf16.mxu1 %v4575_v37  ;;  %5644 = vst [vmem:[#allocation57_spill] sm:$0xff] %v4886_v46 }
 0x611   :  { %1997 = vmatpush1.bf16.msra.mxu0 %v4399_v16  ;;  %v4743_v16 = vld [vmem:[#allocation3 + $0xc0] ss:$24 sps:$4 sm:$0xff]  }
 0x612   :  { %1998 = vmatprep.subr.bf16.mxu0 %v4402_v43  ;;  %2118 = vmatpush1.bf16.msra.mxu1 %v4580_v36  ;;  %v4746_v43 = vld [vmem:[#allocation3 + $0x94] ss:$24 sps:$4 sm:$0xff]  }
 0x613   :  { %2119 = vmatprep.subr.bf16.mxu1 %v4730_v4 }
 0x615   :  { %1999 = vmatpush1.bf16.msra.mxu0 %v4407_v11  ;;  %v4751_v11 = vld [vmem:[#allocation3 + $0x90] ss:$24 sps:$4 sm:$0xff]  }
 0x616   :  { %2000 = vmatprep.subr.bf16.mxu0 %v4410_v51  ;;  %2120 = vmatpush1.bf16.msra.mxu1 %v4735_v27  ;;  %v4754_v51 = vld [vmem:[#allocation3 + $0x64] ss:$24 sps:$4 sm:$0xff]  }
 0x617   :  { %2121 = vmatprep.subr.bf16.mxu1 %v4738_v42 }
 0x619   :  { %2001 = vmatpush1.bf16.msra.mxu0 %v4415_v58  ;;  %v4759_v58 = vld [vmem:[#allocation3 + $0x60] ss:$24 sps:$4 sm:$0xff]  }
 0x61a   :  { %2002 = vmatprep.subr.bf16.mxu0 %v4418_v52  ;;  %2122 = vmatpush1.bf16.msra.mxu1 %v4743_v16  ;;  %v4762_v52 = vld [vmem:[#allocation3 + $0x34] ss:$24 sps:$4 sm:$0xff]  }
 0x61b   :  { %2123 = vmatprep.subr.bf16.mxu1 %v4746_v43 }
 0x61d   :  { %2003 = vmatpush1.bf16.msra.mxu0 %v4423_v40  ;;  %v4767_v40 = vld [vmem:[#allocation3 + $0x30] ss:$24 sps:$4 sm:$0xff]  }
 0x61e   :  { %2004 = vmatprep.subr.bf16.mxu0 %v4426_v31  ;;  %2124 = vmatpush1.bf16.msra.mxu1 %v4751_v11  ;;  %v4770_v31 = vld [vmem:[#allocation3 + $0x4] ss:$24 sps:$4 sm:$0xff]  }
 0x61f   :  { %2125 = vmatprep.subr.bf16.mxu1 %v4754_v51 }
 0x621   :  { %2005 = vmatpush1.bf16.msra.mxu0 %v4431_v10  ;;  %v4775_v10 = vld [vmem:[#allocation3] ss:$24 sps:$4 sm:$0xff]  }
 0x622   :  { %2006 = vmatprep.subr.bf16.mxu0 %v4434_v14  ;;  %2126 = vmatpush1.bf16.msra.mxu1 %v4759_v58  ;;  %v4778_v14 = vld [vmem:[#allocation3 + $0x2d4] ss:$24 sps:$4 sm:$0xff]  }
 0x623   :  { %2127 = vmatprep.subr.bf16.mxu1 %v4762_v52 }
 0x625   :  { %2007 = vmatpush1.bf16.msra.mxu0 %v4439_v50  ;;  %v4783_v50 = vld [vmem:[#allocation3 + $0x2d0] ss:$24 sps:$4 sm:$0xff]  }
 0x626   :  { %2008 = vmatprep.subr.bf16.mxu0 %v4442_v8  ;;  %2128 = vmatpush1.bf16.msra.mxu1 %v4767_v40  ;;  %v4786_v8 = vld [vmem:[#allocation3 + $0x2a4] ss:$24 sps:$4 sm:$0xff]  }
 0x627   :  { %2129 = vmatprep.subr.bf16.mxu1 %v4770_v31 }
 0x629   :  { %2009 = vmatpush1.bf16.msra.mxu0 %v4447_v12  ;;  %v4791_v12 = vld [vmem:[#allocation3 + $0x2a0] ss:$24 sps:$4 sm:$0xff]  }
 0x62a   :  { %2010 = vmatprep.subr.bf16.mxu0 %v4450_v48  ;;  %2130 = vmatpush1.bf16.msra.mxu1 %v4775_v10  ;;  %v4794_v48 = vld [vmem:[#allocation3 + $0x274] ss:$24 sps:$4 sm:$0xff]  }
 0x62b   :  { %2131 = vmatprep.subr.bf16.mxu1 %v4778_v14 }
 0x62d   :  { %2011 = vmatpush2.bf16.msra.mxu0 %v4455_v26  ;;  %v4799_v26 = vld [vmem:[#allocation3 + $0x270] ss:$24 sps:$4 sm:$0xff]  }
 0x62e   :  { %2012 = vmatprep.subr.bf16.mxu0 %v4458_v47  ;;  %2132 = vmatpush2.bf16.msra.mxu1 %v4783_v50  ;;  %v4802_v47 = vld [vmem:[#allocation3 + $0x244] ss:$24 sps:$4 sm:$0xff]  }
 0x62f   :  { %2133 = vmatprep.subr.bf16.mxu1 %v4786_v8 }
 0x631   :  { %2013 = vmatpush2.bf16.msra.mxu0 %v5570_v30  ;;  %v4810_v30 = vld [vmem:[#allocation3 + $0x214] ss:$24 sps:$4 sm:$0xff]  }
 0x632   :  { %2014 = vmatprep.subr.bf16.mxu0 %v5571_v9  ;;  %2134 = vmatpush2.bf16.msra.mxu1 %v4791_v12  ;;  %v4815_v9 = vld [vmem:[#allocation3 + $0x210] ss:$24 sps:$4 sm:$0xff]  }
 0x633   :  { %2135 = vmatprep.subr.bf16.mxu1 %v4794_v48 }
 0x635   :  { %2015 = vmatpush2.bf16.msra.mxu0 %v5572_v24  ;;  %v4818_v24 = vld [vmem:[#allocation3 + $0x1e4] ss:$24 sps:$4 sm:$0xff]  }
 0x636   :  { %2016 = vmatprep.subr.bf16.mxu0 %v5573_v0  ;;  %2136 = vmatpush2.bf16.msra.mxu1 %v4799_v26  ;;  %v4823_v0 = vld [vmem:[#allocation3 + $0x1e0] ss:$24 sps:$4 sm:$0xff]  }
 0x637   :  { %2137 = vmatprep.subr.bf16.mxu1 %v4802_v47 }
 0x639   :  { %2017 = vmatpush2.bf16.msra.mxu0 %v5574_v13  ;;  %v4826_v13 = vld [vmem:[#allocation3 + $0x1b4] ss:$24 sps:$4 sm:$0xff]  }
 0x63a   :  { %2018 = vmatprep.subr.bf16.mxu0 %v5575_v15  ;;  %2138 = vmatpush2.bf16.msra.mxu1 %v4807_v39  ;;  %v4831_v15 = vld [vmem:[#allocation3 + $0x1b0] ss:$24 sps:$4 sm:$0xff]  }
 0x63b   :  { %2139 = vmatprep.subr.bf16.mxu1 %v4810_v30 }
 0x63d   :  { %2019 = vmatpush2.bf16.msra.mxu0 %v5577_v5  ;;  %v4834_v5 = vld [vmem:[#allocation3 + $0x184] ss:$24 sps:$4 sm:$0xff]  }
 0x63e   :  { %2020 = vmatprep.subr.bf16.mxu0 %v5578_v34  ;;  %2140 = vmatpush2.bf16.msra.mxu1 %v4815_v9  ;;  %v4839_v34 = vld [vmem:[#allocation3 + $0x180] ss:$24 sps:$4 sm:$0xff]  }
 0x63f   :  { %2141 = vmatprep.subr.bf16.mxu1 %v4818_v24 }
 0x641   :  { %2021 = vmatpush2.bf16.msra.mxu0 %v5581_v3  ;;  %v4842_v3 = vld [vmem:[#allocation3 + $0x164] ss:$24 sps:$4 sm:$0xff]  }
 0x642   :  { %2022 = vmatprep.subr.bf16.mxu0 %v5582_v20  ;;  %2142 = vmatpush2.bf16.msra.mxu1 %v4823_v0  ;;  %v5624_v20 = vld [vmem:[#allocation36_spill] sm:$0xff] }
 0x643   :  { %2143 = vmatprep.subr.bf16.mxu1 %v4826_v13 }
 0x645   :  { %2023 = vmatpush2.bf16.msra.mxu0 %v5585_v21  ;;  %v5625_v21 = vld [vmem:[#allocation10_spill] sm:$0xff] }
 0x646   :  { %2024 = vmatprep.subr.bf16.mxu0 %v5586_v38  ;;  %2144 = vmatpush2.bf16.msra.mxu1 %v4831_v15  ;;  %v5626_v38 = vld [vmem:[#allocation37_spill] sm:$0xff] }
 0x647   :  { %2145 = vmatprep.subr.bf16.mxu1 %v4834_v5 }
 0x649   :  { %2025 = vmatpush2.bf16.msra.mxu0 %v5589_v29  ;;  %v5627_v29 = vld [vmem:[#allocation11_spill] sm:$0xff] }
 0x64a   :  { %2156 = vmatprep.subr.bf16.mxu0 %v4637_v35  ;;  %2146 = vmatpush2.bf16.msra.mxu1 %v4839_v34 }
 0x64b   :  { %2197 = vmatprep.subr.bf16.mxu1 %v4842_v3 }
 0x64c   :  { %2027 = vmatmul.mubr.bf16.vlgmr.msra.gmra.mxu0 %v4719_v1  ;;  %v4889_v1 = vld [vmem:[#allocation3 + $0x21c] ss:$24 sps:$4 sm:$0xff]  }
 0x64d   :  { %2157 = vmatpush1.bf16.msra.mxu0 %v4643_v55  ;;  %5645 = vst [vmem:[#allocation58_spill] sm:$0xff] %v4889_v1 }
 0x64e   :  { %2158 = vmatprep.subr.bf16.mxu0 %v4646_v62 }
 0x651   :  { %2159 = vmatpush1.bf16.msra.mxu0 %v5624_v20 }
 0x652   :  { %2160 = vmatprep.subr.bf16.mxu0 %v5625_v21 }
 0x655   :  { %2161 = vmatpush1.bf16.msra.mxu0 %v5626_v38 }
 0x656   :  { %2162 = vmatprep.subr.bf16.mxu0 %v5627_v29 }
 0x659   :  { %2163 = vmatpush1.bf16.msra.mxu0 %v5628_v44  ;;  %v1905_v44 = vld [vmem:[#allocation2 + $0x50] sm:$0xf0] }
 0x65a   :  { %2164 = vmatprep.subr.bf16.mxu0 %v5629_v19 }
 0x65d   :  { %2165 = vmatpush1.bf16.msra.mxu0 %v5630_v33  ;;  %v1904_v33 = vld [vmem:[#allocation2 + $0x38] sm:$0xf0] }
 0x65e   :  { %2166 = vmatprep.subr.bf16.mxu0 %v5631_v60 }
 0x661   :  { %2167 = vmatpush1.bf16.msra.mxu0 %v5632_v61 }
 0x662   :  { %2168 = vmatprep.subr.bf16.mxu0 %v5633_v2  ;;  %v5654_v2 = vld [vmem:[#allocation9_spill] sm:$0xff] }
 0x665   :  { %2169 = vmatpush1.bf16.msra.mxu0 %v5634_v28 }
 0x666   :  { %2170 = vmatprep.subr.bf16.mxu0 %v4859_v18 }
 0x669   :  { %2171 = vmatpush1.bf16.msra.mxu0 %v4862_v41 }
 0x66a   :  { %2172 = vmatprep.subr.bf16.mxu0 %v4865_v57 }
 0x66d   :  { %2173 = vmatpush2.bf16.msra.mxu0 %v4868_v56 }
 0x66e   :  { %2174 = vmatprep.subr.bf16.mxu0 %v4871_v54 }
 0x671   :  { %2175 = vmatpush2.bf16.msra.mxu0 %v4874_v22  ;;  %v4892_v22 = vld [vmem:[#allocation3 + $0x218] ss:$24 sps:$4 sm:$0xff]  }
 0x672   :  { %2176 = vmatprep.subr.bf16.mxu0 %v4877_v63  ;;  %5646 = vst [vmem:[#allocation42_spill] sm:$0xff] %v4892_v22  ;;  %v4895_v63 = vld [vmem:[#allocation3 + $0x1ec] ss:$24 sps:$4 sm:$0xff]  }
 0x673   :  { %5647 = vst [vmem:[#allocation16_spill] sm:$0xff] %v4895_v63 }
 0x675   :  { %2177 = vmatpush2.bf16.msra.mxu0 %v4880_v17  ;;  %v4898_v17 = vld [vmem:[#allocation3 + $0x1e8] ss:$24 sps:$4 sm:$0xff]  }
 0x676   :  { %2178 = vmatprep.subr.bf16.mxu0 %v4883_v45  ;;  %5648 = vst [vmem:[#allocation59_spill] sm:$0xff] %v4898_v17  ;;  %v4901_v45 = vld [vmem:[#allocation3 + $0x1bc] ss:$24 sps:$4 sm:$0xff]  }
 0x677   :  { %5649 = vst [vmem:[#allocation60_spill] sm:$0xff] %v4901_v45 }
 0x679   :  { %2179 = vmatpush2.bf16.msra.mxu0 %v4886_v46  ;;  %v4904_v46 = vld [vmem:[#allocation3 + $0x1b8] ss:$24 sps:$4 sm:$0xff]  }
 0x67a   :  { %2180 = vmatprep.subr.bf16.mxu0 %v4889_v1  ;;  %5650 = vst [vmem:[#allocation43_spill] sm:$0xff] %v4904_v46  ;;  %v4907_v1 = vld [vmem:[#allocation3 + $0x18c] ss:$24 sps:$4 sm:$0xff]  }
 0x67b   :  { %5651 = vst [vmem:[#allocation19_spill] sm:$0xff] %v4907_v1 }
 0x67d   :  { %2181 = vmatpush2.bf16.msra.mxu0 %v4892_v22  ;;  %v4910_v22 = vld [vmem:[#allocation3 + $0x188] ss:$24 sps:$4 sm:$0xff]  }
 0x67e   :  { %2182 = vmatprep.subr.bf16.mxu0 %v4895_v63  ;;  %5652 = vst [vmem:[#allocation61_spill] sm:$0xff] %v4910_v22  ;;  %v5653_v63 = vld [vmem:[#allocation49_spill] sm:$0xff] }
 0x681   :  { %2183 = vmatpush2.bf16.msra.mxu0 %v4898_v17 }
 0x682   :  { %2184 = vmatprep.subr.bf16.mxu0 %v4901_v45 }
 0x685   :  { %2185 = vmatpush2.bf16.msra.mxu0 %v4904_v46 }
 0x686   :  { %2186 = vmatprep.subr.bf16.mxu0 %v4907_v1 }
 0x689   :  { %2187 = vmatpush2.bf16.msra.mxu0 %v4910_v22 }
 0x68a   :  { %2291 = vmatprep.subr.bf16.mxu0 %v5653_v63 }
 0x6cc   :  { %v1946_v54 = vpop.f32.mrf.mxu0  ;;  %v1987_v17 = vpop.f32.mrf.mxu1 }
 0x6cd   :  { %v1947_v46 = vadd.f32 %v1946_v54, %v5654_v2  ;;  %v1988_v63 = vadd.f32 %v1987_v17, %v5484_v23  ;;  %v1907_v2 = vld [vmem:[#allocation2 + $0xa0] sm:$0xf0] }
 0x6ce   :  { %v1948_v56 = vpop.f32.mrf.mxu0  ;;  %v1989_v57 = vpop.f32.mrf.mxu1 }
 0x6cf   :  { %v1949_v61 = vadd.f32 %v1948_v56, %v5623_v49  ;;  %v2037_v60 = vrot.slane %v1947_v46, 4 }
 0x6d0   :  { %v1950_v41 = vpop.f32.mrf.mxu0  ;;  %v1991_v45 = vpop.f32.mrf.mxu1 }
 0x6d1   :  { %v2038_v1 = vrot.slane %v1949_v61, 4  ;;  %v2041_v19 = vadd.f32 %v2037_v60, %v1904_v33  ;;  %v1990_v41 = vadd.f32 %v1989_v57, %v5485_v6  ;;  %v2057_v45 = vrot.slane %v1988_v63, 4 }
 0x6d2   :  { %v1951_v18 = vpop.f32.mrf.mxu0  ;;  %v1992_v28 = vpop.f32.mrf.mxu1 }
 0x6d3   :  { %v2042_v22 = vadd.f32 %v2038_v1, %v1905_v44  ;;  %v2827_v29 = vmul.f32 -1.442695, %v2041_v19  ;;  %v2058_v28 = vrot.slane %v1990_v41, 4  ;;  %v1906_v18 = vld [vmem:[#allocation2 + $0x70] sm:$0xf0] }
 0x6d4   :  { %v2061_v54 = vadd.f32 %v2057_v45, %v1906_v18 }
 0x6d5   :  { %v2828_v38 = vmul.f32 -1.442695, %v2042_v22  ;;  %3205 = vpow2.f32 %v2827_v29  ;;  %v2062_v56 = vadd.f32 %v2058_v28, %v1907_v2 }
 0x6d6   :  { %v2829_v46 = vmul.f32 -1.442695, %v2061_v54  ;;  %v1908_v54 = vld [vmem:[#allocation2 + $0xa8] sm:$0xf0] }
 0x6d7   :  { %3207 = vpow2.f32 %v2828_v38  ;;  %v2830_v61 = vmul.f32 -1.442695, %v2062_v56 }
 0x6d8   :  { %3209 = vpow2.f32 %v2829_v46 }
 0x6d9   :  { %3211 = vpow2.f32 %v2830_v61 }
 0x6e2   :  { %v3206_v49 = vpop.eup %3205 }
 0x6e3   :  { %v2049_v44 = vadd.f32 1.0, %v3206_v49 }
 0x6e4   :  { %v3208_v33 = vpop.eup %3207 }
 0x6e5   :  { %v2050_v19 = vadd.f32 1.0, %v3208_v33  ;;  %3213 = vrcp.f32 %v2049_v44  ;;  %v3210_v29 = vpop.eup %3209  ;;  %v1909_v33 = vld [vmem:[#allocation2 + $0x68] sm:$0xf0] }
 0x6e6   :  { %v3212_v60 = vpop.eup %3211  ;;  %v2069_v22 = vadd.f32 1.0, %v3210_v29 }
 0x6e7   :  { %3215 = vrcp.f32 %v2050_v19  ;;  %v2070_v1 = vadd.f32 1.0, %v3212_v60  ;;  %v2093_v60 = vrot.slane %v4711_v25, 4 }
 0x6e8   :  { %3217 = vrcp.f32 %v2069_v22  ;;  %v2094_v22 = vrot.slane %v4713_v59, 4  ;;  %v4934_v59 = vld [vmem:[#allocation3 + $0x160] ss:$24 sps:$4 sm:$0xff]  }
 0x6e9   :  { %3219 = vrcp.f32 %v2070_v1 }
 0x6f2   :  { %v3214_v41 = vpop.eup %3213 }
 0x6f4   :  { %v3216_v18 = vpop.eup %3215 }
 0x6f5   :  { %v3218_v19 = vpop.eup %3217 }
 0x6f6   :  { %v3220_v29 = vpop.eup %3219 }
 0x6f7   :  { %v2098_v1 = vmul.f32 %v3220_v29, %v2094_v22  ;;  %v5671_v22 = vld [vmem:[#allocation41_spill] sm:$0xff] }
 0x70c   :  { %v2028_v57 = vpop.f32.mrf.mxu0 }
 0x70d   :  { %v2029_v38 = vadd.f32 %v2028_v57, %v5486_v7  ;;  %v2087_v57 = vsub.f32 1.0, %v3218_v19 }
 0x70e   :  { %v2030_v17 = vpop.f32.mrf.mxu0 }
 0x70f   :  { %v2077_v63 = vrot.slane %v2029_v38, 4  ;;  %v2031_v2 = vadd.f32 %v2030_v17, %v5569_v32  ;;  %v2088_v17 = vsub.f32 1.0, %v3220_v29  ;;  %v5667_v29 = vld [vmem:[#allocation54_spill] sm:$0xff] }
 0x710   :  { %v2032_v45 = vpop.f32.mrf.mxu0 }
 0x711   :  { %v2081_v28 = vmul.f32 %v3214_v41, %v2077_v63  ;;  %v2078_v49 = vrot.slane %v2031_v2, 4  ;;  %v2097_v2 = vmul.f32 %v3218_v19, %v2093_v60  ;;  %v4953_v19 = vld [vmem:[#allocation3 + $0xd4] ss:$24 sps:$4 sm:$0xff]  }
 0x712   :  { %v2033_v56 = vpop.f32.mrf.mxu0  ;;  %v5668_v60 = vld [vmem:[#allocation14_spill] sm:$0xff] }
 0x713   :  { %v2083_v46 = vadd.f32 %v2081_v28, %v1908_v54  ;;  %v2082_v61 = vmul.f32 %v3216_v18, %v2078_v49 }
 0x715   :  { %3221 = vtanh.f32 %v2083_v46  ;;  %v2084_v44 = vadd.f32 %v2082_v61, %v1909_v33  ;;  %v4937_v46 = vld [vmem:[#allocation3 + $0x134] ss:$24 sps:$4 sm:$0xff]   ;;  %v4942_v61 = vld [vmem:[#allocation3 + $0x130] ss:$24 sps:$4 sm:$0xff]   ;;  %v4945_v33 = vld [vmem:[#allocation3 + $0x104] ss:$24 sps:$4 sm:$0xff]  }
 0x717   :  { %3223 = vtanh.f32 %v2084_v44  ;;  %v4950_v44 = vld [vmem:[#allocation3 + $0x100] ss:$24 sps:$4 sm:$0xff]  }
 0x722   :  { %v3222_v38 = vpop.eup %3221 }
 0x723   :  { %v2089_v63 = vmul.f32 %v3222_v38, %v2087_v57  ;;  %v5669_v57 = vld [vmem:[#allocation55_spill] sm:$0xff]  ;;  %v5670_v38 = vld [vmem:[#allocation56_spill] sm:$0xff] }
 0x724   :  { %v3224_v41 = vpop.eup %3223 }
 0x725   :  { %v2090_v45 = vmul.f32 %v3224_v41, %v2088_v17  ;;  %v4922_v28 = vadd.f32 %v2097_v2, %v2089_v63  ;;  %v5672_v17 = vld [vmem:[#allocation15_spill] sm:$0xff]  ;;  %v5673_v63 = vld [vmem:[#allocation57_spill] sm:$0xff]  ;;  %v5674_v2 = vld [vmem:[#allocation58_spill] sm:$0xff] }
 0x726   :  { %v5675_v41 = vld [vmem:[#allocation42_spill] sm:$0xff] }
 0x727   :  { %v4924_v49 = vadd.f32 %v2098_v1, %v2090_v45  ;;  %v2107_v18 = vpack.c.bf16 %v4922_v28, %v4922_v28  ;;  %v5676_v45 = vld [vmem:[#allocation16_spill] sm:$0xff]  ;;  %v5677_v1 = vld [vmem:[#allocation59_spill] sm:$0xff] }
 0x729   :  { %v2108_v25 = vpack.c.bf16 %v4924_v49, %v4924_v49  ;;  %v4930_v56 = vrot.slane %v2107_v18, 2  ;;  %v5678_v18 = vld [vmem:[#allocation60_spill] sm:$0xff] }
 0x72b   :  { %v2112_v54 = vrot.slane %v2108_v25, 2  ;;  %v5679_v25 = vld [vmem:[#allocation43_spill] sm:$0xff] }
 0x72d   :  { %2147 = vmatprep.mubr.bf16.mxu1 %v2112_v54  ;;  %2188 = vmatprep.mubr.bf16.mxu0 %v2112_v54 }
 0x72e   :  { %2148 = vmatmul.mubr.bf16.vlgmr.msra.gmra.mxu1 %v4930_v56  ;;  %2189 = vmatmul.mubr.bf16.vlgmr.msra.gmra.mxu0 %v4930_v56 }
 0x72f   :  { %2198 = vmatpush1.bf16.msra.mxu1 %v4934_v59  ;;  %2229 = vmatprep.mubr.bf16.mxu1 %v2112_v54  ;;  %v5680_v54 = vld [vmem:[#allocation19_spill] sm:$0xff] }
 0x730   :  { %2199 = vmatprep.subr.bf16.mxu1 %v4937_v46  ;;  %2292 = vmatpush1.bf16.msra.mxu0 %v4572_v53  ;;  %v4958_v53 = vld [vmem:[#allocation3 + $0xd0] ss:$24 sps:$4 sm:$0xff]  }
 0x731   :  { %2293 = vmatprep.subr.bf16.mxu0 %v4575_v37  ;;  %v4961_v37 = vld [vmem:[#allocation3 + $0xa4] ss:$24 sps:$4 sm:$0xff]  }
 0x733   :  { %2200 = vmatpush1.bf16.msra.mxu1 %v4942_v61 }
 0x734   :  { %2201 = vmatprep.subr.bf16.mxu1 %v4945_v33  ;;  %2294 = vmatpush1.bf16.msra.mxu0 %v4580_v36  ;;  %v4966_v36 = vld [vmem:[#allocation3 + $0xa0] ss:$24 sps:$4 sm:$0xff]  }
 0x735   :  { %2295 = vmatprep.subr.bf16.mxu0 %v4730_v4  ;;  %v4969_v4 = vld [vmem:[#allocation3 + $0x74] ss:$24 sps:$4 sm:$0xff]  }
 0x737   :  { %2202 = vmatpush1.bf16.msra.mxu1 %v4950_v44 }
 0x738   :  { %2203 = vmatprep.subr.bf16.mxu1 %v4953_v19  ;;  %2296 = vmatpush1.bf16.msra.mxu0 %v4735_v27  ;;  %v4974_v27 = vld [vmem:[#allocation3 + $0x70] ss:$24 sps:$4 sm:$0xff]  }
 0x739   :  { %2297 = vmatprep.subr.bf16.mxu0 %v4738_v42  ;;  %v4977_v42 = vld [vmem:[#allocation3 + $0x44] ss:$24 sps:$4 sm:$0xff]  }
 0x73b   :  { %2204 = vmatpush1.bf16.msra.mxu1 %v4958_v53 }
 0x73c   :  { %2205 = vmatprep.subr.bf16.mxu1 %v4961_v37  ;;  %2298 = vmatpush1.bf16.msra.mxu0 %v4743_v16  ;;  %v4982_v16 = vld [vmem:[#allocation3 + $0x40] ss:$24 sps:$4 sm:$0xff]  }
 0x73d   :  { %2299 = vmatprep.subr.bf16.mxu0 %v4746_v43  ;;  %v4985_v43 = vld [vmem:[#allocation3 + $0x14] ss:$24 sps:$4 sm:$0xff]  }
 0x73f   :  { %2206 = vmatpush1.bf16.msra.mxu1 %v4966_v36 }
 0x740   :  { %2207 = vmatprep.subr.bf16.mxu1 %v4969_v4  ;;  %2300 = vmatpush1.bf16.msra.mxu0 %v4751_v11  ;;  %v4990_v11 = vld [vmem:[#allocation3 + $0x10] ss:$24 sps:$4 sm:$0xff]  }
 0x741   :  { %2301 = vmatprep.subr.bf16.mxu0 %v4754_v51  ;;  %v4993_v51 = vld [vmem:[#allocation3 + $0x2e4] ss:$24 sps:$4 sm:$0xff]  }
 0x743   :  { %2208 = vmatpush1.bf16.msra.mxu1 %v4974_v27 }
 0x744   :  { %2209 = vmatprep.subr.bf16.mxu1 %v4977_v42  ;;  %2302 = vmatpush1.bf16.msra.mxu0 %v4759_v58  ;;  %v4998_v58 = vld [vmem:[#allocation3 + $0x2e0] ss:$24 sps:$4 sm:$0xff]  }
 0x745   :  { %2303 = vmatprep.subr.bf16.mxu0 %v4762_v52  ;;  %v5001_v52 = vld [vmem:[#allocation3 + $0x2b4] ss:$24 sps:$4 sm:$0xff]  }
 0x747   :  { %2210 = vmatpush1.bf16.msra.mxu1 %v4982_v16 }
 0x748   :  { %2211 = vmatprep.subr.bf16.mxu1 %v4985_v43  ;;  %2304 = vmatpush1.bf16.msra.mxu0 %v4767_v40  ;;  %v5006_v40 = vld [vmem:[#allocation3 + $0x2b0] ss:$24 sps:$4 sm:$0xff]  }
 0x749   :  { %2305 = vmatprep.subr.bf16.mxu0 %v4770_v31  ;;  %v5009_v31 = vld [vmem:[#allocation3 + $0x284] ss:$24 sps:$4 sm:$0xff]  }
 0x74b   :  { %2212 = vmatpush1.bf16.msra.mxu1 %v4990_v11 }
 0x74c   :  { %2213 = vmatprep.subr.bf16.mxu1 %v4993_v51  ;;  %2306 = vmatpush1.bf16.msra.mxu0 %v4775_v10  ;;  %v5014_v10 = vld [vmem:[#allocation3 + $0x280] ss:$24 sps:$4 sm:$0xff]  }
 0x74d   :  { %2307 = vmatprep.subr.bf16.mxu0 %v4778_v14  ;;  %v5017_v14 = vld [vmem:[#allocation3 + $0x254] ss:$24 sps:$4 sm:$0xff]  }
 0x74f   :  { %2214 = vmatpush2.bf16.msra.mxu1 %v4998_v58 }
 0x750   :  { %2215 = vmatprep.subr.bf16.mxu1 %v5001_v52  ;;  %2308 = vmatpush2.bf16.msra.mxu0 %v4783_v50  ;;  %v5022_v50 = vld [vmem:[#allocation3 + $0x250] ss:$24 sps:$4 sm:$0xff]  }
 0x751   :  { %2309 = vmatprep.subr.bf16.mxu0 %v4786_v8  ;;  %v5025_v8 = vld [vmem:[#allocation3 + $0x224] ss:$24 sps:$4 sm:$0xff]  }
 0x753   :  { %2216 = vmatpush2.bf16.msra.mxu1 %v5006_v40 }
 0x754   :  { %2217 = vmatprep.subr.bf16.mxu1 %v5009_v31  ;;  %2310 = vmatpush2.bf16.msra.mxu0 %v4791_v12  ;;  %v5030_v12 = vld [vmem:[#allocation3 + $0x220] ss:$24 sps:$4 sm:$0xff]  }
 0x755   :  { %2311 = vmatprep.subr.bf16.mxu0 %v4794_v48  ;;  %v5033_v48 = vld [vmem:[#allocation3 + $0x1f4] ss:$24 sps:$4 sm:$0xff]  }
 0x757   :  { %2218 = vmatpush2.bf16.msra.mxu1 %v5014_v10 }
 0x758   :  { %2219 = vmatprep.subr.bf16.mxu1 %v5017_v14  ;;  %2312 = vmatpush2.bf16.msra.mxu0 %v4799_v26  ;;  %v5038_v26 = vld [vmem:[#allocation3 + $0x1f0] ss:$24 sps:$4 sm:$0xff]  }
 0x759   :  { %2313 = vmatprep.subr.bf16.mxu0 %v4802_v47  ;;  %v5041_v47 = vld [vmem:[#allocation3 + $0x1c4] ss:$24 sps:$4 sm:$0xff]  }
 0x75b   :  { %2220 = vmatpush2.bf16.msra.mxu1 %v5022_v50 }
 0x75c   :  { %2221 = vmatprep.subr.bf16.mxu1 %v5025_v8  ;;  %2314 = vmatpush2.bf16.msra.mxu0 %v4807_v39  ;;  %v5046_v39 = vld [vmem:[#allocation3 + $0x1c0] ss:$24 sps:$4 sm:$0xff]  }
 0x75d   :  { %2315 = vmatprep.subr.bf16.mxu0 %v4810_v30  ;;  %v5049_v30 = vld [vmem:[#allocation3 + $0x194] ss:$24 sps:$4 sm:$0xff]  }
 0x75f   :  { %2222 = vmatpush2.bf16.msra.mxu1 %v5030_v12 }
 0x760   :  { %2223 = vmatprep.subr.bf16.mxu1 %v5033_v48  ;;  %2316 = vmatpush2.bf16.msra.mxu0 %v4815_v9  ;;  %v5054_v9 = vld [vmem:[#allocation3 + $0x190] ss:$24 sps:$4 sm:$0xff]  }
 0x761   :  { %2317 = vmatprep.subr.bf16.mxu0 %v4818_v24  ;;  %v5655_v24 = vld [vmem:[#allocation37_spill] sm:$0xff] }
 0x763   :  { %2224 = vmatpush2.bf16.msra.mxu1 %v5038_v26 }
 0x764   :  { %2225 = vmatprep.subr.bf16.mxu1 %v5041_v47  ;;  %2318 = vmatpush2.bf16.msra.mxu0 %v4823_v0  ;;  %v5656_v0 = vld [vmem:[#allocation11_spill] sm:$0xff] }
 0x765   :  { %2319 = vmatprep.subr.bf16.mxu0 %v4826_v13  ;;  %v5657_v13 = vld [vmem:[#allocation38_spill] sm:$0xff] }
 0x767   :  { %2226 = vmatpush2.bf16.msra.mxu1 %v5046_v39 }
 0x768   :  { %2227 = vmatprep.subr.bf16.mxu1 %v5049_v30  ;;  %2320 = vmatpush2.bf16.msra.mxu0 %v4831_v15  ;;  %v5659_v15 = vld [vmem:[#allocation39_spill] sm:$0xff] }
 0x769   :  { %2321 = vmatprep.subr.bf16.mxu0 %v4834_v5  ;;  %v5660_v5 = vld [vmem:[#allocation13_spill] sm:$0xff] }
 0x76b   :  { %2228 = vmatpush2.bf16.msra.mxu1 %v5054_v9 }
 0x76c   :  { %2331 = vmatprep.subr.bf16.mxu1 %v4637_v35  ;;  %2322 = vmatpush2.bf16.msra.mxu0 %v4839_v34  ;;  %v5658_v35 = vld [vmem:[#allocation12_spill] sm:$0xff] }
 0x76d   :  { %2371 = vmatprep.subr.bf16.mxu0 %v4842_v3  ;;  %v5661_v34 = vld [vmem:[#allocation40_spill] sm:$0xff]  ;;  %v5664_v3 = vld [vmem:[#allocation50_spill] sm:$0xff] }
 0x76e   :  { %2230 = vmatmul.mubr.bf16.vlgmr.msra.gmra.mxu1 %v4930_v56  ;;  %v5681_v56 = vld [vmem:[#allocation61_spill] sm:$0xff] }
 0x76f   :  { %2332 = vmatpush1.bf16.msra.mxu1 %v4643_v55  ;;  %v5662_v55 = vld [vmem:[#allocation51_spill] sm:$0xff] }
 0x770   :  { %2333 = vmatprep.subr.bf16.mxu1 %v4646_v62  ;;  %v5663_v62 = vld [vmem:[#allocation48_spill] sm:$0xff] }
 0x773   :  { %2334 = vmatpush1.bf16.msra.mxu1 %v5624_v20  ;;  %v5665_v20 = vld [vmem:[#allocation35_spill] sm:$0xff] }
 0x774   :  { %2335 = vmatprep.subr.bf16.mxu1 %v5625_v21  ;;  %v5666_v21 = vld [vmem:[#allocation53_spill] sm:$0xff] }
 0x777   :  { %2336 = vmatpush1.bf16.msra.mxu1 %v5655_v24 }
 0x778   :  { %2337 = vmatprep.subr.bf16.mxu1 %v5656_v0 }
 0x77b   :  { %2338 = vmatpush1.bf16.msra.mxu1 %v5657_v13 }
 0x77c   :  { %2339 = vmatprep.subr.bf16.mxu1 %v5658_v35 }
 0x77f   :  { %2340 = vmatpush1.bf16.msra.mxu1 %v5659_v15 }
 0x780   :  { %2341 = vmatprep.subr.bf16.mxu1 %v5660_v5 }
 0x783   :  { %2342 = vmatpush1.bf16.msra.mxu1 %v5661_v34 }
 0x784   :  { %2343 = vmatprep.subr.bf16.mxu1 %v5662_v55 }
 0x787   :  { %2344 = vmatpush1.bf16.msra.mxu1 %v5663_v62  ;;  %v5682_v62 = vld [vmem:[#allocation9_spill] sm:$0xff] }
 0x788   :  { %2345 = vmatprep.subr.bf16.mxu1 %v5664_v3 }
 0x78b   :  { %2346 = vmatpush1.bf16.msra.mxu1 %v5665_v20  ;;  %v5683_v20 = vld [vmem:[#allocation47_spill] sm:$0xff] }
 0x78c   :  { %2347 = vmatprep.subr.bf16.mxu1 %v5666_v21 }
 0x78f   :  { %2348 = vmatpush2.bf16.msra.mxu1 %v5667_v29  ;;  %v2101_v29 = vld [vmem:[#allocation2 + $0x30] sm:$0xf] }
 0x790   :  { %2349 = vmatprep.subr.bf16.mxu1 %v5668_v60 }
 0x793   :  { %2350 = vmatpush2.bf16.msra.mxu1 %v5669_v57  ;;  %v2102_v57 = vld [vmem:[#allocation2 + $0x58] sm:$0xf] }
 0x794   :  { %2351 = vmatprep.subr.bf16.mxu1 %v5670_v38 }
 0x797   :  { %2352 = vmatpush2.bf16.msra.mxu1 %v5671_v22 }
 0x798   :  { %2353 = vmatprep.subr.bf16.mxu1 %v5672_v17 }
 0x79b   :  { %2354 = vmatpush2.bf16.msra.mxu1 %v5673_v63 }
 0x79c   :  { %2355 = vmatprep.subr.bf16.mxu1 %v5674_v2 }
 0x79f   :  { %2356 = vmatpush2.bf16.msra.mxu1 %v5675_v41  ;;  %v2103_v41 = vld [vmem:[#allocation2 + $0x80] sm:$0xf] }
 0x7a0   :  { %2357 = vmatprep.subr.bf16.mxu1 %v5676_v45 }
 0x7a3   :  { %2358 = vmatpush2.bf16.msra.mxu1 %v5677_v1  ;;  %v2104_v1 = vld [vmem:[#allocation2 + $0xb8] sm:$0xf] }
 0x7a4   :  { %2359 = vmatprep.subr.bf16.mxu1 %v5678_v18 }
 0x7a7   :  { %2360 = vmatpush2.bf16.msra.mxu1 %v5679_v25 }
 0x7a8   :  { %2361 = vmatprep.subr.bf16.mxu1 %v5680_v54 }
 0x7ab   :  { %2362 = vmatpush2.bf16.msra.mxu1 %v5681_v56 }
 0x7ee   :  { %v2149_v24 = vpop.f32.mrf.mxu1  ;;  %v2190_v0 = vpop.f32.mrf.mxu0 }
 0x7ef   :  { %v2150_v3 = vadd.f32 %v2149_v24, %v5682_v62  ;;  %v2191_v63 = vadd.f32 %v2190_v0, %v5484_v23 }
 0x7f0   :  { %v2151_v13 = vpop.f32.mrf.mxu1  ;;  %v2192_v35 = vpop.f32.mrf.mxu0 }
 0x7f1   :  { %v2152_v21 = vadd.f32 %v2151_v13, %v5683_v20  ;;  %v2238_v60 = vadd.f32 %v2150_v3, %v2101_v29  ;;  %v2193_v2 = vadd.f32 %v2192_v35, %v5485_v6  ;;  %v2252_v45 = vadd.f32 %v2191_v63, %v2103_v41  ;;  %v2106_v63 = vld [vmem:[#allocation2 + $0x8] sm:$0xf] }
 0x7f2   :  { %v2153_v15 = vpop.f32.mrf.mxu1  ;;  %v2194_v5 = vpop.f32.mrf.mxu0 }
 0x7f3   :  { %v2239_v38 = vadd.f32 %v2152_v21, %v2102_v57  ;;  %v2831_v22 = vmul.f32 -1.442695, %v2238_v60  ;;  %v2253_v18 = vadd.f32 %v2193_v2, %v2104_v1  ;;  %v2833_v25 = vmul.f32 -1.442695, %v2252_v45  ;;  %v2105_v57 = vld [vmem:[#allocation2 + $0x20] sm:$0xf] }
 0x7f4   :  { %v2154_v34 = vpop.f32.mrf.mxu1  ;;  %v2195_v55 = vpop.f32.mrf.mxu0 }
 0x7f5   :  { %v2832_v17 = vmul.f32 -1.442695, %v2239_v38  ;;  %3225 = vpow2.f32 %v2831_v22  ;;  %v2834_v54 = vmul.f32 -1.442695, %v2253_v18 }
 0x7f7   :  { %3227 = vpow2.f32 %v2832_v17 }
 0x7f8   :  { %3229 = vpow2.f32 %v2833_v25 }
 0x7f9   :  { %3231 = vpow2.f32 %v2834_v54  ;;  %v2278_v54 = vrot.slane %v4922_v28, 4  ;;  %v5684_v28 = vld [vmem:[#allocation52_spill] sm:$0xff] }
 0x802   :  { %v3226_v56 = vpop.eup %3225 }
 0x803   :  { %v2246_v13 = vadd.f32 1.0, %v3226_v56 }
 0x804   :  { %v3228_v24 = vpop.eup %3227 }
 0x805   :  { %v2247_v15 = vadd.f32 1.0, %v3228_v24  ;;  %3233 = vrcp.f32 %v2246_v13  ;;  %v3230_v5 = vpop.eup %3229 }
 0x806   :  { %v3232_v34 = vpop.eup %3231  ;;  %v2260_v0 = vadd.f32 1.0, %v3230_v5 }
 0x807   :  { %3235 = vrcp.f32 %v2247_v15  ;;  %v2261_v3 = vadd.f32 1.0, %v3232_v34 }
 0x808   :  { %3237 = vrcp.f32 %v2260_v0 }
 0x809   :  { %3239 = vrcp.f32 %v2261_v3 }
 0x812   :  { %v3234_v35 = vpop.eup %3233 }
 0x814   :  { %v3236_v60 = vpop.eup %3235 }
 0x815   :  { %v3238_v45 = vpop.eup %3237 }
 0x816   :  { %v3240_v1 = vpop.eup %3239  ;;  %v2272_v18 = vsub.f32 1.0, %v3238_v45  ;;  %v2282_v15 = vmul.f32 %v3238_v45, %v2278_v54  ;;  %v2286_v45 = vld [vmem:[#allocation2 + $0x30] sm:$0xf0] }
 0x817   :  { %v2273_v56 = vsub.f32 1.0, %v3240_v1 }
 0x82e   :  { %v2231_v55 = vpop.f32.mrf.mxu1 }
 0x82f   :  { %v2232_v6 = vadd.f32 %v2231_v55, %v5486_v7 }
 0x830   :  { %v2233_v20 = vpop.f32.mrf.mxu1 }
 0x831   :  { %v2266_v21 = vmul.f32 %v3234_v35, %v2232_v6  ;;  %v2234_v29 = vadd.f32 %v2233_v20, %v5569_v32  ;;  %v2279_v32 = vrot.slane %v4924_v49, 4  ;;  %v5685_v35 = vrot.slane %v5684_v28, 4  ;;  %v2475_v49 = vld [vmem:[#allocation5 + $0xf8] sm:$0xff] }
 0x832   :  { %v2235_v38 = vpop.f32.mrf.mxu1  ;;  %2841 = vmatprep.subr.mxu1 %v2475_v49 }
 0x833   :  { %v2268_v22 = vadd.f32 %v2266_v21, %v2105_v57  ;;  %v2267_v17 = vmul.f32 %v3236_v60, %v2234_v29  ;;  %v2283_v34 = vmul.f32 %v3240_v1, %v2279_v32  ;;  %v2502_v20 = vrot.slane %v5685_v35, 4 }
 0x834   :  { %v2236_v2 = vpop.f32.mrf.mxu1 }
 0x835   :  { %3241 = vtanh.f32 %v2268_v22  ;;  %v2269_v41 = vadd.f32 %v2267_v17, %v2106_v63 }
 0x837   :  { %3243 = vtanh.f32 %v2269_v41 }
 0x842   :  { %v3242_v25 = vpop.eup %3241 }
 0x843   :  { %v2274_v24 = vmul.f32 %v3242_v25, %v2272_v18 }
 0x844   :  { %v3244_v13 = vpop.eup %3243 }
 0x845   :  { %v2275_v5 = vmul.f32 %v3244_v13, %v2273_v56  ;;  %v5100_v0 = vadd.f32 %v2282_v15, %v2274_v24  ;;  %v2287_v56 = vld [vmem:[#allocation2 + $0x80] sm:$0xf0] }
 0x847   :  { %v2285_v55 = vadd.f32 %v2283_v34, %v2275_v5  ;;  %v2289_v6 = vpack.c.bf16 %v5100_v0, %v5100_v0 }
 0x849   :  { %v2290_v3 = vpack.c.bf16 %v2285_v55, %v2285_v55 }
 0x84b   :  { %2323 = vmatprep.mubr.bf16.mxu0 %v2290_v3  ;;  %2363 = vmatprep.mubr.bf16.mxu1 %v2290_v3 }
 0x84c   :  { %2324 = vmatmul.mubr.bf16.vlgmr.msra.gmra.mxu0 %v2289_v6  ;;  %2364 = vmatmul.mubr.bf16.vlgmr.msra.gmra.mxu1 %v2289_v6 }
 0x84d   :  { %2372 = vmatpush1.bf16.msra.mxu0 %v4934_v59  ;;  %2403 = vmatprep.mubr.bf16.mxu0 %v2290_v3  ;;  %v2459_v59 = vld [vmem:[#allocation5 + $0x78] sm:$0xff] }
 0x84e   :  { %2569 = vmatprep.mubr.f32.mxu1 %v2502_v20  ;;  %2373 = vmatprep.subr.bf16.mxu0 %v4937_v46  ;;  %v2474_v46 = vld [vmem:[#allocation5 + $0xf0] sm:$0xff]  ;;  %v2288_v20 = vld [vmem:[#allocation2 + $0x20] sm:$0xf0] }
 0x84f   :  { %2842 = vmatpush3.msra.mxu1 %v2459_v59 }
 0x850   :  { %2843 = vmatprep.subr.mxu1 %v2474_v46 }
 0x851   :  { %2374 = vmatpush1.bf16.msra.mxu0 %v4942_v61  ;;  %v2458_v61 = vld [vmem:[#allocation5 + $0x70] sm:$0xff] }
 0x852   :  { %2375 = vmatprep.subr.bf16.mxu0 %v4945_v33  ;;  %2844 = vmatpush3.msra.mxu1 %v2458_v61  ;;  %v2473_v33 = vld [vmem:[#allocation5 + $0xe8] sm:$0xff]  ;;  %v2440_v61 = vrot.slane %v5100_v0, 4  ;;  %v2487_v0 = vld [vmem:[#allocation5 + $0x158] sm:$0xff] }
 0x853   :  { %2845 = vmatprep.subr.mxu1 %v2473_v33 }
 0x855   :  { %2376 = vmatpush1.bf16.msra.mxu0 %v4950_v44  ;;  %v2457_v44 = vld [vmem:[#allocation5 + $0x68] sm:$0xff] }
 0x856   :  { %2377 = vmatprep.subr.bf16.mxu0 %v4953_v19  ;;  %2846 = vmatpush3.msra.mxu1 %v2457_v44  ;;  %v2472_v19 = vld [vmem:[#allocation5 + $0xe0] sm:$0xff] }
 0x857   :  { %2847 = vmatprep.subr.mxu1 %v2472_v19 }
 0x859   :  { %2378 = vmatpush1.bf16.msra.mxu0 %v4958_v53  ;;  %v2456_v53 = vld [vmem:[#allocation5 + $0x60] sm:$0xff] }
 0x85a   :  { %2379 = vmatprep.subr.bf16.mxu0 %v4961_v37  ;;  %2848 = vmatpush3.msra.mxu1 %v2456_v53  ;;  %v2471_v37 = vld [vmem:[#allocation5 + $0xd8] sm:$0xff] }
 0x85b   :  { %2849 = vmatprep.subr.mxu1 %v2471_v37 }
 0x85d   :  { %2380 = vmatpush1.bf16.msra.mxu0 %v4966_v36  ;;  %v2455_v36 = vld [vmem:[#allocation5 + $0x58] sm:$0xff] }
 0x85e   :  { %2381 = vmatprep.subr.bf16.mxu0 %v4969_v4  ;;  %2850 = vmatpush3.msra.mxu1 %v2455_v36  ;;  %v2470_v4 = vld [vmem:[#allocation5 + $0xd0] sm:$0xff] }
 0x85f   :  { %2851 = vmatprep.subr.mxu1 %v2470_v4  ;;  %v2491_v4 = vld [vmem:[#allocation5 + $0x178] sm:$0xff] }
 0x861   :  { %2382 = vmatpush1.bf16.msra.mxu0 %v4974_v27  ;;  %v2454_v27 = vld [vmem:[#allocation5 + $0x50] sm:$0xff] }
 0x862   :  { %2383 = vmatprep.subr.bf16.mxu0 %v4977_v42  ;;  %2852 = vmatpush3.msra.mxu1 %v2454_v27  ;;  %v2469_v42 = vld [vmem:[#allocation5 + $0xc8] sm:$0xff]  ;;  %v2490_v27 = vld [vmem:[#allocation5 + $0x170] sm:$0xff] }
 0x863   :  { %2853 = vmatprep.subr.mxu1 %v2469_v42  ;;  %v2489_v42 = vld [vmem:[#allocation5 + $0x168] sm:$0xff] }
 0x865   :  { %2384 = vmatpush1.bf16.msra.mxu0 %v4982_v16  ;;  %v2453_v16 = vld [vmem:[#allocation5 + $0x48] sm:$0xff] }
 0x866   :  { %2385 = vmatprep.subr.bf16.mxu0 %v4985_v43  ;;  %v2468_v43 = vld [vmem:[#allocation5 + $0xc0] sm:$0xff]  ;;  %2854 = vmatpush3.msra.mxu1 %v2453_v16 }
 0x867   :  { %2855 = vmatprep.subr.mxu1 %v2468_v43  ;;  %v2488_v16 = vld [vmem:[#allocation5 + $0x160] sm:$0xff]  ;;  %v2486_v43 = vld [vmem:[#allocation5 + $0x150] sm:$0xff] }
 0x869   :  { %2386 = vmatpush1.bf16.msra.mxu0 %v4990_v11  ;;  %v2452_v11 = vld [vmem:[#allocation5 + $0x40] sm:$0xff] }
 0x86a   :  { %2387 = vmatprep.subr.bf16.mxu0 %v4993_v51  ;;  %v2467_v51 = vld [vmem:[#allocation5 + $0xb8] sm:$0xff]  ;;  %2856 = vmatpush3.msra.mxu1 %v2452_v11  ;;  %v2485_v11 = vld [vmem:[#allocation5 + $0x148] sm:$0xff] }
 0x86b   :  { %2857 = vmatprep.subr.mxu1 %v2467_v51  ;;  %v2484_v51 = vld [vmem:[#allocation5 + $0x140] sm:$0xff] }
 0x86d   :  { %2388 = vmatpush2.bf16.msra.mxu0 %v4998_v58  ;;  %v2451_v58 = vld [vmem:[#allocation5 + $0x38] sm:$0xff] }
 0x86e   :  { %2389 = vmatprep.subr.bf16.mxu0 %v5001_v52  ;;  %v2466_v52 = vld [vmem:[#allocation5 + $0xb0] sm:$0xff]  ;;  %2858 = vmatpush3.msra.mxu1 %v2451_v58  ;;  %v2483_v58 = vld [vmem:[#allocation5 + $0x138] sm:$0xff] }
 0x86f   :  { %2859 = vmatprep.subr.mxu1 %v2466_v52  ;;  %v2482_v52 = vld [vmem:[#allocation5 + $0x130] sm:$0xff] }
 0x871   :  { %2390 = vmatpush2.bf16.msra.mxu0 %v5006_v40  ;;  %v2450_v40 = vld [vmem:[#allocation5 + $0x30] sm:$0xff] }
 0x872   :  { %2391 = vmatprep.subr.bf16.mxu0 %v5009_v31  ;;  %v2465_v31 = vld [vmem:[#allocation5 + $0xa8] sm:$0xff]  ;;  %2860 = vmatpush3.msra.mxu1 %v2450_v40 }
 0x873   :  { %2861 = vmatprep.subr.mxu1 %v2465_v31  ;;  %v2481_v40 = vld [vmem:[#allocation5 + $0x128] sm:$0xff]  ;;  %v2480_v31 = vld [vmem:[#allocation5 + $0x120] sm:$0xff] }
 0x875   :  { %2392 = vmatpush2.bf16.msra.mxu0 %v5014_v10  ;;  %v2449_v10 = vld [vmem:[#allocation5 + $0x28] sm:$0xff] }
 0x876   :  { %2393 = vmatprep.subr.bf16.mxu0 %v5017_v14  ;;  %v2464_v14 = vld [vmem:[#allocation5 + $0xa0] sm:$0xff]  ;;  %2862 = vmatpush3.msra.mxu1 %v2449_v10  ;;  %v2479_v10 = vld [vmem:[#allocation5 + $0x118] sm:$0xff] }
 0x877   :  { %2863 = vmatprep.subr.mxu1 %v2464_v14  ;;  %v2478_v14 = vld [vmem:[#allocation5 + $0x110] sm:$0xff] }
 0x879   :  { %2394 = vmatpush2.bf16.msra.mxu0 %v5022_v50  ;;  %v2448_v50 = vld [vmem:[#allocation5 + $0x20] sm:$0xff] }
 0x87a   :  { %2395 = vmatprep.subr.bf16.mxu0 %v5025_v8  ;;  %v2463_v8 = vld [vmem:[#allocation5 + $0x98] sm:$0xff]  ;;  %2864 = vmatpush3.msra.mxu1 %v2448_v50  ;;  %v2477_v50 = vld [vmem:[#allocation5 + $0x108] sm:$0xff] }
 0x87b   :  { %2865 = vmatprep.subr.mxu1 %v2463_v8  ;;  %v2476_v8 = vld [vmem:[#allocation5 + $0x100] sm:$0xff] }
 0x87d   :  { %2396 = vmatpush2.bf16.msra.mxu0 %v5030_v12  ;;  %v2447_v12 = vld [vmem:[#allocation5 + $0x18] sm:$0xff] }
 0x87e   :  { %2397 = vmatprep.subr.bf16.mxu0 %v5033_v48  ;;  %v2462_v48 = vld [vmem:[#allocation5 + $0x90] sm:$0xff]  ;;  %2866 = vmatpush3.msra.mxu1 %v2447_v12 }
 0x87f   :  { %2867 = vmatprep.subr.mxu1 %v2462_v48  ;;  %v2837_v48 = vld [vmem:[%s5161_s5] ss:$0 sm:$0xff] }
 0x881   :  { %2398 = vmatpush2.bf16.msra.mxu0 %v5038_v26  ;;  %v2446_v26 = vld [vmem:[#allocation5 + $0x10] sm:$0xff] }
 0x882   :  { %2399 = vmatprep.subr.bf16.mxu0 %v5041_v47  ;;  %v2461_v47 = vld [vmem:[#allocation5 + $0x88] sm:$0xff]  ;;  %2868 = vmatpush3.msra.mxu1 %v2446_v26 }
 0x883   :  { %2869 = vmatprep.subr.mxu1 %v2461_v47 }
 0x885   :  { %2400 = vmatpush2.bf16.msra.mxu0 %v5046_v39  ;;  %v2445_v39 = vld [vmem:[#allocation5 + $0x8] sm:$0xff] }
 0x886   :  { %2401 = vmatprep.subr.bf16.mxu0 %v5049_v30  ;;  %v2460_v30 = vld [vmem:[#allocation5 + $0x80] sm:$0xff]  ;;  %2870 = vmatpush3.msra.mxu1 %v2445_v39 }
 0x887   :  { %2871 = vmatprep.subr.mxu1 %v2460_v30 }
 0x889   :  { %2402 = vmatpush2.bf16.msra.mxu0 %v5054_v9  ;;  %v2444_v9 = vld [vmem:[#allocation5] sm:$0xff] }
 0x88a   :  { %2872 = vmatpush3.msra.mxu1 %v2444_v9 }
 0x88c   :  { %2404 = vmatmul.mubr.bf16.vlgmr.msra.gmra.mxu0 %v2289_v6 }
 0x90c   :  { %v2325_v21 = vpop.f32.mrf.mxu0  ;;  %v2365_v29 = vpop.f32.mrf.mxu1 }
 0x90d   :  { %v2326_v2 = vadd.f32 %v2325_v21, %v5682_v62  ;;  %v2366_v25 = vadd.f32 %v2365_v29, %v5484_v23 }
 0x90e   :  { %v2327_v60 = vpop.f32.mrf.mxu0  ;;  %v2367_v57 = vpop.f32.mrf.mxu1 }
 0x90f   :  { %v2412_v41 = vrot.slane %v2326_v2, 4  ;;  %v2422_v54 = vrot.slane %v2366_v25, 4 }
 0x910   :  { %v2328_v38 = vpop.f32.mrf.mxu0  ;;  %v2368_v22 = vpop.f32.mrf.mxu1 }
 0x911   :  { %v2414_v1 = vadd.f32 %v2412_v41, %v2286_v45  ;;  %v2424_v32 = vadd.f32 %v2422_v54, %v2287_v56 }
 0x912   :  { %v2329_v17 = vpop.f32.mrf.mxu0  ;;  %v2369_v63 = vpop.f32.mrf.mxu1 }
 0x913   :  { %v2835_v18 = vmul.f32 -1.442695, %v2414_v1  ;;  %v2836_v24 = vmul.f32 -1.442695, %v2424_v32 }
 0x915   :  { %3245 = vpow2.f32 %v2835_v18 }
 0x916   :  { %3247 = vpow2.f32 %v2836_v24 }
 0x922   :  { %v3246_v13 = vpop.eup %3245 }
 0x923   :  { %v2418_v15 = vadd.f32 1.0, %v3246_v13  ;;  %v3248_v5 = vpop.eup %3247  ;;  %v2838_v13 = vld [vmem:[%s5161_s5 + $0x1] ss:$0 sm:$0xff] }
 0x924   :  { %v2428_v55 = vadd.f32 1.0, %v3248_v5  ;;  %v2839_v5 = vld [vmem:[%s5161_s5 + $0x2] ss:$0 sm:$0xff] }
 0x925   :  { %3249 = vrcp.f32 %v2418_v15 }
 0x926   :  { %3251 = vrcp.f32 %v2428_v55 }
 0x932   :  { %v3250_v28 = vpop.eup %3249 }
 0x933   :  { %v3252_v46 = vpop.eup %3251 }
 0x934   :  { %v2437_v33 = vsub.f32 1.0, %v3252_v46  ;;  %v2442_v53 = vmul.f32 %v3252_v46, %v2440_v61 }
 0x94c   :  { %v2405_v34 = vpop.f32.mrf.mxu0 }
 0x94d   :  { %v2406_v62 = vadd.f32 %v2405_v34, %v5486_v7  ;;  %v3500_v7 = vmov 0.0  }
 0x94e   :  { %v2407_v3 = vpop.f32.mrf.mxu0  ;;  %2893 = vmatprep.subr.mxu0 %v3500_v7  ;;  %2925 = vmatprep.mubr.msk.f32.mxu0 %vm3501_vm1, %v3500_v7 }
 0x94f   :  { %v2432_v6 = vrot.slane %v2406_v62, 4  ;;  %2894 = vmatpush3.msra.mxu0 %v2491_v4  ;;  %v2840_v3 = vld [vmem:[%s5161_s5 + $0x3] ss:$0 sm:$0xff] }
 0x950   :  { %v2408_v35 = vpop.f32.mrf.mxu0  ;;  %2895 = vmatprep.subr.mxu0 %v3500_v7 }
 0x951   :  { %v2434_v23 = vmul.f32 %v3250_v28, %v2432_v6  ;;  %2896 = vmatpush3.msra.mxu0 %v2490_v27 }
 0x952   :  { %v2409_v49 = vpop.f32.mrf.mxu0  ;;  %2897 = vmatprep.subr.mxu0 %v3500_v7 }
 0x953   :  { %v2435_v59 = vadd.f32 %v2434_v23, %v2288_v20  ;;  %2898 = vmatpush3.msra.mxu0 %v2489_v42 }
 0x954   :  { %2899 = vmatprep.subr.mxu0 %v3500_v7 }
 0x955   :  { %3253 = vtanh.f32 %v2435_v59  ;;  %2900 = vmatpush3.msra.mxu0 %v2488_v16 }
 0x956   :  { %2901 = vmatprep.subr.mxu0 %v3500_v7 }
 0x957   :  { %2902 = vmatpush3.msra.mxu0 %v2487_v0 }
 0x958   :  { %2903 = vmatprep.subr.mxu0 %v3500_v7 }
 0x959   :  { %2904 = vmatpush3.msra.mxu0 %v2486_v43 }
 0x95a   :  { %2905 = vmatprep.subr.mxu0 %v3500_v7 }
 0x95b   :  { %2906 = vmatpush3.msra.mxu0 %v2485_v11 }
 0x95c   :  { %2907 = vmatprep.subr.mxu0 %v3500_v7 }
 0x95d   :  { %2908 = vmatpush3.msra.mxu0 %v2484_v51 }
 0x95e   :  { %2909 = vmatprep.subr.mxu0 %v3500_v7 }
 0x95f   :  { %2910 = vmatpush3.msra.mxu0 %v2483_v58 }
 0x960   :  { %2911 = vmatprep.subr.mxu0 %v3500_v7 }
 0x961   :  { %2912 = vmatpush3.msra.mxu0 %v2482_v52 }
 0x962   :  { %v3254_v44 = vpop.eup %3253  ;;  %2913 = vmatprep.subr.mxu0 %v3500_v7 }
 0x963   :  { %v2438_v19 = vmul.f32 %v3254_v44, %v2437_v33  ;;  %2914 = vmatpush3.msra.mxu0 %v2481_v40 }
 0x964   :  { %2915 = vmatprep.subr.mxu0 %v3500_v7 }
 0x965   :  { %v2443_v37 = vadd.f32 %v2442_v53, %v2438_v19  ;;  %2916 = vmatpush3.msra.mxu0 %v2480_v31 }
 0x966   :  { %2917 = vmatprep.subr.mxu0 %v3500_v7 }
 0x967   :  { %v2501_v36 = vrot.slane %v2443_v37, 4  ;;  %2918 = vmatpush3.msra.mxu0 %v2479_v10 }
 0x968   :  { %2919 = vmatprep.subr.mxu0 %v3500_v7 }
 0x969   :  { %2570 = vmatmul.mubr.f32.vlgmr.msra.gmra.mxu1 %v2501_v36  ;;  %2920 = vmatpush3.msra.mxu0 %v2478_v14 }
 0x96a   :  { %2921 = vmatprep.subr.mxu0 %v3500_v7 }
 0x96b   :  { %2922 = vmatpush3.msra.mxu0 %v2477_v50 }
 0x96c   :  { %2923 = vmatprep.subr.mxu0 %v3500_v7 }
 0x96d   :  { %2924 = vmatpush3.msra.mxu0 %v2476_v8 }
 0xa29   :  { %v2873_v12 = vpop.f32.mrf.mxu1 }
 0xa2b   :  { %v2874_v26 = vpop.f32.mrf.mxu1 }
 0xa2c   :  { %v2875_v47 = vadd.f32 %v2874_v26, %v2873_v12 }
 0xa2e   :  { %v2572_v39 = vadd.f32 %v2875_v47, %v2837_v48 }
 0xa30   :  { %v2576_v30 = vsel %vm2575_vm2, %v2572_v39, 0.0 }
 0xa31   :  { %v2577_v9 = vrot.slane %v2576_v30, 4 }
 0xa33   :  { %v2578_v21 = vadd.f32 %v2577_v9, %v2576_v30 }
 0xa35   :  { %v2579_v29 = vrot.slane %v2578_v21, 2 }
 0xa37   :  { %v2580_v60 = vadd.f32 %v2579_v29, %v2578_v21 }
 0xa39   :  { %v2581_v57 = vrot.slane %v2580_v60, 1 }
 0xa3b   :  { %v2582_v38 = vadd.f32 %v2581_v57, %v2580_v60 }
 0xa3d   :  { %v2584_v22 = vmul.f32 0.25, %v2582_v38 }
 0xa3f   :  { %v2585_v17 = vsub.f32 %v2572_v39, %v2584_v22 }
 0xa41   :  { %v2586_v63 = vmul.f32 %v2585_v17, %v2585_v17 }
 0xa43   :  { %v2587_v2 = vsel %vm2575_vm2, %v2586_v63, 0.0 }
 0xa44   :  { %v2588_v41 = vrot.slane %v2587_v2, 4 }
 0xa46   :  { %v2589_v45 = vadd.f32 %v2588_v41, %v2587_v2 }
 0xa48   :  { %v2590_v1 = vrot.slane %v2589_v45, 2 }
 0xa4a   :  { %v2591_v18 = vadd.f32 %v2590_v1, %v2589_v45 }
 0xa4c   :  { %v2592_v25 = vrot.slane %v2591_v18, 1 }
 0xa4e   :  { %v2593_v54 = vadd.f32 %v2592_v25, %v2591_v18 }
 0xa50   :  { %v2594_v56 = vmul.f32 0.25, %v2593_v54 }
 0xa52   :  { %v2595_v32 = vadd.f32 1e-05, %v2594_v56 }
 0xa54   :  { %3255 = vrsqrt.f32 %v2595_v32 }
 0xa61   :  { %v3256_v24 = vpop.eup %3255 }
 0xa62   :  { %v2597_v15 = vmul.f32 %v3256_v24, %v2585_v17 }
 0xa64   :  { %v2602_v34 = vmul.f32 %v2838_v13, %v2597_v15 }
 0xa66   :  { %v2607_v55 = vadd.f32 %v2839_v5, %v2602_v34 }
 0xa68   :  { %v2608_v62 = vmax.f32 %v2607_v55, 0.0 }
 0xa6a   :  { %2926 = vmatmul.mubr.f32.vlgmr.msra.gmra.mxu0 %v2608_v62 }
 0xb2a   :  { %v2679_v6 = vpop.f32.mrf.mxu0 }
 0xb2b   :  { %v2680_v28 = vadd.f32 %v2840_v3, %v2679_v6 }
 0xb2c   :  { %v2927_v35 = vpop.f32.mrf.mxu0 }
 0xb2d   :  { %2683 = vst [vmem:[%s5162_s6] sm:$0xf] %v2680_v28 }
 0xb2e   :  { %2688 = vsyncpa [#allocation4], 1 }
 0xb2f   :  { %2689 = vsyncpa [#allocation6], 1 }

</bundles_post_ra>
